<compile_context>
chip_gen: v7x
topology: tpu7x:2x2x1
jax: 0.10.0
libtpu: 0.0.40
codegen_flags: <defaults>
</compile_context>

<pallas_src>
import math
import numpy as np
import jax
import jax.numpy as jnp
from jax.experimental import pallas as pl
from jax.experimental.pallas import tpu as pltpu


_SQRT2_INV = np.float32(1.0 / np.sqrt(2.0))


# --------------------------------------------------------------------------
# Pallas kernels
# --------------------------------------------------------------------------
def _vmem_spec():
    return pl.BlockSpec(memory_space=pltpu.MemorySpace.VMEM)


def _linear_relu_kernel(x_ref, w_ref, o_ref):
    y = jnp.dot(x_ref[...], w_ref[...], preferred_element_type=jnp.float32)
    o_ref[...] = jnp.maximum(y, 0.0)


def _linear_kernel(x_ref, w_ref, o_ref):
    o_ref[...] = jnp.dot(x_ref[...], w_ref[...],
                         preferred_element_type=jnp.float32)


def _lc_stack_idwt(chi_d, chi_a, w_list, b_list, cur, K_LC, nb, L):
    """Fused PUC(+ReLU) stack, residual add and Haar-IDWT butterfly (values).

    chi_d, chi_a : (B, d, k, L + 2*K_LC*P)  zero-padded detail/approx channels
    w_list[j]    : (2*2*nb, d, k, L + 2*(K_LC-1-j)*P)  leading dim = (o*2+i)*nb+f
    b_list[j]    : (2, d, k, L + 2*(K_LC-1-j)*P)
    cur          : (B, d, k, L)  residual added to the approx channel
    Returns (x0, x1): the even / odd halves of the Haar IDWT, each (B,d,k,L).

    Layers j < K_LC-1 are computed on a symmetric zero-extended window; the
    zero weight/bias borders produce ReLU(0)=0 there, which is exactly the
    zero padding the next layer needs -> only static minor-dim slices needed.
    """
    chans = [chi_d, chi_a]                       # channel 0 = detail, 1 = approx
    for j in range(K_LC):
        w = w_list[j]
        b = b_list[j]
        Lj = w.shape[-1]
        new_chans = []
        for o in range(2):
            acc = b[o][None]                     # (1, d, k, Lj)
            for i in range(2):
                xi = chans[i]                    # (B, d, k, Lj + nb - 1)
                for f in range(nb):
                    acc = acc + w[(o * 2 + i) * nb + f][None] * xi[..., f:f + Lj]
            new_chans.append(jnp.maximum(acc, 0.0))
        chans = new_chans
    x_d = chans[0]
    x_a = chans[1] + cur
    return (x_a + x_d) * _SQRT2_INV, (x_a - x_d) * _SQRT2_INV


def _make_coarse_kernel(B, d, k, L, K_dense, K_LC, nb):
    """dense stack (K_dense layers) + LC stack + residual + IDWT butterfly."""
    P = nb // 2

    def kernel(*refs):
        chid_ref, chia_ref = refs[0], refs[1]
        wd_refs = refs[2:2 + K_dense]
        lcw_refs = refs[2 + K_dense:2 + K_dense + K_LC]
        lcb_refs = refs[2 + K_dense + K_LC:2 + K_dense + 2 * K_LC]
        x0_ref, x1_ref = refs[-2], refs[-1]

        chi_d2 = chid_ref[...]                              # (B, k, Lp)
        chi_a2 = chia_ref[...]

        # dense stack input: unpadded coarsest approx, broadcast over d
        a = chi_a2[..., K_LC * P:K_LC * P + L]              # (B, k, L)
        cur = jnp.broadcast_to(a[:, None, :, :], (B, d, k, L))
        for wd_ref in wd_refs:
            wd = wd_ref[...]                                # (Q, d, k, Q) = [q,d,k,t]
            acc = None
            for q in range(L):                              # Q == L at coarsest level
                term = wd[q][None] * cur[..., q:q + 1]
                acc = term if acc is None else acc + term
            cur = jnp.maximum(acc, 0.0)

        Lp = L + 2 * K_LC * P
        chi_d = jnp.broadcast_to(chi_d2[:, None], (B, d, k, Lp))
        chi_a = jnp.broadcast_to(chi_a2[:, None], (B, d, k, Lp))
        x0, x1 = _lc_stack_idwt(chi_d, chi_a,
                                [r[...] for r in lcw_refs],
                                [r[...] for r in lcb_refs],
                                cur, K_LC, nb, L)
        x0_ref[...] = x0
        x1_ref[...] = x1

    return kernel


def _make_level_kernel(B, d, k, L, K_LC, nb):
    """LC stack + residual + IDWT butterfly for a finer wavelet level."""
    P = nb // 2

    def kernel(*refs):
        chid_ref, chia_ref, cur_ref = refs[0], refs[1], refs[2]
        lcw_refs = refs[3:3 + K_LC]
        lcb_refs = refs[3 + K_LC:3 + 2 * K_LC]
        x0_ref, x1_ref = refs[-2], refs[-1]

        Lp = L + 2 * K_LC * P
        chi_d = jnp.broadcast_to(chid_ref[...][:, None], (B, d, k, Lp))
        chi_a = jnp.broadcast_to(chia_ref[...][:, None], (B, d, k, Lp))
        cur = cur_ref[...]
        x0, x1 = _lc_stack_idwt(chi_d, chi_a,
                                [r[...] for r in lcw_refs],
                                [r[...] for r in lcb_refs],
                                cur, K_LC, nb, L)
        x0_ref[...] = x0
        x1_ref[...] = x1

    return kernel


# --------------------------------------------------------------------------
# Pallas wrappers (single grid-less invocation, whole arrays in VMEM)
# --------------------------------------------------------------------------
def linear_pallas(x, w, relu):
    M, K = x.shape
    N = w.shape[1]
    return pl.pallas_call(
        _linear_relu_kernel if relu else _linear_kernel,
        out_shape=jax.ShapeDtypeStruct((M, N), jnp.float32),
        in_specs=[_vmem_spec(), _vmem_spec()],
        out_specs=_vmem_spec(),
    )(x, w)


def coarse_pallas(chid_pad, chia_pad, dense_w, lc_w, lc_b, cfg, L):
    B, k, _ = chid_pad.shape
    kernel = _make_coarse_kernel(B, cfg.d, k, L, cfg.K_dense, cfg.K_LC, cfg.nb)
    inputs = [chid_pad, chia_pad, *dense_w, *lc_w, *lc_b]
    out_sd = jax.ShapeDtypeStruct((B, cfg.d, k, L), jnp.float32)
    return pl.pallas_call(
        kernel,
        out_shape=(out_sd, out_sd),
        in_specs=[_vmem_spec() for _ in inputs],
        out_specs=(_vmem_spec(), _vmem_spec()),
    )(*inputs)


def level_pallas(chid_pad, chia_pad, cur, lc_w, lc_b, cfg, L):
    B, k, _ = chid_pad.shape
    kernel = _make_level_kernel(B, cfg.d, k, L, cfg.K_LC, cfg.nb)
    inputs = [chid_pad, chia_pad, cur, *lc_w, *lc_b]
    out_sd = jax.ShapeDtypeStruct((B, cfg.d, k, L), jnp.float32)
    return pl.pallas_call(
        kernel,
        out_shape=(out_sd, out_sd),
        in_specs=[_vmem_spec() for _ in inputs],
        out_specs=(_vmem_spec(), _vmem_spec()),
    )(*inputs)


# --------------------------------------------------------------------------
# Glue: Haar DWT / IDWT interleave, PUC weight expansion / kernel layouts
# --------------------------------------------------------------------------
def haar_dwt(x):
    # x: (..., L) with L even. Returns (approx, detail) of length L // 2.
    x0 = x[..., 0::2]
    x1 = x[..., 1::2]
    return (x0 + x1) * _SQRT2_INV, (x0 - x1) * _SQRT2_INV


def interleave_idwt(x0, x1):
    # x0/x1: (..., L) even/odd IDWT halves -> (..., 2L)
    return jnp.stack([x0, x1], axis=-1).reshape(x0.shape[:-1] + (2 * x0.shape[-1],))


def pad_and_unfold(x, pad, kl, stride=1):
    # reference path only: torch ConstantPad1d + unfold
    xp = jnp.pad(x, [(0, 0)] * (x.ndim - 1) + [(pad, pad)])
    Lp = xp.shape[-1]
    Lout = (Lp - kl) // stride + 1
    idx = np.arange(Lout)[:, None] * stride + np.arange(kl)[None, :]
    return xp[..., idx]


def expand_lc_params(W, bias, L_in, L_out, nsp):
    # cheapPartiallyUnsharedConv1d weight / bias expansion.
    # W: (d, k, 2, 2, nsp, 1, kl), bias: (d, k, 2, nsp, 1)
    m = L_in // nsp
    Wsq = W[:, :, :, :, :, 0, :]                       # (d,k,2,2,nsp,kl)
    Wrep = jnp.repeat(Wsq, m, axis=4)                  # (d,k,2,2,nsp*m,kl)
    rem = L_out - nsp * m
    if rem > 0:
        last = Wsq[:, :, :, :, -1:, :]
        Wrep = jnp.concatenate([Wrep] + [last] * rem, axis=4)
    bsq = bias[:, :, :, :, 0]                          # (d,k,2,nsp)
    brep = jnp.repeat(bsq, m, axis=3)                  # (d,k,2,nsp*m)
    if rem > 0:
        blast = bsq[:, :, :, -1:]
        brep = jnp.concatenate([brep] + [blast] * rem, axis=3)
    return Wrep, brep


def _prepare_dense_w(W):
    # (d, k, t, q) -> (q, d, k, t): leading-dim indexed inside the kernel.
    return jnp.transpose(W, (3, 0, 1, 2)).astype(jnp.float32)


def _prepare_lc_params(W, bias, L, cfg, pad_extra):
    # expand the partially-unshared weights to per-position filters, zero
    # extend them by `pad_extra` on both sides of the L axis and lay them out
    # as (o*2+i)*nb+f leading / (d, k, L) trailing for the kernel.
    Wexp, bexp = expand_lc_params(W, bias, L, L, cfg.num_sparse_LC)
    if pad_extra > 0:
        Wexp = jnp.pad(Wexp, [(0, 0)] * 4 + [(pad_extra, pad_extra), (0, 0)])
        bexp = jnp.pad(bexp, [(0, 0)] * 3 + [(pad_extra, pad_extra)])
    Lj = Wexp.shape[4]
    Wk = jnp.transpose(Wexp, (2, 3, 5, 0, 1, 4)).reshape(
        2 * 2 * cfg.nb, cfg.d, cfg.k, Lj).astype(jnp.float32)
    bk = jnp.transpose(bexp, (2, 0, 1, 3)).astype(jnp.float32)   # (2,d,k,Lj)
    return Wk, bk


# --------------------------------------------------------------------------
# Pure-JAX reference path (original unfold + einsum formulation)
# --------------------------------------------------------------------------
def _dense_stack_ref(app, dense_Ws, cfg):
    B, k, Q = app.shape
    cur = jnp.broadcast_to(app[:, None], (B, cfg.d, k, Q))
    for W in dense_Ws:
        cur = jnp.maximum(jnp.einsum("dktq,bdkq->bdkt", W, cur), 0.0)
    return cur


def _lc_stack_ref(det, app, lc_Ws, lc_bs, cur, cfg):
    B, k, L = det.shape
    chi = jnp.stack([det, app], axis=2)                         # (B, k, 2, L)
    chi = jnp.broadcast_to(chi[:, None], (B, cfg.d, k, 2, L))   # (B, d, k, 2, L)
    for j in range(cfg.K_LC):
        xu = pad_and_unfold(chi, cfg.nb // 2, cfg.nb)           # (B,d,k,2,L,nb)
        Wexp, bexp = expand_lc_params(lc_Ws[j], lc_bs[j], L, L, cfg.num_sparse_LC)
        chi = jnp.maximum(
            jnp.einsum("dkoilf,bdkilf->bdkol", Wexp, xu) + bexp[None], 0.0)
    x_d = chi[:, :, :, 0, :]
    x_a = chi[:, :, :, 1, :] + cur
    return (x_a + x_d) * _SQRT2_INV, (x_a - x_d) * _SQRT2_INV


# --------------------------------------------------------------------------
# Model
# --------------------------------------------------------------------------
class Config:
    D = 4            # input feature dim
    D_out = 4        # output feature dim
    d = 4            # dim_d
    k = 4            # dim_k (must equal d: the channel axis plays the k role)
    T = 16           # original_length (power of two)
    n_levels = 2
    K_dense = 2
    K_LC = 2
    nb = 3           # odd kernel size -> same-length output
    num_sparse_LC = 2
    batch = 2


def init_params(cfg, key):
    ks = jax.random.split(key, 8)
    params = {}
    params["Wg"] = 0.1 * jax.random.normal(ks[0], (cfg.D, cfg.d), jnp.float32)
    params["Wr"] = 0.1 * jax.random.normal(ks[1], (cfg.d, cfg.D_out), jnp.float32)
    Q = cfg.T // (2 ** cfg.n_levels)  # dense_dim (coarsest approx length)
    dk = jax.random.split(ks[2], cfg.K_dense)
    params["dense"] = [
        0.1 * jax.random.normal(dk[i], (cfg.d, cfg.k, Q, Q), jnp.float32)
        for i in range(cfg.K_dense)
    ]
    lw_keys = jax.random.split(ks[3], cfg.n_levels * cfg.K_LC)
    lb_keys = jax.random.split(ks[4], cfg.n_levels * cfg.K_LC)
    params["lc_w"] = [[None] * cfg.K_LC for _ in range(cfg.n_levels)]
    params["lc_b"] = [[None] * cfg.K_LC for _ in range(cfg.n_levels)]
    idx = 0
    for l in range(cfg.n_levels):
        for j in range(cfg.K_LC):
            params["lc_w"][l][j] = 0.05 * jax.random.normal(
                lw_keys[idx], (cfg.d, cfg.k, 2, 2, cfg.num_sparse_LC, 1, cfg.nb),
                jnp.float32)
            params["lc_b"][l][j] = 0.02 * jax.random.normal(
                lb_keys[idx], (cfg.d, cfg.k, 2, cfg.num_sparse_LC, 1),
                jnp.float32)
            idx += 1
    return params


def cde_bcr_forward(seq, params, cfg, use_pallas=True):
    B, T, D = seq.shape
    assert cfg.d == cfg.k, "model requires dim_k == dim_d (channel count)"
    P = cfg.nb // 2

    # 1. g_layer + ReLU   (B*T, D) @ (D, d)
    x2d = seq.reshape(B * T, D)
    if use_pallas:
        z = linear_pallas(x2d, params["Wg"], relu=True)
    else:
        z = jnp.maximum(x2d @ params["Wg"], 0.0)
    v = jnp.transpose(z.reshape(B, T, cfg.d), (0, 2, 1))        # (B, d, T) NCL

    # 2. forward wavelet cascade (Haar, periodization)
    all_detail, all_approx = [], []
    ca = v
    for _ in range(cfg.n_levels):
        ca, cd = haar_dwt(ca)
        all_detail.append(cd)
        all_approx.append(ca)

    # 3+4. fused per-level reconstruction
    dth = None
    for l in reversed(range(cfg.n_levels)):
        det = all_detail[l]                                     # (B, k, L)
        app = all_approx[l]                                     # (B, k, L)
        L = det.shape[-1]
        is_coarsest = (l == cfg.n_levels - 1)

        if use_pallas:
            pad = cfg.K_LC * P
            chid_pad = jnp.pad(det, [(0, 0), (0, 0), (pad, pad)])
            chia_pad = jnp.pad(app, [(0, 0), (0, 0), (pad, pad)])
            lc_w, lc_b = [], []
            for j in range(cfg.K_LC):
                wj, bj = _prepare_lc_params(params["lc_w"][l][j],
                                            params["lc_b"][l][j],
                                            L, cfg, (cfg.K_LC - 1 - j) * P)
                lc_w.append(wj)
                lc_b.append(bj)
            if is_coarsest:
                dense_w = [_prepare_dense_w(W) for W in params["dense"]]
                x0, x1 = coarse_pallas(chid_pad, chia_pad, dense_w,
                                       lc_w, lc_b, cfg, L)
            else:
                cur = dth
                if cur.shape[-1] != L:                          # shape_correction
                    cur = jnp.pad(cur, [(0, 0)] * 3 + [(L - cur.shape[-1], 0)])
                x0, x1 = level_pallas(chid_pad, chia_pad, cur,
                                      lc_w, lc_b, cfg, L)
        else:
            if is_coarsest:
                cur = _dense_stack_ref(app, params["dense"], cfg)
            else:
                cur = dth
                if cur.shape[-1] != L:                          # shape_correction
                    cur = jnp.pad(cur, [(0, 0)] * 3 + [(L - cur.shape[-1], 0)])
            x0, x1 = _lc_stack_ref(det, app, params["lc_w"][l],
                                   params["lc_b"][l], cur, cfg)

        dth = interleave_idwt(x0, x1)                           # (B, d, k, 2L)

    # 5. sum over k, reverse g_layer
    out = jnp.sum(dth, axis=2)                                  # (B, d, T)
    out_t = jnp.transpose(out, (0, 2, 1)).reshape(B * T, cfg.d)
    if use_pallas:
        U = linear_pallas(out_t, params["Wr"], relu=False)
    else:
        U = out_t @ params["Wr"]
    return U.reshape(B, T, cfg.D_out)


# --------------------------------------------------------------------------
# Main
# --------------------------------------------------------------------------
if __name__ == "__main__":
    cfg = Config()
    key = jax.random.PRNGKey(0)
    pkey, xkey = jax.random.split(key)
    params = init_params(cfg, pkey)
    seq = jax.random.normal(xkey, (cfg.batch, cfg.T, cfg.D), jnp.float32)

    fwd = jax.jit(lambda s, p: cde_bcr_forward(s, p, cfg, use_pallas=True))
    U = jax.block_until_ready(fwd(seq, params))

    # pure-JAX reference (original unfold + einsum formulation) sanity check
    U_ref = jax.block_until_ready(
        cde_bcr_forward(seq, params, cfg, use_pallas=False))

    assert U.shape == (cfg.batch, cfg.T, cfg.D_out)
    np.testing.assert_allclose(np.asarray(U), np.asarray(U_ref),
                               rtol=1e-4, atol=1e-4)
    print("KERNEL_OK")
</pallas_src>

<mosaic_0001>
module attributes {stable_mosaic.version = 11 : i64} {
  func.func @_linear_relu_kernel(%arg0: memref<32x4xf32, #tpu.memory_space<vmem>>, %arg1: memref<4x4xf32, #tpu.memory_space<vmem>>, %arg2: memref<32x4xf32, #tpu.memory_space<vmem>>) attributes {dimension_semantics = [], scalar_prefetch = 0 : i64, scratch_operands = 0 : i64, tpu.core_type = #tpu.core_type<tc>} {
    %c0 = arith.constant 0 : index
    %c0_0 = arith.constant 0 : index
    %0 = vector.load %arg0[%c0, %c0_0] : memref<32x4xf32, #tpu.memory_space<vmem>>, vector<32x4xf32>
    %c0_1 = arith.constant 0 : index
    %c0_2 = arith.constant 0 : index
    %1 = vector.load %arg1[%c0_1, %c0_2] : memref<4x4xf32, #tpu.memory_space<vmem>>, vector<4x4xf32>
    %cst = arith.constant dense<0.000000e+00> : vector<32x4xf32>
    %2 = tpu.matmul %0, %1, %cst {dimension_numbers = #tpu.dot_dimension_numbers<[1], [0], [0], [1], [0, 0, 1, 1], [], []>} : vector<32x4xf32>, vector<4x4xf32>, vector<32x4xf32> -> vector<32x4xf32>
    %cst_3 = arith.constant 0.000000e+00 : f32
    %3 = vector.broadcast %cst_3 : f32 to vector<32x4xf32>
    %4 = arith.maximumf %2, %3 : vector<32x4xf32>
    %c0_4 = arith.constant 0 : index
    %c0_5 = arith.constant 0 : index
    %5 = vector.load %arg2[%c0_4, %c0_5] : memref<32x4xf32, #tpu.memory_space<vmem>>, vector<32x4xf32>
    tpu.vector_store %arg2[%c0_4, %c0_5], %4 {strides = array<i32>} : memref<32x4xf32, #tpu.memory_space<vmem>>, vector<32x4xf32>,
    return
  }
}

module attributes {stable_mosaic.version = 11 : i64} {
  func.func @kernel(%arg0: memref<2x4x8xf32, #tpu.memory_space<vmem>>, %arg1: memref<2x4x8xf32, #tpu.memory_space<vmem>>, %arg2: memref<4x4x4x4xf32, #tpu.memory_space<vmem>>, %arg3: memref<4x4x4x4xf32, #tpu.memory_space<vmem>>, %arg4: memref<12x4x4x6xf32, #tpu.memory_space<vmem>>, %arg5: memref<12x4x4x4xf32, #tpu.memory_space<vmem>>, %arg6: memref<2x4x4x6xf32, #tpu.memory_space<vmem>>, %arg7: memref<2x4x4x4xf32, #tpu.memory_space<vmem>>, %arg8: memref<2x4x4x4xf32, #tpu.memory_space<vmem>>, %arg9: memref<2x4x4x4xf32, #tpu.memory_space<vmem>>) attributes {dimension_semantics = [], scalar_prefetch = 0 : i64, scratch_operands = 0 : i64, tpu.core_type = #tpu.core_type<tc>} {
    %c0 = arith.constant 0 : index
    %c0_0 = arith.constant 0 : index
    %c0_1 = arith.constant 0 : index
    %0 = vector.load %arg0[%c0, %c0_0, %c0_1] : memref<2x4x8xf32, #tpu.memory_space<vmem>>, vector<2x4x8xf32>
    %c0_2 = arith.constant 0 : index
    %c0_3 = arith.constant 0 : index
    %c0_4 = arith.constant 0 : index
    %1 = vector.load %arg1[%c0_2, %c0_3, %c0_4] : memref<2x4x8xf32, #tpu.memory_space<vmem>>, vector<2x4x8xf32>
    %2 = vector.extract_strided_slice %1 {offsets = [0, 0, 2], sizes = [2, 4, 4], strides = [1, 1, 1]} : vector<2x4x8xf32> to vector<2x4x4xf32>
    %3 = vector.shape_cast %2 : vector<2x4x4xf32> to vector<2x1x4x4xf32>
    %4 = vector.shape_cast %3 : vector<2x1x4x4xf32> to vector<2x1x4x4xf32>
    %5 = vector.broadcast %4 : vector<2x1x4x4xf32> to vector<2x4x4x4xf32>
    %c0_5 = arith.constant 0 : index
    %c0_6 = arith.constant 0 : index
    %c0_7 = arith.constant 0 : index
    %c0_8 = arith.constant 0 : index
    %6 = vector.load %arg2[%c0_5, %c0_6, %c0_7, %c0_8] : memref<4x4x4x4xf32, #tpu.memory_space<vmem>>, vector<4x4x4x4xf32>
    %7 = vector.extract_strided_slice %6 {offsets = [0, 0, 0, 0], sizes = [1, 4, 4, 4], strides = [1, 1, 1, 1]} : vector<4x4x4x4xf32> to vector<1x4x4x4xf32>
    %8 = vector.shape_cast %7 : vector<1x4x4x4xf32> to vector<4x4x4xf32>
    %9 = vector.shape_cast %8 : vector<4x4x4xf32> to vector<1x4x4x4xf32>
    %10 = vector.extract_strided_slice %5 {offsets = [0, 0, 0, 0], sizes = [2, 4, 4, 1], strides = [1, 1, 1, 1]} : vector<2x4x4x4xf32> to vector<2x4x4x1xf32>
    %11 = vector.broadcast %9 : vector<1x4x4x4xf32> to vector<2x4x4x4xf32>
    %12 = vector.broadcast %10 : vector<2x4x4x1xf32> to vector<2x4x4x4xf32>
    %13 = arith.mulf %11, %12 : vector<2x4x4x4xf32>
    %14 = vector.extract_strided_slice %6 {offsets = [1, 0, 0, 0], sizes = [1, 4, 4, 4], strides = [1, 1, 1, 1]} : vector<4x4x4x4xf32> to vector<1x4x4x4xf32>
    %15 = vector.shape_cast %14 : vector<1x4x4x4xf32> to vector<4x4x4xf32>
    %16 = vector.shape_cast %15 : vector<4x4x4xf32> to vector<1x4x4x4xf32>
    %17 = vector.extract_strided_slice %5 {offsets = [0, 0, 0, 1], sizes = [2, 4, 4, 1], strides = [1, 1, 1, 1]} : vector<2x4x4x4xf32> to vector<2x4x4x1xf32>
    %18 = vector.broadcast %16 : vector<1x4x4x4xf32> to vector<2x4x4x4xf32>
    %19 = vector.broadcast %17 : vector<2x4x4x1xf32> to vector<2x4x4x4xf32>
    %20 = arith.mulf %18, %19 : vector<2x4x4x4xf32>
    %21 = arith.addf %13, %20 : vector<2x4x4x4xf32>
    %22 = vector.extract_strided_slice %6 {offsets = [2, 0, 0, 0], sizes = [1, 4, 4, 4], strides = [1, 1, 1, 1]} : vector<4x4x4x4xf32> to vector<1x4x4x4xf32>
    %23 = vector.shape_cast %22 : vector<1x4x4x4xf32> to vector<4x4x4xf32>
    %24 = vector.shape_cast %23 : vector<4x4x4xf32> to vector<1x4x4x4xf32>
    %25 = vector.extract_strided_slice %5 {offsets = [0, 0, 0, 2], sizes = [2, 4, 4, 1], strides = [1, 1, 1, 1]} : vector<2x4x4x4xf32> to vector<2x4x4x1xf32>
    %26 = vector.broadcast %24 : vector<1x4x4x4xf32> to vector<2x4x4x4xf32>
    %27 = vector.broadcast %25 : vector<2x4x4x1xf32> to vector<2x4x4x4xf32>
    %28 = arith.mulf %26, %27 : vector<2x4x4x4xf32>
    %29 = arith.addf %21, %28 : vector<2x4x4x4xf32>
    %30 = vector.extract_strided_slice %6 {offsets = [3, 0, 0, 0], sizes = [1, 4, 4, 4], strides = [1, 1, 1, 1]} : vector<4x4x4x4xf32> to vector<1x4x4x4xf32>
    %31 = vector.shape_cast %30 : vector<1x4x4x4xf32> to vector<4x4x4xf32>
    %32 = vector.shape_cast %31 : vector<4x4x4xf32> to vector<1x4x4x4xf32>
    %33 = vector.extract_strided_slice %5 {offsets = [0, 0, 0, 3], sizes = [2, 4, 4, 1], strides = [1, 1, 1, 1]} : vector<2x4x4x4xf32> to vector<2x4x4x1xf32>
    %34 = vector.broadcast %32 : vector<1x4x4x4xf32> to vector<2x4x4x4xf32>
    %35 = vector.broadcast %33 : vector<2x4x4x1xf32> to vector<2x4x4x4xf32>
    %36 = arith.mulf %34, %35 : vector<2x4x4x4xf32>
    %37 = arith.addf %29, %36 : vector<2x4x4x4xf32>
    %cst = arith.constant 0.000000e+00 : f32
    %38 = vector.broadcast %cst : f32 to vector<2x4x4x4xf32>
    %39 = arith.maximumf %37, %38 : vector<2x4x4x4xf32>
    %c0_9 = arith.constant 0 : index
    %c0_10 = arith.constant 0 : index
    %c0_11 = arith.constant 0 : index
    %c0_12 = arith.constant 0 : index
    %40 = vector.load %arg3[%c0_9, %c0_10, %c0_11, %c0_12] : memref<4x4x4x4xf32, #tpu.memory_space<vmem>>, vector<4x4x4x4xf32>
    %41 = vector.extract_strided_slice %40 {offsets = [0, 0, 0, 0], sizes = [1, 4, 4, 4], strides = [1, 1, 1, 1]} : vector<4x4x4x4xf32> to vector<1x4x4x4xf32>
    %42 = vector.shape_cast %41 : vector<1x4x4x4xf32> to vector<4x4x4xf32>
    %43 = vector.shape_cast %42 : vector<4x4x4xf32> to vector<1x4x4x4xf32>
    %44 = vector.extract_strided_slice %39 {offsets = [0, 0, 0, 0], sizes = [2, 4, 4, 1], strides = [1, 1, 1, 1]} : vector<2x4x4x4xf32> to vector<2x4x4x1xf32>
    %45 = vector.broadcast %43 : vector<1x4x4x4xf32> to vector<2x4x4x4xf32>
    %46 = vector.broadcast %44 : vector<2x4x4x1xf32> to vector<2x4x4x4xf32>
    %47 = arith.mulf %45, %46 : vector<2x4x4x4xf32>
    %48 = vector.extract_strided_slice %40 {offsets = [1, 0, 0, 0], sizes = [1, 4, 4, 4], strides = [1, 1, 1, 1]} : vector<4x4x4x4xf32> to vector<1x4x4x4xf32>
    %49 = vector.shape_cast %48 : vector<1x4x4x4xf32> to vector<4x4x4xf32>
    %50 = vector.shape_cast %49 : vector<4x4x4xf32> to vector<1x4x4x4xf32>
    %51 = vector.extract_strided_slice %39 {offsets = [0, 0, 0, 1], sizes = [2, 4, 4, 1], strides = [1, 1, 1, 1]} : vector<2x4x4x4xf32> to vector<2x4x4x1xf32>
    %52 = vector.broadcast %50 : vector<1x4x4x4xf32> to vector<2x4x4x4xf32>
    %53 = vector.broadcast %51 : vector<2x4x4x1xf32> to vector<2x4x4x4xf32>
    %54 = arith.mulf %52, %53 : vector<2x4x4x4xf32>
    %55 = arith.addf %47, %54 : vector<2x4x4x4xf32>
    %56 = vector.extract_strided_slice %40 {offsets = [2, 0, 0, 0], sizes = [1, 4, 4, 4], strides = [1, 1, 1, 1]} : vector<4x4x4x4xf32> to vector<1x4x4x4xf32>
    %57 = vector.shape_cast %56 : vector<1x4x4x4xf32> to vector<4x4x4xf32>
    %58 = vector.shape_cast %57 : vector<4x4x4xf32> to vector<1x4x4x4xf32>
    %59 = vector.extract_strided_slice %39 {offsets = [0, 0, 0, 2], sizes = [2, 4, 4, 1], strides = [1, 1, 1, 1]} : vector<2x4x4x4xf32> to vector<2x4x4x1xf32>
    %60 = vector.broadcast %58 : vector<1x4x4x4xf32> to vector<2x4x4x4xf32>
    %61 = vector.broadcast %59 : vector<2x4x4x1xf32> to vector<2x4x4x4xf32>
    %62 = arith.mulf %60, %61 : vector<2x4x4x4xf32>
    %63 = arith.addf %55, %62 : vector<2x4x4x4xf32>
    %64 = vector.extract_strided_slice %40 {offsets = [3, 0, 0, 0], sizes = [1, 4, 4, 4], strides = [1, 1, 1, 1]} : vector<4x4x4x4xf32> to vector<1x4x4x4xf32>
    %65 = vector.shape_cast %64 : vector<1x4x4x4xf32> to vector<4x4x4xf32>
    %66 = vector.shape_cast %65 : vector<4x4x4xf32> to vector<1x4x4x4xf32>
    %67 = vector.extract_strided_slice %39 {offsets = [0, 0, 0, 3], sizes = [2, 4, 4, 1], strides = [1, 1, 1, 1]} : vector<2x4x4x4xf32> to vector<2x4x4x1xf32>
    %68 = vector.broadcast %66 : vector<1x4x4x4xf32> to vector<2x4x4x4xf32>
    %69 = vector.broadcast %67 : vector<2x4x4x1xf32> to vector<2x4x4x4xf32>
    %70 = arith.mulf %68, %69 : vector<2x4x4x4xf32>
    %71 = arith.addf %63, %70 : vector<2x4x4x4xf32>
    %cst_13 = arith.constant 0.000000e+00 : f32
    %72 = vector.broadcast %cst_13 : f32 to vector<2x4x4x4xf32>
    %73 = arith.maximumf %71, %72 : vector<2x4x4x4xf32>
    %74 = vector.shape_cast %0 : vector<2x4x8xf32> to vector<2x1x4x8xf32>
    %75 = vector.shape_cast %74 : vector<2x1x4x8xf32> to vector<2x1x4x8xf32>
    %76 = vector.broadcast %75 : vector<2x1x4x8xf32> to vector<2x4x4x8xf32>
    %77 = vector.shape_cast %1 : vector<2x4x8xf32> to vector<2x1x4x8xf32>
    %78 = vector.shape_cast %77 : vector<2x1x4x8xf32> to vector<2x1x4x8xf32>
    %79 = vector.broadcast %78 : vector<2x1x4x8xf32> to vector<2x4x4x8xf32>
    %c0_14 = arith.constant 0 : index
    %c0_15 = arith.constant 0 : index
    %c0_16 = arith.constant 0 : index
    %c0_17 = arith.constant 0 : index
    %80 = vector.load %arg4[%c0_14, %c0_15, %c0_16, %c0_17] : memref<12x4x4x6xf32, #tpu.memory_space<vmem>>, vector<12x4x4x6xf32>
    %c0_18 = arith.constant 0 : index
    %c0_19 = arith.constant 0 : index
    %c0_20 = arith.constant 0 : index
    %c0_21 = arith.constant 0 : index
    %81 = vector.load %arg5[%c0_18, %c0_19, %c0_20, %c0_21] : memref<12x4x4x4xf32, #tpu.memory_space<vmem>>, vector<12x4x4x4xf32>
    %c0_22 = arith.constant 0 : index
    %c0_23 = arith.constant 0 : index
    %c0_24 = arith.constant 0 : index
    %c0_25 = arith.constant 0 : index
    %82 = vector.load %arg6[%c0_22, %c0_23, %c0_24, %c0_25] : memref<2x4x4x6xf32, #tpu.memory_space<vmem>>, vector<2x4x4x6xf32>
    %c0_26 = arith.constant 0 : index
    %c0_27 = arith.constant 0 : index
    %c0_28 = arith.constant 0 : index
    %c0_29 = arith.constant 0 : index
    %83 = vector.load %arg7[%c0_26, %c0_27, %c0_28, %c0_29] : memref<2x4x4x4xf32, #tpu.memory_space<vmem>>, vector<2x4x4x4xf32>
    %84 = vector.extract_strided_slice %82 {offsets = [0, 0, 0, 0], sizes = [1, 4, 4, 6], strides = [1, 1, 1, 1]} : vector<2x4x4x6xf32> to vector<1x4x4x6xf32>
    %85 = vector.shape_cast %84 : vector<1x4x4x6xf32> to vector<4x4x6xf32>
    %86 = vector.shape_cast %85 : vector<4x4x6xf32> to vector<1x4x4x6xf32>
    %87 = vector.extract_strided_slice %80 {offsets = [0, 0, 0, 0], sizes = [1, 4, 4, 6], strides = [1, 1, 1, 1]} : vector<12x4x4x6xf32> to vector<1x4x4x6xf32>
    %88 = vector.shape_cast %87 : vector<1x4x4x6xf32> to vector<4x4x6xf32>
    %89 = vector.shape_cast %88 : vector<4x4x6xf32> to vector<1x4x4x6xf32>
    %90 = vector.extract_strided_slice %76 {offsets = [0, 0, 0, 0], sizes = [2, 4, 4, 6], strides = [1, 1, 1, 1]} : vector<2x4x4x8xf32> to vector<2x4x4x6xf32>
    %91 = vector.broadcast %89 : vector<1x4x4x6xf32> to vector<2x4x4x6xf32>
    %92 = arith.mulf %91, %90 : vector<2x4x4x6xf32>
    %93 = vector.broadcast %86 : vector<1x4x4x6xf32> to vector<2x4x4x6xf32>
    %94 = arith.addf %93, %92 : vector<2x4x4x6xf32>
    %95 = vector.extract_strided_slice %80 {offsets = [1, 0, 0, 0], sizes = [1, 4, 4, 6], strides = [1, 1, 1, 1]} : vector<12x4x4x6xf32> to vector<1x4x4x6xf32>
    %96 = vector.shape_cast %95 : vector<1x4x4x6xf32> to vector<4x4x6xf32>
    %97 = vector.shape_cast %96 : vector<4x4x6xf32> to vector<1x4x4x6xf32>
    %98 = vector.extract_strided_slice %76 {offsets = [0, 0, 0, 1], sizes = [2, 4, 4, 6], strides = [1, 1, 1, 1]} : vector<2x4x4x8xf32> to vector<2x4x4x6xf32>
    %99 = vector.broadcast %97 : vector<1x4x4x6xf32> to vector<2x4x4x6xf32>
    %100 = arith.mulf %99, %98 : vector<2x4x4x6xf32>
    %101 = arith.addf %94, %100 : vector<2x4x4x6xf32>
    %102 = vector.extract_strided_slice %80 {offsets = [2, 0, 0, 0], sizes = [1, 4, 4, 6], strides = [1, 1, 1, 1]} : vector<12x4x4x6xf32> to vector<1x4x4x6xf32>
    %103 = vector.shape_cast %102 : vector<1x4x4x6xf32> to vector<4x4x6xf32>
    %104 = vector.shape_cast %103 : vector<4x4x6xf32> to vector<1x4x4x6xf32>
    %105 = vector.extract_strided_slice %76 {offsets = [0, 0, 0, 2], sizes = [2, 4, 4, 6], strides = [1, 1, 1, 1]} : vector<2x4x4x8xf32> to vector<2x4x4x6xf32>
    %106 = vector.broadcast %104 : vector<1x4x4x6xf32> to vector<2x4x4x6xf32>
    %107 = arith.mulf %106, %105 : vector<2x4x4x6xf32>
    %108 = arith.addf %101, %107 : vector<2x4x4x6xf32>
    %109 = vector.extract_strided_slice %80 {offsets = [3, 0, 0, 0], sizes = [1, 4, 4, 6], strides = [1, 1, 1, 1]} : vector<12x4x4x6xf32> to vector<1x4x4x6xf32>
    %110 = vector.shape_cast %109 : vector<1x4x4x6xf32> to vector<4x4x6xf32>
    %111 = vector.shape_cast %110 : vector<4x4x6xf32> to vector<1x4x4x6xf32>
    %112 = vector.extract_strided_slice %79 {offsets = [0, 0, 0, 0], sizes = [2, 4, 4, 6], strides = [1, 1, 1, 1]} : vector<2x4x4x8xf32> to vector<2x4x4x6xf32>
    %113 = vector.broadcast %111 : vector<1x4x4x6xf32> to vector<2x4x4x6xf32>
    %114 = arith.mulf %113, %112 : vector<2x4x4x6xf32>
    %115 = arith.addf %108, %114 : vector<2x4x4x6xf32>
    %116 = vector.extract_strided_slice %80 {offsets = [4, 0, 0, 0], sizes = [1, 4, 4, 6], strides = [1, 1, 1, 1]} : vector<12x4x4x6xf32> to vector<1x4x4x6xf32>
    %117 = vector.shape_cast %116 : vector<1x4x4x6xf32> to vector<4x4x6xf32>
    %118 = vector.shape_cast %117 : vector<4x4x6xf32> to vector<1x4x4x6xf32>
    %119 = vector.extract_strided_slice %79 {offsets = [0, 0, 0, 1], sizes = [2, 4, 4, 6], strides = [1, 1, 1, 1]} : vector<2x4x4x8xf32> to vector<2x4x4x6xf32>
    %120 = vector.broadcast %118 : vector<1x4x4x6xf32> to vector<2x4x4x6xf32>
    %121 = arith.mulf %120, %119 : vector<2x4x4x6xf32>
    %122 = arith.addf %115, %121 : vector<2x4x4x6xf32>
    %123 = vector.extract_strided_slice %80 {offsets = [5, 0, 0, 0], sizes = [1, 4, 4, 6], strides = [1, 1, 1, 1]} : vector<12x4x4x6xf32> to vector<1x4x4x6xf32>
    %124 = vector.shape_cast %123 : vector<1x4x4x6xf32> to vector<4x4x6xf32>
    %125 = vector.shape_cast %124 : vector<4x4x6xf32> to vector<1x4x4x6xf32>
    %126 = vector.extract_strided_slice %79 {offsets = [0, 0, 0, 2], sizes = [2, 4, 4, 6], strides = [1, 1, 1, 1]} : vector<2x4x4x8xf32> to vector<2x4x4x6xf32>
    %127 = vector.broadcast %125 : vector<1x4x4x6xf32> to vector<2x4x4x6xf32>
    %128 = arith.mulf %127, %126 : vector<2x4x4x6xf32>
    %129 = arith.addf %122, %128 : vector<2x4x4x6xf32>
    %cst_30 = arith.constant 0.000000e+00 : f32
    %130 = vector.broadcast %cst_30 : f32 to vector<2x4x4x6xf32>
    %131 = arith.maximumf %129, %130 : vector<2x4x4x6xf32>
    %132 = vector.extract_strided_slice %82 {offsets = [1, 0, 0, 0], sizes = [1, 4, 4, 6], strides = [1, 1, 1, 1]} : vector<2x4x4x6xf32> to vector<1x4x4x6xf32>
    %133 = vector.shape_cast %132 : vector<1x4x4x6xf32> to vector<4x4x6xf32>
    %134 = vector.shape_cast %133 : vector<4x4x6xf32> to vector<1x4x4x6xf32>
    %135 = vector.extract_strided_slice %80 {offsets = [6, 0, 0, 0], sizes = [1, 4, 4, 6], strides = [1, 1, 1, 1]} : vector<12x4x4x6xf32> to vector<1x4x4x6xf32>
    %136 = vector.shape_cast %135 : vector<1x4x4x6xf32> to vector<4x4x6xf32>
    %137 = vector.shape_cast %136 : vector<4x4x6xf32> to vector<1x4x4x6xf32>
    %138 = vector.extract_strided_slice %76 {offsets = [0, 0, 0, 0], sizes = [2, 4, 4, 6], strides = [1, 1, 1, 1]} : vector<2x4x4x8xf32> to vector<2x4x4x6xf32>
    %139 = vector.broadcast %137 : vector<1x4x4x6xf32> to vector<2x4x4x6xf32>
    %140 = arith.mulf %139, %138 : vector<2x4x4x6xf32>
    %141 = vector.broadcast %134 : vector<1x4x4x6xf32> to vector<2x4x4x6xf32>
    %142 = arith.addf %141, %140 : vector<2x4x4x6xf32>
    %143 = vector.extract_strided_slice %80 {offsets = [7, 0, 0, 0], sizes = [1, 4, 4, 6], strides = [1, 1, 1, 1]} : vector<12x4x4x6xf32> to vector<1x4x4x6xf32>
    %144 = vector.shape_cast %143 : vector<1x4x4x6xf32> to vector<4x4x6xf32>
    %145 = vector.shape_cast %144 : vector<4x4x6xf32> to vector<1x4x4x6xf32>
    %146 = vector.extract_strided_slice %76 {offsets = [0, 0, 0, 1], sizes = [2, 4, 4, 6], strides = [1, 1, 1, 1]} : vector<2x4x4x8xf32> to vector<2x4x4x6xf32>
    %147 = vector.broadcast %145 : vector<1x4x4x6xf32> to vector<2x4x4x6xf32>
    %148 = arith.mulf %147, %146 : vector<2x4x4x6xf32>
    %149 = arith.addf %142, %148 : vector<2x4x4x6xf32>
    %150 = vector.extract_strided_slice %80 {offsets = [8, 0, 0, 0], sizes = [1, 4, 4, 6], strides = [1, 1, 1, 1]} : vector<12x4x4x6xf32> to vector<1x4x4x6xf32>
    %151 = vector.shape_cast %150 : vector<1x4x4x6xf32> to vector<4x4x6xf32>
    %152 = vector.shape_cast %151 : vector<4x4x6xf32> to vector<1x4x4x6xf32>
    %153 = vector.extract_strided_slice %76 {offsets = [0, 0, 0, 2], sizes = [2, 4, 4, 6], strides = [1, 1, 1, 1]} : vector<2x4x4x8xf32> to vector<2x4x4x6xf32>
    %154 = vector.broadcast %152 : vector<1x4x4x6xf32> to vector<2x4x4x6xf32>
    %155 = arith.mulf %154, %153 : vector<2x4x4x6xf32>
    %156 = arith.addf %149, %155 : vector<2x4x4x6xf32>
    %157 = vector.extract_strided_slice %80 {offsets = [9, 0, 0, 0], sizes = [1, 4, 4, 6], strides = [1, 1, 1, 1]} : vector<12x4x4x6xf32> to vector<1x4x4x6xf32>
    %158 = vector.shape_cast %157 : vector<1x4x4x6xf32> to vector<4x4x6xf32>
    %159 = vector.shape_cast %158 : vector<4x4x6xf32> to vector<1x4x4x6xf32>
    %160 = vector.extract_strided_slice %79 {offsets = [0, 0, 0, 0], sizes = [2, 4, 4, 6], strides = [1, 1, 1, 1]} : vector<2x4x4x8xf32> to vector<2x4x4x6xf32>
    %161 = vector.broadcast %159 : vector<1x4x4x6xf32> to vector<2x4x4x6xf32>
    %162 = arith.mulf %161, %160 : vector<2x4x4x6xf32>
    %163 = arith.addf %156, %162 : vector<2x4x4x6xf32>
    %164 = vector.extract_strided_slice %80 {offsets = [10, 0, 0, 0], sizes = [1, 4, 4, 6], strides = [1, 1, 1, 1]} : vector<12x4x4x6xf32> to vector<1x4x4x6xf32>
    %165 = vector.shape_cast %164 : vector<1x4x4x6xf32> to vector<4x4x6xf32>
    %166 = vector.shape_cast %165 : vector<4x4x6xf32> to vector<1x4x4x6xf32>
    %167 = vector.extract_strided_slice %79 {offsets = [0, 0, 0, 1], sizes = [2, 4, 4, 6], strides = [1, 1, 1, 1]} : vector<2x4x4x8xf32> to vector<2x4x4x6xf32>
    %168 = vector.broadcast %166 : vector<1x4x4x6xf32> to vector<2x4x4x6xf32>
    %169 = arith.mulf %168, %167 : vector<2x4x4x6xf32>
    %170 = arith.addf %163, %169 : vector<2x4x4x6xf32>
    %171 = vector.extract_strided_slice %80 {offsets = [11, 0, 0, 0], sizes = [1, 4, 4, 6], strides = [1, 1, 1, 1]} : vector<12x4x4x6xf32> to vector<1x4x4x6xf32>
    %172 = vector.shape_cast %171 : vector<1x4x4x6xf32> to vector<4x4x6xf32>
    %173 = vector.shape_cast %172 : vector<4x4x6xf32> to vector<1x4x4x6xf32>
    %174 = vector.extract_strided_slice %79 {offsets = [0, 0, 0, 2], sizes = [2, 4, 4, 6], strides = [1, 1, 1, 1]} : vector<2x4x4x8xf32> to vector<2x4x4x6xf32>
    %175 = vector.broadcast %173 : vector<1x4x4x6xf32> to vector<2x4x4x6xf32>
    %176 = arith.mulf %175, %174 : vector<2x4x4x6xf32>
    %177 = arith.addf %170, %176 : vector<2x4x4x6xf32>
    %cst_31 = arith.constant 0.000000e+00 : f32
    %178 = vector.broadcast %cst_31 : f32 to vector<2x4x4x6xf32>
    %179 = arith.maximumf %177, %178 : vector<2x4x4x6xf32>
    %180 = vector.extract_strided_slice %83 {offsets = [0, 0, 0, 0], sizes = [1, 4, 4, 4], strides = [1, 1, 1, 1]} : vector<2x4x4x4xf32> to vector<1x4x4x4xf32>
    %181 = vector.shape_cast %180 : vector<1x4x4x4xf32> to vector<4x4x4xf32>
    %182 = vector.shape_cast %181 : vector<4x4x4xf32> to vector<1x4x4x4xf32>
    %183 = vector.extract_strided_slice %81 {offsets = [0, 0, 0, 0], sizes = [1, 4, 4, 4], strides = [1, 1, 1, 1]} : vector<12x4x4x4xf32> to vector<1x4x4x4xf32>
    %184 = vector.shape_cast %183 : vector<1x4x4x4xf32> to vector<4x4x4xf32>
    %185 = vector.shape_cast %184 : vector<4x4x4xf32> to vector<1x4x4x4xf32>
    %186 = vector.extract_strided_slice %131 {offsets = [0, 0, 0, 0], sizes = [2, 4, 4, 4], strides = [1, 1, 1, 1]} : vector<2x4x4x6xf32> to vector<2x4x4x4xf32>
    %187 = vector.broadcast %185 : vector<1x4x4x4xf32> to vector<2x4x4x4xf32>
    %188 = arith.mulf %187, %186 : vector<2x4x4x4xf32>
    %189 = vector.broadcast %182 : vector<1x4x4x4xf32> to vector<2x4x4x4xf32>
    %190 = arith.addf %189, %188 : vector<2x4x4x4xf32>
    %191 = vector.extract_strided_slice %81 {offsets = [1, 0, 0, 0], sizes = [1, 4, 4, 4], strides = [1, 1, 1, 1]} : vector<12x4x4x4xf32> to vector<1x4x4x4xf32>
    %192 = vector.shape_cast %191 : vector<1x4x4x4xf32> to vector<4x4x4xf32>
    %193 = vector.shape_cast %192 : vector<4x4x4xf32> to vector<1x4x4x4xf32>
    %194 = vector.extract_strided_slice %131 {offsets = [0, 0, 0, 1], sizes = [2, 4, 4, 4], strides = [1, 1, 1, 1]} : vector<2x4x4x6xf32> to vector<2x4x4x4xf32>
    %195 = vector.broadcast %193 : vector<1x4x4x4xf32> to vector<2x4x4x4xf32>
    %196 = arith.mulf %195, %194 : vector<2x4x4x4xf32>
    %197 = arith.addf %190, %196 : vector<2x4x4x4xf32>
    %198 = vector.extract_strided_slice %81 {offsets = [2, 0, 0, 0], sizes = [1, 4, 4, 4], strides = [1, 1, 1, 1]} : vector<12x4x4x4xf32> to vector<1x4x4x4xf32>
    %199 = vector.shape_cast %198 : vector<1x4x4x4xf32> to vector<4x4x4xf32>
    %200 = vector.shape_cast %199 : vector<4x4x4xf32> to vector<1x4x4x4xf32>
    %201 = vector.extract_strided_slice %131 {offsets = [0, 0, 0, 2], sizes = [2, 4, 4, 4], strides = [1, 1, 1, 1]} : vector<2x4x4x6xf32> to vector<2x4x4x4xf32>
    %202 = vector.broadcast %200 : vector<1x4x4x4xf32> to vector<2x4x4x4xf32>
    %203 = arith.mulf %202, %201 : vector<2x4x4x4xf32>
    %204 = arith.addf %197, %203 : vector<2x4x4x4xf32>
    %205 = vector.extract_strided_slice %81 {offsets = [3, 0, 0, 0], sizes = [1, 4, 4, 4], strides = [1, 1, 1, 1]} : vector<12x4x4x4xf32> to vector<1x4x4x4xf32>
    %206 = vector.shape_cast %205 : vector<1x4x4x4xf32> to vector<4x4x4xf32>
    %207 = vector.shape_cast %206 : vector<4x4x4xf32> to vector<1x4x4x4xf32>
    %208 = vector.extract_strided_slice %179 {offsets = [0, 0, 0, 0], sizes = [2, 4, 4, 4], strides = [1, 1, 1, 1]} : vector<2x4x4x6xf32> to vector<2x4x4x4xf32>
    %209 = vector.broadcast %207 : vector<1x4x4x4xf32> to vector<2x4x4x4xf32>
    %210 = arith.mulf %209, %208 : vector<2x4x4x4xf32>
    %211 = arith.addf %204, %210 : vector<2x4x4x4xf32>
    %212 = vector.extract_strided_slice %81 {offsets = [4, 0, 0, 0], sizes = [1, 4, 4, 4], strides = [1, 1, 1, 1]} : vector<12x4x4x4xf32> to vector<1x4x4x4xf32>
    %213 = vector.shape_cast %212 : vector<1x4x4x4xf32> to vector<4x4x4xf32>
    %214 = vector.shape_cast %213 : vector<4x4x4xf32> to vector<1x4x4x4xf32>
    %215 = vector.extract_strided_slice %179 {offsets = [0, 0, 0, 1], sizes = [2, 4, 4, 4], strides = [1, 1, 1, 1]} : vector<2x4x4x6xf32> to vector<2x4x4x4xf32>
    %216 = vector.broadcast %214 : vector<1x4x4x4xf32> to vector<2x4x4x4xf32>
    %217 = arith.mulf %216, %215 : vector<2x4x4x4xf32>
    %218 = arith.addf %211, %217 : vector<2x4x4x4xf32>
    %219 = vector.extract_strided_slice %81 {offsets = [5, 0, 0, 0], sizes = [1, 4, 4, 4], strides = [1, 1, 1, 1]} : vector<12x4x4x4xf32> to vector<1x4x4x4xf32>
    %220 = vector.shape_cast %219 : vector<1x4x4x4xf32> to vector<4x4x4xf32>
    %221 = vector.shape_cast %220 : vector<4x4x4xf32> to vector<1x4x4x4xf32>
    %222 = vector.extract_strided_slice %179 {offsets = [0, 0, 0, 2], sizes = [2, 4, 4, 4], strides = [1, 1, 1, 1]} : vector<2x4x4x6xf32> to vector<2x4x4x4xf32>
    %223 = vector.broadcast %221 : vector<1x4x4x4xf32> to vector<2x4x4x4xf32>
    %224 = arith.mulf %223, %222 : vector<2x4x4x4xf32>
    %225 = arith.addf %218, %224 : vector<2x4x4x4xf32>
    %cst_32 = arith.constant 0.000000e+00 : f32
    %226 = vector.broadcast %cst_32 : f32 to vector<2x4x4x4xf32>
    %227 = arith.maximumf %225, %226 : vector<2x4x4x4xf32>
    %228 = vector.extract_strided_slice %83 {offsets = [1, 0, 0, 0], sizes = [1, 4, 4, 4], strides = [1, 1, 1, 1]} : vector<2x4x4x4xf32> to vector<1x4x4x4xf32>
    %229 = vector.shape_cast %228 : vector<1x4x4x4xf32> to vector<4x4x4xf32>
    %230 = vector.shape_cast %229 : vector<4x4x4xf32> to vector<1x4x4x4xf32>
    %231 = vector.extract_strided_slice %81 {offsets = [6, 0, 0, 0], sizes = [1, 4, 4, 4], strides = [1, 1, 1, 1]} : vector<12x4x4x4xf32> to vector<1x4x4x4xf32>
    %232 = vector.shape_cast %231 : vector<1x4x4x4xf32> to vector<4x4x4xf32>
    %233 = vector.shape_cast %232 : vector<4x4x4xf32> to vector<1x4x4x4xf32>
    %234 = vector.extract_strided_slice %131 {offsets = [0, 0, 0, 0], sizes = [2, 4, 4, 4], strides = [1, 1, 1, 1]} : vector<2x4x4x6xf32> to vector<2x4x4x4xf32>
    %235 = vector.broadcast %233 : vector<1x4x4x4xf32> to vector<2x4x4x4xf32>
    %236 = arith.mulf %235, %234 : vector<2x4x4x4xf32>
    %237 = vector.broadcast %230 : vector<1x4x4x4xf32> to vector<2x4x4x4xf32>
    %238 = arith.addf %237, %236 : vector<2x4x4x4xf32>
    %239 = vector.extract_strided_slice %81 {offsets = [7, 0, 0, 0], sizes = [1, 4, 4, 4], strides = [1, 1, 1, 1]} : vector<12x4x4x4xf32> to vector<1x4x4x4xf32>
    %240 = vector.shape_cast %239 : vector<1x4x4x4xf32> to vector<4x4x4xf32>
    %241 = vector.shape_cast %240 : vector<4x4x4xf32> to vector<1x4x4x4xf32>
    %242 = vector.extract_strided_slice %131 {offsets = [0, 0, 0, 1], sizes = [2, 4, 4, 4], strides = [1, 1, 1, 1]} : vector<2x4x4x6xf32> to vector<2x4x4x4xf32>
    %243 = vector.broadcast %241 : vector<1x4x4x4xf32> to vector<2x4x4x4xf32>
    %244 = arith.mulf %243, %242 : vector<2x4x4x4xf32>
    %245 = arith.addf %238, %244 : vector<2x4x4x4xf32>
    %246 = vector.extract_strided_slice %81 {offsets = [8, 0, 0, 0], sizes = [1, 4, 4, 4], strides = [1, 1, 1, 1]} : vector<12x4x4x4xf32> to vector<1x4x4x4xf32>
    %247 = vector.shape_cast %246 : vector<1x4x4x4xf32> to vector<4x4x4xf32>
    %248 = vector.shape_cast %247 : vector<4x4x4xf32> to vector<1x4x4x4xf32>
    %249 = vector.extract_strided_slice %131 {offsets = [0, 0, 0, 2], sizes = [2, 4, 4, 4], strides = [1, 1, 1, 1]} : vector<2x4x4x6xf32> to vector<2x4x4x4xf32>
    %250 = vector.broadcast %248 : vector<1x4x4x4xf32> to vector<2x4x4x4xf32>
    %251 = arith.mulf %250, %249 : vector<2x4x4x4xf32>
    %252 = arith.addf %245, %251 : vector<2x4x4x4xf32>
    %253 = vector.extract_strided_slice %81 {offsets = [9, 0, 0, 0], sizes = [1, 4, 4, 4], strides = [1, 1, 1, 1]} : vector<12x4x4x4xf32> to vector<1x4x4x4xf32>
    %254 = vector.shape_cast %253 : vector<1x4x4x4xf32> to vector<4x4x4xf32>
    %255 = vector.shape_cast %254 : vector<4x4x4xf32> to vector<1x4x4x4xf32>
    %256 = vector.extract_strided_slice %179 {offsets = [0, 0, 0, 0], sizes = [2, 4, 4, 4], strides = [1, 1, 1, 1]} : vector<2x4x4x6xf32> to vector<2x4x4x4xf32>
    %257 = vector.broadcast %255 : vector<1x4x4x4xf32> to vector<2x4x4x4xf32>
    %258 = arith.mulf %257, %256 : vector<2x4x4x4xf32>
    %259 = arith.addf %252, %258 : vector<2x4x4x4xf32>
    %260 = vector.extract_strided_slice %81 {offsets = [10, 0, 0, 0], sizes = [1, 4, 4, 4], strides = [1, 1, 1, 1]} : vector<12x4x4x4xf32> to vector<1x4x4x4xf32>
    %261 = vector.shape_cast %260 : vector<1x4x4x4xf32> to vector<4x4x4xf32>
    %262 = vector.shape_cast %261 : vector<4x4x4xf32> to vector<1x4x4x4xf32>
    %263 = vector.extract_strided_slice %179 {offsets = [0, 0, 0, 1], sizes = [2, 4, 4, 4], strides = [1, 1, 1, 1]} : vector<2x4x4x6xf32> to vector<2x4x4x4xf32>
    %264 = vector.broadcast %262 : vector<1x4x4x4xf32> to vector<2x4x4x4xf32>
    %265 = arith.mulf %264, %263 : vector<2x4x4x4xf32>
    %266 = arith.addf %259, %265 : vector<2x4x4x4xf32>
    %267 = vector.extract_strided_slice %81 {offsets = [11, 0, 0, 0], sizes = [1, 4, 4, 4], strides = [1, 1, 1, 1]} : vector<12x4x4x4xf32> to vector<1x4x4x4xf32>
    %268 = vector.shape_cast %267 : vector<1x4x4x4xf32> to vector<4x4x4xf32>
    %269 = vector.shape_cast %268 : vector<4x4x4xf32> to vector<1x4x4x4xf32>
    %270 = vector.extract_strided_slice %179 {offsets = [0, 0, 0, 2], sizes = [2, 4, 4, 4], strides = [1, 1, 1, 1]} : vector<2x4x4x6xf32> to vector<2x4x4x4xf32>
    %271 = vector.broadcast %269 : vector<1x4x4x4xf32> to vector<2x4x4x4xf32>
    %272 = arith.mulf %271, %270 : vector<2x4x4x4xf32>
    %273 = arith.addf %266, %272 : vector<2x4x4x4xf32>
    %cst_33 = arith.constant 0.000000e+00 : f32
    %274 = vector.broadcast %cst_33 : f32 to vector<2x4x4x4xf32>
    %275 = arith.maximumf %273, %274 : vector<2x4x4x4xf32>
    %276 = arith.addf %275, %73 : vector<2x4x4x4xf32>
    %277 = arith.addf %276, %227 : vector<2x4x4x4xf32>
    %cst_34 = arith.constant 0.707106769 : f32
    %278 = vector.broadcast %cst_34 : f32 to vector<2x4x4x4xf32>
    %279 = arith.mulf %277, %278 : vector<2x4x4x4xf32>
    %280 = arith.subf %276, %227 : vector<2x4x4x4xf32>
    %cst_35 = arith.constant 0.707106769 : f32
    %281 = vector.broadcast %cst_35 : f32 to vector<2x4x4x4xf32>
    %282 = arith.mulf %280, %281 : vector<2x4x4x4xf32>
    %c0_36 = arith.constant 0 : index
    %c0_37 = arith.constant 0 : index
    %c0_38 = arith.constant 0 : index
    %c0_39 = arith.constant 0 : index
    %283 = vector.load %arg8[%c0_36, %c0_37, %c0_38, %c0_39] : memref<2x4x4x4xf32, #tpu.memory_space<vmem>>, vector<2x4x4x4xf32>
    tpu.vector_store %arg8[%c0_36, %c0_37, %c0_38, %c0_39], %279 {strides = array<i32>} : memref<2x4x4x4xf32, #tpu.memory_space<vmem>>, vector<2x4x4x4xf32>,
    %c0_40 = arith.constant 0 : index
    %c0_41 = arith.constant 0 : index
    %c0_42 = arith.constant 0 : index
    %c0_43 = arith.constant 0 : index
    %284 = vector.load %arg9[%c0_40, %c0_41, %c0_42, %c0_43] : memref<2x4x4x4xf32, #tpu.memory_space<vmem>>, vector<2x4x4x4xf32>
    tpu.vector_store %arg9[%c0_40, %c0_41, %c0_42, %c0_43], %282 {strides = array<i32>} : memref<2x4x4x4xf32, #tpu.memory_space<vmem>>, vector<2x4x4x4xf32>,
    return
  }
}

module attributes {stable_mosaic.version = 11 : i64} {
  func.func @kernel(%arg0: memref<2x4x12xf32, #tpu.memory_space<vmem>>, %arg1: memref<2x4x12xf32, #tpu.memory_space<vmem>>, %arg2: memref<2x4x4x8xf32, #tpu.memory_space<vmem>>, %arg3: memref<12x4x4x10xf32, #tpu.memory_space<vmem>>, %arg4: memref<12x4x4x8xf32, #tpu.memory_space<vmem>>, %arg5: memref<2x4x4x10xf32, #tpu.memory_space<vmem>>, %arg6: memref<2x4x4x8xf32, #tpu.memory_space<vmem>>, %arg7: memref<2x4x4x8xf32, #tpu.memory_space<vmem>>, %arg8: memref<2x4x4x8xf32, #tpu.memory_space<vmem>>) attributes {dimension_semantics = [], scalar_prefetch = 0 : i64, scratch_operands = 0 : i64, tpu.core_type = #tpu.core_type<tc>} {
    %c0 = arith.constant 0 : index
    %c0_0 = arith.constant 0 : index
    %c0_1 = arith.constant 0 : index
    %0 = vector.load %arg0[%c0, %c0_0, %c0_1] : memref<2x4x12xf32, #tpu.memory_space<vmem>>, vector<2x4x12xf32>
    %1 = vector.shape_cast %0 : vector<2x4x12xf32> to vector<2x1x4x12xf32>
    %2 = vector.shape_cast %1 : vector<2x1x4x12xf32> to vector<2x1x4x12xf32>
    %3 = vector.broadcast %2 : vector<2x1x4x12xf32> to vector<2x4x4x12xf32>
    %c0_2 = arith.constant 0 : index
    %c0_3 = arith.constant 0 : index
    %c0_4 = arith.constant 0 : index
    %4 = vector.load %arg1[%c0_2, %c0_3, %c0_4] : memref<2x4x12xf32, #tpu.memory_space<vmem>>, vector<2x4x12xf32>
    %5 = vector.shape_cast %4 : vector<2x4x12xf32> to vector<2x1x4x12xf32>
    %6 = vector.shape_cast %5 : vector<2x1x4x12xf32> to vector<2x1x4x12xf32>
    %7 = vector.broadcast %6 : vector<2x1x4x12xf32> to vector<2x4x4x12xf32>
    %c0_5 = arith.constant 0 : index
    %c0_6 = arith.constant 0 : index
    %c0_7 = arith.constant 0 : index
    %c0_8 = arith.constant 0 : index
    %8 = vector.load %arg2[%c0_5, %c0_6, %c0_7, %c0_8] : memref<2x4x4x8xf32, #tpu.memory_space<vmem>>, vector<2x4x4x8xf32>
    %c0_9 = arith.constant 0 : index
    %c0_10 = arith.constant 0 : index
    %c0_11 = arith.constant 0 : index
    %c0_12 = arith.constant 0 : index
    %9 = vector.load %arg3[%c0_9, %c0_10, %c0_11, %c0_12] : memref<12x4x4x10xf32, #tpu.memory_space<vmem>>, vector<12x4x4x10xf32>
    %c0_13 = arith.constant 0 : index
    %c0_14 = arith.constant 0 : index
    %c0_15 = arith.constant 0 : index
    %c0_16 = arith.constant 0 : index
    %10 = vector.load %arg4[%c0_13, %c0_14, %c0_15, %c0_16] : memref<12x4x4x8xf32, #tpu.memory_space<vmem>>, vector<12x4x4x8xf32>
    %c0_17 = arith.constant 0 : index
    %c0_18 = arith.constant 0 : index
    %c0_19 = arith.constant 0 : index
    %c0_20 = arith.constant 0 : index
    %11 = vector.load %arg5[%c0_17, %c0_18, %c0_19, %c0_20] : memref<2x4x4x10xf32, #tpu.memory_space<vmem>>, vector<2x4x4x10xf32>
    %c0_21 = arith.constant 0 : index
    %c0_22 = arith.constant 0 : index
    %c0_23 = arith.constant 0 : index
    %c0_24 = arith.constant 0 : index
    %12 = vector.load %arg6[%c0_21, %c0_22, %c0_23, %c0_24] : memref<2x4x4x8xf32, #tpu.memory_space<vmem>>, vector<2x4x4x8xf32>
    %13 = vector.extract_strided_slice %11 {offsets = [0, 0, 0, 0], sizes = [1, 4, 4, 10], strides = [1, 1, 1, 1]} : vector<2x4x4x10xf32> to vector<1x4x4x10xf32>
    %14 = vector.shape_cast %13 : vector<1x4x4x10xf32> to vector<4x4x10xf32>
    %15 = vector.shape_cast %14 : vector<4x4x10xf32> to vector<1x4x4x10xf32>
    %16 = vector.extract_strided_slice %9 {offsets = [0, 0, 0, 0], sizes = [1, 4, 4, 10], strides = [1, 1, 1, 1]} : vector<12x4x4x10xf32> to vector<1x4x4x10xf32>
    %17 = vector.shape_cast %16 : vector<1x4x4x10xf32> to vector<4x4x10xf32>
    %18 = vector.shape_cast %17 : vector<4x4x10xf32> to vector<1x4x4x10xf32>
    %19 = vector.extract_strided_slice %3 {offsets = [0, 0, 0, 0], sizes = [2, 4, 4, 10], strides = [1, 1, 1, 1]} : vector<2x4x4x12xf32> to vector<2x4x4x10xf32>
    %20 = vector.broadcast %18 : vector<1x4x4x10xf32> to vector<2x4x4x10xf32>
    %21 = arith.mulf %20, %19 : vector<2x4x4x10xf32>
    %22 = vector.broadcast %15 : vector<1x4x4x10xf32> to vector<2x4x4x10xf32>
    %23 = arith.addf %22, %21 : vector<2x4x4x10xf32>
    %24 = vector.extract_strided_slice %9 {offsets = [1, 0, 0, 0], sizes = [1, 4, 4, 10], strides = [1, 1, 1, 1]} : vector<12x4x4x10xf32> to vector<1x4x4x10xf32>
    %25 = vector.shape_cast %24 : vector<1x4x4x10xf32> to vector<4x4x10xf32>
    %26 = vector.shape_cast %25 : vector<4x4x10xf32> to vector<1x4x4x10xf32>
    %27 = vector.extract_strided_slice %3 {offsets = [0, 0, 0, 1], sizes = [2, 4, 4, 10], strides = [1, 1, 1, 1]} : vector<2x4x4x12xf32> to vector<2x4x4x10xf32>
    %28 = vector.broadcast %26 : vector<1x4x4x10xf32> to vector<2x4x4x10xf32>
    %29 = arith.mulf %28, %27 : vector<2x4x4x10xf32>
    %30 = arith.addf %23, %29 : vector<2x4x4x10xf32>
    %31 = vector.extract_strided_slice %9 {offsets = [2, 0, 0, 0], sizes = [1, 4, 4, 10], strides = [1, 1, 1, 1]} : vector<12x4x4x10xf32> to vector<1x4x4x10xf32>
    %32 = vector.shape_cast %31 : vector<1x4x4x10xf32> to vector<4x4x10xf32>
    %33 = vector.shape_cast %32 : vector<4x4x10xf32> to vector<1x4x4x10xf32>
    %34 = vector.extract_strided_slice %3 {offsets = [0, 0, 0, 2], sizes = [2, 4, 4, 10], strides = [1, 1, 1, 1]} : vector<2x4x4x12xf32> to vector<2x4x4x10xf32>
    %35 = vector.broadcast %33 : vector<1x4x4x10xf32> to vector<2x4x4x10xf32>
    %36 = arith.mulf %35, %34 : vector<2x4x4x10xf32>
    %37 = arith.addf %30, %36 : vector<2x4x4x10xf32>
    %38 = vector.extract_strided_slice %9 {offsets = [3, 0, 0, 0], sizes = [1, 4, 4, 10], strides = [1, 1, 1, 1]} : vector<12x4x4x10xf32> to vector<1x4x4x10xf32>
    %39 = vector.shape_cast %38 : vector<1x4x4x10xf32> to vector<4x4x10xf32>
    %40 = vector.shape_cast %39 : vector<4x4x10xf32> to vector<1x4x4x10xf32>
    %41 = vector.extract_strided_slice %7 {offsets = [0, 0, 0, 0], sizes = [2, 4, 4, 10], strides = [1, 1, 1, 1]} : vector<2x4x4x12xf32> to vector<2x4x4x10xf32>
    %42 = vector.broadcast %40 : vector<1x4x4x10xf32> to vector<2x4x4x10xf32>
    %43 = arith.mulf %42, %41 : vector<2x4x4x10xf32>
    %44 = arith.addf %37, %43 : vector<2x4x4x10xf32>
    %45 = vector.extract_strided_slice %9 {offsets = [4, 0, 0, 0], sizes = [1, 4, 4, 10], strides = [1, 1, 1, 1]} : vector<12x4x4x10xf32> to vector<1x4x4x10xf32>
    %46 = vector.shape_cast %45 : vector<1x4x4x10xf32> to vector<4x4x10xf32>
    %47 = vector.shape_cast %46 : vector<4x4x10xf32> to vector<1x4x4x10xf32>
    %48 = vector.extract_strided_slice %7 {offsets = [0, 0, 0, 1], sizes = [2, 4, 4, 10], strides = [1, 1, 1, 1]} : vector<2x4x4x12xf32> to vector<2x4x4x10xf32>
    %49 = vector.broadcast %47 : vector<1x4x4x10xf32> to vector<2x4x4x10xf32>
    %50 = arith.mulf %49, %48 : vector<2x4x4x10xf32>
    %51 = arith.addf %44, %50 : vector<2x4x4x10xf32>
    %52 = vector.extract_strided_slice %9 {offsets = [5, 0, 0, 0], sizes = [1, 4, 4, 10], strides = [1, 1, 1, 1]} : vector<12x4x4x10xf32> to vector<1x4x4x10xf32>
    %53 = vector.shape_cast %52 : vector<1x4x4x10xf32> to vector<4x4x10xf32>
    %54 = vector.shape_cast %53 : vector<4x4x10xf32> to vector<1x4x4x10xf32>
    %55 = vector.extract_strided_slice %7 {offsets = [0, 0, 0, 2], sizes = [2, 4, 4, 10], strides = [1, 1, 1, 1]} : vector<2x4x4x12xf32> to vector<2x4x4x10xf32>
    %56 = vector.broadcast %54 : vector<1x4x4x10xf32> to vector<2x4x4x10xf32>
    %57 = arith.mulf %56, %55 : vector<2x4x4x10xf32>
    %58 = arith.addf %51, %57 : vector<2x4x4x10xf32>
    %cst = arith.constant 0.000000e+00 : f32
    %59 = vector.broadcast %cst : f32 to vector<2x4x4x10xf32>
    %60 = arith.maximumf %58, %59 : vector<2x4x4x10xf32>
    %61 = vector.extract_strided_slice %11 {offsets = [1, 0, 0, 0], sizes = [1, 4, 4, 10], strides = [1, 1, 1, 1]} : vector<2x4x4x10xf32> to vector<1x4x4x10xf32>
    %62 = vector.shape_cast %61 : vector<1x4x4x10xf32> to vector<4x4x10xf32>
    %63 = vector.shape_cast %62 : vector<4x4x10xf32> to vector<1x4x4x10xf32>
    %64 = vector.extract_strided_slice %9 {offsets = [6, 0, 0, 0], sizes = [1, 4, 4, 10], strides = [1, 1, 1, 1]} : vector<12x4x4x10xf32> to vector<1x4x4x10xf32>
    %65 = vector.shape_cast %64 : vector<1x4x4x10xf32> to vector<4x4x10xf32>
    %66 = vector.shape_cast %65 : vector<4x4x10xf32> to vector<1x4x4x10xf32>
    %67 = vector.extract_strided_slice %3 {offsets = [0, 0, 0, 0], sizes = [2, 4, 4, 10], strides = [1, 1, 1, 1]} : vector<2x4x4x12xf32> to vector<2x4x4x10xf32>
    %68 = vector.broadcast %66 : vector<1x4x4x10xf32> to vector<2x4x4x10xf32>
    %69 = arith.mulf %68, %67 : vector<2x4x4x10xf32>
    %70 = vector.broadcast %63 : vector<1x4x4x10xf32> to vector<2x4x4x10xf32>
    %71 = arith.addf %70, %69 : vector<2x4x4x10xf32>
    %72 = vector.extract_strided_slice %9 {offsets = [7, 0, 0, 0], sizes = [1, 4, 4, 10], strides = [1, 1, 1, 1]} : vector<12x4x4x10xf32> to vector<1x4x4x10xf32>
    %73 = vector.shape_cast %72 : vector<1x4x4x10xf32> to vector<4x4x10xf32>
    %74 = vector.shape_cast %73 : vector<4x4x10xf32> to vector<1x4x4x10xf32>
    %75 = vector.extract_strided_slice %3 {offsets = [0, 0, 0, 1], sizes = [2, 4, 4, 10], strides = [1, 1, 1, 1]} : vector<2x4x4x12xf32> to vector<2x4x4x10xf32>
    %76 = vector.broadcast %74 : vector<1x4x4x10xf32> to vector<2x4x4x10xf32>
    %77 = arith.mulf %76, %75 : vector<2x4x4x10xf32>
    %78 = arith.addf %71, %77 : vector<2x4x4x10xf32>
    %79 = vector.extract_strided_slice %9 {offsets = [8, 0, 0, 0], sizes = [1, 4, 4, 10], strides = [1, 1, 1, 1]} : vector<12x4x4x10xf32> to vector<1x4x4x10xf32>
    %80 = vector.shape_cast %79 : vector<1x4x4x10xf32> to vector<4x4x10xf32>
    %81 = vector.shape_cast %80 : vector<4x4x10xf32> to vector<1x4x4x10xf32>
    %82 = vector.extract_strided_slice %3 {offsets = [0, 0, 0, 2], sizes = [2, 4, 4, 10], strides = [1, 1, 1, 1]} : vector<2x4x4x12xf32> to vector<2x4x4x10xf32>
    %83 = vector.broadcast %81 : vector<1x4x4x10xf32> to vector<2x4x4x10xf32>
    %84 = arith.mulf %83, %82 : vector<2x4x4x10xf32>
    %85 = arith.addf %78, %84 : vector<2x4x4x10xf32>
    %86 = vector.extract_strided_slice %9 {offsets = [9, 0, 0, 0], sizes = [1, 4, 4, 10], strides = [1, 1, 1, 1]} : vector<12x4x4x10xf32> to vector<1x4x4x10xf32>
    %87 = vector.shape_cast %86 : vector<1x4x4x10xf32> to vector<4x4x10xf32>
    %88 = vector.shape_cast %87 : vector<4x4x10xf32> to vector<1x4x4x10xf32>
    %89 = vector.extract_strided_slice %7 {offsets = [0, 0, 0, 0], sizes = [2, 4, 4, 10], strides = [1, 1, 1, 1]} : vector<2x4x4x12xf32> to vector<2x4x4x10xf32>
    %90 = vector.broadcast %88 : vector<1x4x4x10xf32> to vector<2x4x4x10xf32>
    %91 = arith.mulf %90, %89 : vector<2x4x4x10xf32>
    %92 = arith.addf %85, %91 : vector<2x4x4x10xf32>
    %93 = vector.extract_strided_slice %9 {offsets = [10, 0, 0, 0], sizes = [1, 4, 4, 10], strides = [1, 1, 1, 1]} : vector<12x4x4x10xf32> to vector<1x4x4x10xf32>
    %94 = vector.shape_cast %93 : vector<1x4x4x10xf32> to vector<4x4x10xf32>
    %95 = vector.shape_cast %94 : vector<4x4x10xf32> to vector<1x4x4x10xf32>
    %96 = vector.extract_strided_slice %7 {offsets = [0, 0, 0, 1], sizes = [2, 4, 4, 10], strides = [1, 1, 1, 1]} : vector<2x4x4x12xf32> to vector<2x4x4x10xf32>
    %97 = vector.broadcast %95 : vector<1x4x4x10xf32> to vector<2x4x4x10xf32>
    %98 = arith.mulf %97, %96 : vector<2x4x4x10xf32>
    %99 = arith.addf %92, %98 : vector<2x4x4x10xf32>
    %100 = vector.extract_strided_slice %9 {offsets = [11, 0, 0, 0], sizes = [1, 4, 4, 10], strides = [1, 1, 1, 1]} : vector<12x4x4x10xf32> to vector<1x4x4x10xf32>
    %101 = vector.shape_cast %100 : vector<1x4x4x10xf32> to vector<4x4x10xf32>
    %102 = vector.shape_cast %101 : vector<4x4x10xf32> to vector<1x4x4x10xf32>
    %103 = vector.extract_strided_slice %7 {offsets = [0, 0, 0, 2], sizes = [2, 4, 4, 10], strides = [1, 1, 1, 1]} : vector<2x4x4x12xf32> to vector<2x4x4x10xf32>
    %104 = vector.broadcast %102 : vector<1x4x4x10xf32> to vector<2x4x4x10xf32>
    %105 = arith.mulf %104, %103 : vector<2x4x4x10xf32>
    %106 = arith.addf %99, %105 : vector<2x4x4x10xf32>
    %cst_25 = arith.constant 0.000000e+00 : f32
    %107 = vector.broadcast %cst_25 : f32 to vector<2x4x4x10xf32>
    %108 = arith.maximumf %106, %107 : vector<2x4x4x10xf32>
    %109 = vector.extract_strided_slice %12 {offsets = [0, 0, 0, 0], sizes = [1, 4, 4, 8], strides = [1, 1, 1, 1]} : vector<2x4x4x8xf32> to vector<1x4x4x8xf32>
    %110 = vector.shape_cast %109 : vector<1x4x4x8xf32> to vector<4x4x8xf32>
    %111 = vector.shape_cast %110 : vector<4x4x8xf32> to vector<1x4x4x8xf32>
    %112 = vector.extract_strided_slice %10 {offsets = [0, 0, 0, 0], sizes = [1, 4, 4, 8], strides = [1, 1, 1, 1]} : vector<12x4x4x8xf32> to vector<1x4x4x8xf32>
    %113 = vector.shape_cast %112 : vector<1x4x4x8xf32> to vector<4x4x8xf32>
    %114 = vector.shape_cast %113 : vector<4x4x8xf32> to vector<1x4x4x8xf32>
    %115 = vector.extract_strided_slice %60 {offsets = [0, 0, 0, 0], sizes = [2, 4, 4, 8], strides = [1, 1, 1, 1]} : vector<2x4x4x10xf32> to vector<2x4x4x8xf32>
    %116 = vector.broadcast %114 : vector<1x4x4x8xf32> to vector<2x4x4x8xf32>
    %117 = arith.mulf %116, %115 : vector<2x4x4x8xf32>
    %118 = vector.broadcast %111 : vector<1x4x4x8xf32> to vector<2x4x4x8xf32>
    %119 = arith.addf %118, %117 : vector<2x4x4x8xf32>
    %120 = vector.extract_strided_slice %10 {offsets = [1, 0, 0, 0], sizes = [1, 4, 4, 8], strides = [1, 1, 1, 1]} : vector<12x4x4x8xf32> to vector<1x4x4x8xf32>
    %121 = vector.shape_cast %120 : vector<1x4x4x8xf32> to vector<4x4x8xf32>
    %122 = vector.shape_cast %121 : vector<4x4x8xf32> to vector<1x4x4x8xf32>
    %123 = vector.extract_strided_slice %60 {offsets = [0, 0, 0, 1], sizes = [2, 4, 4, 8], strides = [1, 1, 1, 1]} : vector<2x4x4x10xf32> to vector<2x4x4x8xf32>
    %124 = vector.broadcast %122 : vector<1x4x4x8xf32> to vector<2x4x4x8xf32>
    %125 = arith.mulf %124, %123 : vector<2x4x4x8xf32>
    %126 = arith.addf %119, %125 : vector<2x4x4x8xf32>
    %127 = vector.extract_strided_slice %10 {offsets = [2, 0, 0, 0], sizes = [1, 4, 4, 8], strides = [1, 1, 1, 1]} : vector<12x4x4x8xf32> to vector<1x4x4x8xf32>
    %128 = vector.shape_cast %127 : vector<1x4x4x8xf32> to vector<4x4x8xf32>
    %129 = vector.shape_cast %128 : vector<4x4x8xf32> to vector<1x4x4x8xf32>
    %130 = vector.extract_strided_slice %60 {offsets = [0, 0, 0, 2], sizes = [2, 4, 4, 8], strides = [1, 1, 1, 1]} : vector<2x4x4x10xf32> to vector<2x4x4x8xf32>
    %131 = vector.broadcast %129 : vector<1x4x4x8xf32> to vector<2x4x4x8xf32>
    %132 = arith.mulf %131, %130 : vector<2x4x4x8xf32>
    %133 = arith.addf %126, %132 : vector<2x4x4x8xf32>
    %134 = vector.extract_strided_slice %10 {offsets = [3, 0, 0, 0], sizes = [1, 4, 4, 8], strides = [1, 1, 1, 1]} : vector<12x4x4x8xf32> to vector<1x4x4x8xf32>
    %135 = vector.shape_cast %134 : vector<1x4x4x8xf32> to vector<4x4x8xf32>
    %136 = vector.shape_cast %135 : vector<4x4x8xf32> to vector<1x4x4x8xf32>
    %137 = vector.extract_strided_slice %108 {offsets = [0, 0, 0, 0], sizes = [2, 4, 4, 8], strides = [1, 1, 1, 1]} : vector<2x4x4x10xf32> to vector<2x4x4x8xf32>
    %138 = vector.broadcast %136 : vector<1x4x4x8xf32> to vector<2x4x4x8xf32>
    %139 = arith.mulf %138, %137 : vector<2x4x4x8xf32>
    %140 = arith.addf %133, %139 : vector<2x4x4x8xf32>
    %141 = vector.extract_strided_slice %10 {offsets = [4, 0, 0, 0], sizes = [1, 4, 4, 8], strides = [1, 1, 1, 1]} : vector<12x4x4x8xf32> to vector<1x4x4x8xf32>
    %142 = vector.shape_cast %141 : vector<1x4x4x8xf32> to vector<4x4x8xf32>
    %143 = vector.shape_cast %142 : vector<4x4x8xf32> to vector<1x4x4x8xf32>
    %144 = vector.extract_strided_slice %108 {offsets = [0, 0, 0, 1], sizes = [2, 4, 4, 8], strides = [1, 1, 1, 1]} : vector<2x4x4x10xf32> to vector<2x4x4x8xf32>
    %145 = vector.broadcast %143 : vector<1x4x4x8xf32> to vector<2x4x4x8xf32>
    %146 = arith.mulf %145, %144 : vector<2x4x4x8xf32>
    %147 = arith.addf %140, %146 : vector<2x4x4x8xf32>
    %148 = vector.extract_strided_slice %10 {offsets = [5, 0, 0, 0], sizes = [1, 4, 4, 8], strides = [1, 1, 1, 1]} : vector<12x4x4x8xf32> to vector<1x4x4x8xf32>
    %149 = vector.shape_cast %148 : vector<1x4x4x8xf32> to vector<4x4x8xf32>
    %150 = vector.shape_cast %149 : vector<4x4x8xf32> to vector<1x4x4x8xf32>
    %151 = vector.extract_strided_slice %108 {offsets = [0, 0, 0, 2], sizes = [2, 4, 4, 8], strides = [1, 1, 1, 1]} : vector<2x4x4x10xf32> to vector<2x4x4x8xf32>
    %152 = vector.broadcast %150 : vector<1x4x4x8xf32> to vector<2x4x4x8xf32>
    %153 = arith.mulf %152, %151 : vector<2x4x4x8xf32>
    %154 = arith.addf %147, %153 : vector<2x4x4x8xf32>
    %cst_26 = arith.constant 0.000000e+00 : f32
    %155 = vector.broadcast %cst_26 : f32 to vector<2x4x4x8xf32>
    %156 = arith.maximumf %154, %155 : vector<2x4x4x8xf32>
    %157 = vector.extract_strided_slice %12 {offsets = [1, 0, 0, 0], sizes = [1, 4, 4, 8], strides = [1, 1, 1, 1]} : vector<2x4x4x8xf32> to vector<1x4x4x8xf32>
    %158 = vector.shape_cast %157 : vector<1x4x4x8xf32> to vector<4x4x8xf32>
    %159 = vector.shape_cast %158 : vector<4x4x8xf32> to vector<1x4x4x8xf32>
    %160 = vector.extract_strided_slice %10 {offsets = [6, 0, 0, 0], sizes = [1, 4, 4, 8], strides = [1, 1, 1, 1]} : vector<12x4x4x8xf32> to vector<1x4x4x8xf32>
    %161 = vector.shape_cast %160 : vector<1x4x4x8xf32> to vector<4x4x8xf32>
    %162 = vector.shape_cast %161 : vector<4x4x8xf32> to vector<1x4x4x8xf32>
    %163 = vector.extract_strided_slice %60 {offsets = [0, 0, 0, 0], sizes = [2, 4, 4, 8], strides = [1, 1, 1, 1]} : vector<2x4x4x10xf32> to vector<2x4x4x8xf32>
    %164 = vector.broadcast %162 : vector<1x4x4x8xf32> to vector<2x4x4x8xf32>
    %165 = arith.mulf %164, %163 : vector<2x4x4x8xf32>
    %166 = vector.broadcast %159 : vector<1x4x4x8xf32> to vector<2x4x4x8xf32>
    %167 = arith.addf %166, %165 : vector<2x4x4x8xf32>
    %168 = vector.extract_strided_slice %10 {offsets = [7, 0, 0, 0], sizes = [1, 4, 4, 8], strides = [1, 1, 1, 1]} : vector<12x4x4x8xf32> to vector<1x4x4x8xf32>
    %169 = vector.shape_cast %168 : vector<1x4x4x8xf32> to vector<4x4x8xf32>
    %170 = vector.shape_cast %169 : vector<4x4x8xf32> to vector<1x4x4x8xf32>
    %171 = vector.extract_strided_slice %60 {offsets = [0, 0, 0, 1], sizes = [2, 4, 4, 8], strides = [1, 1, 1, 1]} : vector<2x4x4x10xf32> to vector<2x4x4x8xf32>
    %172 = vector.broadcast %170 : vector<1x4x4x8xf32> to vector<2x4x4x8xf32>
    %173 = arith.mulf %172, %171 : vector<2x4x4x8xf32>
    %174 = arith.addf %167, %173 : vector<2x4x4x8xf32>
    %175 = vector.extract_strided_slice %10 {offsets = [8, 0, 0, 0], sizes = [1, 4, 4, 8], strides = [1, 1, 1, 1]} : vector<12x4x4x8xf32> to vector<1x4x4x8xf32>
    %176 = vector.shape_cast %175 : vector<1x4x4x8xf32> to vector<4x4x8xf32>
    %177 = vector.shape_cast %176 : vector<4x4x8xf32> to vector<1x4x4x8xf32>
    %178 = vector.extract_strided_slice %60 {offsets = [0, 0, 0, 2], sizes = [2, 4, 4, 8], strides = [1, 1, 1, 1]} : vector<2x4x4x10xf32> to vector<2x4x4x8xf32>
    %179 = vector.broadcast %177 : vector<1x4x4x8xf32> to vector<2x4x4x8xf32>
    %180 = arith.mulf %179, %178 : vector<2x4x4x8xf32>
    %181 = arith.addf %174, %180 : vector<2x4x4x8xf32>
    %182 = vector.extract_strided_slice %10 {offsets = [9, 0, 0, 0], sizes = [1, 4, 4, 8], strides = [1, 1, 1, 1]} : vector<12x4x4x8xf32> to vector<1x4x4x8xf32>
    %183 = vector.shape_cast %182 : vector<1x4x4x8xf32> to vector<4x4x8xf32>
    %184 = vector.shape_cast %183 : vector<4x4x8xf32> to vector<1x4x4x8xf32>
    %185 = vector.extract_strided_slice %108 {offsets = [0, 0, 0, 0], sizes = [2, 4, 4, 8], strides = [1, 1, 1, 1]} : vector<2x4x4x10xf32> to vector<2x4x4x8xf32>
    %186 = vector.broadcast %184 : vector<1x4x4x8xf32> to vector<2x4x4x8xf32>
    %187 = arith.mulf %186, %185 : vector<2x4x4x8xf32>
    %188 = arith.addf %181, %187 : vector<2x4x4x8xf32>
    %189 = vector.extract_strided_slice %10 {offsets = [10, 0, 0, 0], sizes = [1, 4, 4, 8], strides = [1, 1, 1, 1]} : vector<12x4x4x8xf32> to vector<1x4x4x8xf32>
    %190 = vector.shape_cast %189 : vector<1x4x4x8xf32> to vector<4x4x8xf32>
    %191 = vector.shape_cast %190 : vector<4x4x8xf32> to vector<1x4x4x8xf32>
    %192 = vector.extract_strided_slice %108 {offsets = [0, 0, 0, 1], sizes = [2, 4, 4, 8], strides = [1, 1, 1, 1]} : vector<2x4x4x10xf32> to vector<2x4x4x8xf32>
    %193 = vector.broadcast %191 : vector<1x4x4x8xf32> to vector<2x4x4x8xf32>
    %194 = arith.mulf %193, %192 : vector<2x4x4x8xf32>
    %195 = arith.addf %188, %194 : vector<2x4x4x8xf32>
    %196 = vector.extract_strided_slice %10 {offsets = [11, 0, 0, 0], sizes = [1, 4, 4, 8], strides = [1, 1, 1, 1]} : vector<12x4x4x8xf32> to vector<1x4x4x8xf32>
    %197 = vector.shape_cast %196 : vector<1x4x4x8xf32> to vector<4x4x8xf32>
    %198 = vector.shape_cast %197 : vector<4x4x8xf32> to vector<1x4x4x8xf32>
    %199 = vector.extract_strided_slice %108 {offsets = [0, 0, 0, 2], sizes = [2, 4, 4, 8], strides = [1, 1, 1, 1]} : vector<2x4x4x10xf32> to vector<2x4x4x8xf32>
    %200 = vector.broadcast %198 : vector<1x4x4x8xf32> to vector<2x4x4x8xf32>
    %201 = arith.mulf %200, %199 : vector<2x4x4x8xf32>
    %202 = arith.addf %195, %201 : vector<2x4x4x8xf32>
    %cst_27 = arith.constant 0.000000e+00 : f32
    %203 = vector.broadcast %cst_27 : f32 to vector<2x4x4x8xf32>
    %204 = arith.maximumf %202, %203 : vector<2x4x4x8xf32>
    %205 = arith.addf %204, %8 : vector<2x4x4x8xf32>
    %206 = arith.addf %205, %156 : vector<2x4x4x8xf32>
    %cst_28 = arith.constant 0.707106769 : f32
    %207 = vector.broadcast %cst_28 : f32 to vector<2x4x4x8xf32>
    %208 = arith.mulf %206, %207 : vector<2x4x4x8xf32>
    %209 = arith.subf %205, %156 : vector<2x4x4x8xf32>
    %cst_29 = arith.constant 0.707106769 : f32
    %210 = vector.broadcast %cst_29 : f32 to vector<2x4x4x8xf32>
    %211 = arith.mulf %209, %210 : vector<2x4x4x8xf32>
    %c0_30 = arith.constant 0 : index
    %c0_31 = arith.constant 0 : index
    %c0_32 = arith.constant 0 : index
    %c0_33 = arith.constant 0 : index
    %212 = vector.load %arg7[%c0_30, %c0_31, %c0_32, %c0_33] : memref<2x4x4x8xf32, #tpu.memory_space<vmem>>, vector<2x4x4x8xf32>
    tpu.vector_store %arg7[%c0_30, %c0_31, %c0_32, %c0_33], %208 {strides = array<i32>} : memref<2x4x4x8xf32, #tpu.memory_space<vmem>>, vector<2x4x4x8xf32>,
    %c0_34 = arith.constant 0 : index
    %c0_35 = arith.constant 0 : index
    %c0_36 = arith.constant 0 : index
    %c0_37 = arith.constant 0 : index
    %213 = vector.load %arg8[%c0_34, %c0_35, %c0_36, %c0_37] : memref<2x4x4x8xf32, #tpu.memory_space<vmem>>, vector<2x4x4x8xf32>
    tpu.vector_store %arg8[%c0_34, %c0_35, %c0_36, %c0_37], %211 {strides = array<i32>} : memref<2x4x4x8xf32, #tpu.memory_space<vmem>>, vector<2x4x4x8xf32>,
    return
  }
}

module attributes {stable_mosaic.version = 11 : i64} {
  func.func @_linear_kernel(%arg0: memref<32x4xf32, #tpu.memory_space<vmem>>, %arg1: memref<4x4xf32, #tpu.memory_space<vmem>>, %arg2: memref<32x4xf32, #tpu.memory_space<vmem>>) attributes {dimension_semantics = [], scalar_prefetch = 0 : i64, scratch_operands = 0 : i64, tpu.core_type = #tpu.core_type<tc>} {
    %c0 = arith.constant 0 : index
    %c0_0 = arith.constant 0 : index
    %0 = vector.load %arg0[%c0, %c0_0] : memref<32x4xf32, #tpu.memory_space<vmem>>, vector<32x4xf32>
    %c0_1 = arith.constant 0 : index
    %c0_2 = arith.constant 0 : index
    %1 = vector.load %arg1[%c0_1, %c0_2] : memref<4x4xf32, #tpu.memory_space<vmem>>, vector<4x4xf32>
    %cst = arith.constant dense<0.000000e+00> : vector<32x4xf32>
    %2 = tpu.matmul %0, %1, %cst {dimension_numbers = #tpu.dot_dimension_numbers<[1], [0], [0], [1], [0, 0, 1, 1], [], []>} : vector<32x4xf32>, vector<4x4xf32>, vector<32x4xf32> -> vector<32x4xf32>
    %c0_3 = arith.constant 0 : index
    %c0_4 = arith.constant 0 : index
    %3 = vector.load %arg2[%c0_3, %c0_4] : memref<32x4xf32, #tpu.memory_space<vmem>>, vector<32x4xf32>
    tpu.vector_store %arg2[%c0_3, %c0_4], %2 {strides = array<i32>} : memref<32x4xf32, #tpu.memory_space<vmem>>, vector<32x4xf32>,
    return
  }
}

</mosaic_0001>

<bundles_post_ra>
// kernel: _lambda_.4
= control target key start
LH: loop header
LB: loop body
LE: loop exit
PB: predicated region body
PF: predicated region fallthrough
CT: control target
= control target key end

     0   :  { %vm29_vm0 = vcmask 1043456   ;;  %vm16_vm1 = vcmask 31744   ;;  %s200_s1 = inlined_call_operand.vmem [shape: f32[4,4], index: 1, kind: input, shape index: {}]   ;;  %s201_s0 = inlined_call_operand.vmem [shape: f32[32,4], index: 0, kind: input, shape index: {}]   ;;  %s202_s2 = inlined_call_operand.vmem [shape: f32[32,4], index: 2, kind: output, shape index: {}]  }
   0x1   :  { %v15_v0 = vld [vmem:[%s200_s1] sm:$0xf]  ;;  %v13_v2 = vld [vmem:[%s201_s0 + $0x10] sm:$0xff]  ;;  %v12_v3 = vld [vmem:[%s201_s0 + $0x8] sm:$0xff] }
   0x2   :  { %v11_v1 = vld [vmem:[%s201_s0] sm:$0xff]  ;;  %140 = vmatprep.subr.msk.mxu0 %vm29_vm0, %v15_v0  ;;  %148 = vmatprep.subr.msk.mxu1 %vm29_vm0, %v15_v0  ;;  %v14_v4 = vld [vmem:[%s201_s0 + $0x18] sm:$0xff] }
   0x3   :  { %141 = vmatpush3.msk.msra.mxu0 %vm29_vm0, %v15_v0  ;;  %149 = vmatpush3.msk.msra.mxu1 %vm29_vm0, %v15_v0 }
   0x4   :  { %142 = vmatprep.mubr.msk.f32.mxu0 %vm16_vm1, %v11_v1  ;;  %145 = vmatprep.mubr.msk.f32.mxu1 %vm16_vm1, %v13_v2 }
   0x5   :  { %143 = vmatmul.mubr.msk.f32.vlgmr.msra.gmra.mrb[0].mxu0 %vm16_vm1, %v12_v3  ;;  %146 = vmatmul.mubr.msk.f32.vlgmr.msra.gmra.mrb[0].mxu1 %vm16_vm1, %v14_v4 }
  0xd8   :  { %v144_v5 = vpop.f32.mrb[0].mxu0  ;;  %v147_v6 = vpop.f32.mrb[0].mxu1 }
  0xd9   :  { %v119_v7 = vmax.f32 %v144_v5, 0.0  ;;  %v121_v8 = vmax.f32 %v147_v6, 0.0  ;;  %v99_v9 = vpop.f32.mrb[1].mxu0  ;;  %v109_v10 = vpop.f32.mrb[1].mxu1 }
  0xda   :  { %v118_v11 = vmax.f32 %v99_v9, 0.0  ;;  %v120_v12 = vmax.f32 %v109_v10, 0.0 }
  0xdb   :  { %123 = vst.msk [vmem:[%s202_s2 + $0x8] sm:$0xff] %vm16_vm1, %v119_v7  ;;  %125 = vst.msk [vmem:[%s202_s2 + $0x18] sm:$0xff] %vm16_vm1, %v121_v8 }
  0xdc   :  { %122 = vst.msk [vmem:[%s202_s2] sm:$0xff] %vm16_vm1, %v118_v11  ;;  %124 = vst.msk [vmem:[%s202_s2 + $0x10] sm:$0xff] %vm16_vm1, %v120_v12 }

// kernel: _lambda_.5
= control target key start
LH: loop header
LB: loop body
LE: loop exit
PB: predicated region body
PF: predicated region fallthrough
CT: control target
= control target key end

     0   :  { %v2415_v0 = vmov 3   ;;  %v2417_v1 = vmov 2   ;;  %v1120_v4 = vmov 4   ;;  %v1121_v5 = vmov 5   ;;  %s1122_s16 = smov 127   ;;  %s1123_s17 = smov 126   ;;  %s2405_s1 = inlined_call_operand.vmem [shape: f32[2,4,8], index: 1, kind: input, shape index: {}]   ;;  %s2406_s0 = inlined_call_operand.vmem [shape: f32[2,4,8], index: 0, kind: input, shape index: {}]   ;;  %s2407_s4 = inlined_call_operand.vmem [shape: f32[12,4,4,6], index: 4, kind: input, shape index: {}]   ;;  %s2408_s6 = inlined_call_operand.vmem [shape: f32[2,4,4,6], index: 6, kind: input, shape index: {}]   ;;  %s2409_s2 = inlined_call_operand.vmem [shape: f32[4,4,4,4], index: 2, kind: input, shape index: {}]   ;;  %s2410_s5 = inlined_call_operand.vmem [shape: f32[12,4,4,4], index: 5, kind: input, shape index: {}]   ;;  %s2411_s7 = inlined_call_operand.vmem [shape: f32[2,4,4,4], index: 7, kind: input, shape index: {}]   ;;  %s2412_s3 = inlined_call_operand.vmem [shape: f32[4,4,4,4], index: 3, kind: input, shape index: {}]   ;;  %s2413_s8 = inlined_call_operand.vmem [shape: f32[2,4,4,4], index: 8, kind: output, shape index: {0}]   ;;  %s2414_s9 = inlined_call_operand.vmem [shape: f32[2,4,4,4], index: 9, kind: output, shape index: {1}]  }
   0x1   :  { %1105 = vset.pattern.permute.xlu1 %v2415_v0  ;;  %1104 = vset.pattern.permute.xlu0 %v2417_v1  ;;  %v1181_v2 = vld [vmem:[%s2405_s1] sm:$0xf]  ;;  %v1188_v3 = vld [vmem:[%s2405_s1 + $0x4] sm:$0xf]  ;;  %v391_v8 = vld [vmem:[%s2407_s4 + $0x68] sm:$0xf] }
   0x2   :  { %70 = vperm.xlu1 %1105, %v1181_v2   ;;  %53 = vperm.xlu0 %1104, %v1181_v2   ;;  %v1199_v6 = vld [vmem:[%s2406_s0] sm:$0xf]  ;;  %v1204_v7 = vld [vmem:[%s2406_s0 + $0x4] sm:$0xf]  ;;  %v392_v10 = vld [vmem:[%s2407_s4 + $0x6c] sm:$0xf] }
   0x3   :  { %v609_v9 = vmul.f32 %v391_v8, %v1199_v6  ;;  %v467_v11 = vld [vmem:[%s2408_s6 + $0x18] sm:$0xf]  ;;  %v610_v12 = vmul.f32 %v392_v10, %v1199_v6  ;;  %v468_v14 = vld [vmem:[%s2408_s6 + $0x1c] sm:$0xf]  ;;  %v613_v18 = vmul.f32 %v391_v8, %v1204_v7  ;;  %v1258_v22 = vld [vmem:[%s2407_s4 + $0x64] sm:$0xf]  ;;  %v614_v25 = vmul.f32 %v392_v10, %v1204_v7 }
   0x4   :  { %v403_v16 = vld [vmem:[%s2407_s4 + $0x98] sm:$0xf]  ;;  %v404_v21 = vld [vmem:[%s2407_s4 + $0x9c] sm:$0xf]  ;;  %v612_v24 = vmul.f32 %v1258_v22, %v1204_v7  ;;  %v1269_v26 = vld [vmem:[%s2408_s6 + $0x14] sm:$0xf] }
   0x5   :  { %v1233_v13 = vadd.f32 %v609_v9, %v467_v11  ;;  %v1238_v15 = vadd.f32 %v610_v12, %v468_v14  ;;  %v1244_v17 = vmul.f32 %v403_v16, %v1181_v2  ;;  %v1247_v19 = vadd.f32 %v613_v18, %v467_v11  ;;  %v1279_v29 = vld [vmem:[%s2407_s4 + $0x94] sm:$0xf]  ;;  %v1295_v35 = vld [vmem:[%s2409_s2 + $0x18] sm:$0xf]  ;;  %v1304_v38 = vld [vmem:[%s2409_s2 + $0x10] sm:$0xf] }
   0x6   :  { %74 = vperm.xlu1 %1105, %v1188_v3   ;;  %58 = vperm.xlu0 %1104, %v1188_v3   ;;  %v1250_v20 = vmul.f32 %v403_v16, %v1188_v3  ;;  %v1261_v23 = vmul.f32 %v404_v21, %v1181_v2  ;;  %v1272_v27 = vadd.f32 %v612_v24, %v1269_v26  ;;  %v1124_v32 = vmov 0   ;;  %v1309_v39 = vld [vmem:[%s2409_s2] sm:$0xf]  ;;  %v1314_v40 = vld [vmem:[%s2409_s2 + $0x8] sm:$0xf] }
   0x7   :  { %2429 = vst [vmem:[#allocation2_spill] sm:$0xff] %v1238_v15  ;;  %v1274_v28 = vadd.f32 %v614_v25, %v468_v14  ;;  %v1283_v30 = vmul.f32 %v1279_v29, %v1188_v3  ;;  %v1286_v31 = vmul.f32 %v404_v21, %v1188_v3  ;;  %v366_v45 = vld [vmem:[%s2407_s4 + $0x4] sm:$0xf]  ;;  %v1330_v46 = vld [vmem:[%s2409_s2 + $0x20] sm:$0xf]  ;;  %vm1071_vm0 = vcmask 27648  }
   0x8   :  { %2430 = vst [vmem:[#allocation3_spill] sm:$0xff] %v1261_v23  ;;  %2431 = vst [vmem:[#allocation4_spill] sm:$0xff] %v1272_v27  ;;  %v1335_v47 = vld [vmem:[%s2409_s2 + $0x28] sm:$0xf]  ;;  %v365_v48 = vld [vmem:[%s2407_s4] sm:$0xf]  ;;  %v478_v54 = vmul.f32 %v366_v45, %v1199_v6  ;;  %v482_v10 = vmul.f32 %v366_v45, %v1204_v7 }
   0x9   :  { %2432 = vst [vmem:[#allocation5_spill] sm:$0xff] %v1274_v28  ;;  %2433 = vst [vmem:[#allocation6_spill] sm:$0xff] %v1283_v30  ;;  %v368_v50 = vld [vmem:[%s2407_s4 + $0xc] sm:$0xf]  ;;  %v367_v51 = vld [vmem:[%s2407_s4 + $0x8] sm:$0xf]  ;;  %v477_v58 = vmul.f32 %v365_v48, %v1199_v6  ;;  %v481_v18 = vmul.f32 %v365_v48, %v1204_v7 }
   0xa   :  { %1107 = vset.pattern.permute.xlu1 %v1120_v4  ;;  %1106 = vset.pattern.permute.xlu0 %v1120_v4  ;;  %2434 = vst [vmem:[#allocation7_spill] sm:$0xff] %v1286_v31  ;;  %2435 = vst [vmem:[#allocation8_spill] sm:$0xff] %v1330_v46  ;;  %v462_v59 = vld [vmem:[%s2408_s6 + $0x4] sm:$0xf]  ;;  %v461_v60 = vld [vmem:[%s2408_s6] sm:$0xf]  ;;  %v480_v62 = vmul.f32 %v368_v50, %v1199_v6  ;;  %v479_v63 = vmul.f32 %v367_v51, %v1199_v6 }
   0xb   :  { %98 = vperm.xlu1 %1107, %v1188_v3   ;;  %94 = vperm.xlu0 %1106, %v1181_v2   ;;  %2436 = vst [vmem:[#allocation9_spill] sm:$0xff] %v1335_v47  ;;  %v464_v61 = vld [vmem:[%s2408_s6 + $0xc] sm:$0xf]  ;;  %v378_v8 = vld [vmem:[%s2407_s4 + $0x34] sm:$0xf]  ;;  %v484_v21 = vmul.f32 %v368_v50, %v1204_v7  ;;  %v483_v24 = vmul.f32 %v367_v51, %v1204_v7 }
   0xc   :  { %v463_v9 = vld [vmem:[%s2408_s6 + $0x8] sm:$0xf]  ;;  %v1381_v11 = vld [vmem:[%s2407_s4 + $0x60] sm:$0xf]  ;;  %v377_v12 = vld [vmem:[%s2407_s4 + $0x30] sm:$0xf]  ;;  %v488_v45 = vadd.f32 %v480_v62, %v464_v61  ;;  %v1428_v62 = vmul.f32 %v378_v8, %v1188_v3 }
   0xd   :  { %v380_v14 = vld [vmem:[%s2407_s4 + $0x3c] sm:$0xf]  ;;  %v379_v16 = vld [vmem:[%s2407_s4 + $0x38] sm:$0xf]  ;;  %v1407_v48 = vmul.f32 %v1381_v11, %v1199_v6  ;;  %v369_v50 = vld [vmem:[%s2407_s4 + $0x10] sm:$0xf]  ;;  %v1413_v51 = vmul.f32 %v377_v12, %v1181_v2  ;;  %v492_v0 = vadd.f32 %v484_v21, %v464_v61  ;;  %v491_v1 = vadd.f32 %v483_v24, %v463_v9 }
   0xe   :  { %v1435_v31 = vmul.f32 %v377_v12, %v1188_v3  ;;  %v1441_v28 = vmul.f32 %v379_v16, %v1188_v3  ;;  %v373_v12 = vld [vmem:[%s2407_s4 + $0x20] sm:$0xf] }
   0xf   :  { %1108 = vset.pattern.permute.xlu1 %v1121_v5  ;;  %1109 = vset.pattern.permute.xlu0 %v1121_v5 }
  0x10   :  { %118 = vperm.xlu1 %1108, %v1181_v2   ;;  %122 = vperm.xlu0 %1109, %v1188_v3  }
  0x14   :  { %495 = vrot.lane.b32.xlu1 %v1199_v6, %s1122_s16  ;;  %497 = vrot.lane.b32.xlu0 %v1204_v7, %s1122_s16 }
  0x15   :  { %1110 = vset.pattern.permute.xlu1 %v1124_v32  ;;  %1111 = vset.pattern.permute.xlu0 %v1124_v32 }
  0x18   :  { %517 = vrot.lane.b32.xlu1 %v1199_v6, %s1123_s17  ;;  %519 = vrot.lane.b32.xlu0 %v1204_v7, %s1123_s17 }
  0x1c   :  { %555 = vrot.lane.b32.xlu1 %v1181_v2, %s1122_s16  ;;  %557 = vrot.lane.b32.xlu0 %v1188_v3, %s1122_s16 }
  0x20   :  { %577 = vrot.lane.b32.xlu1 %v1181_v2, %s1123_s17  ;;  %579 = vrot.lane.b32.xlu0 %v1188_v3, %s1123_s17 }
  0x81   :  { %v1288_v33 = vpop.permute.xlu1 %70  ;;  %v1290_v34 = vpop.permute.xlu0 %53 }
  0x85   :  { %v1297_v36 = vpop.permute.xlu1 %74  ;;  %v1299_v37 = vpop.permute.xlu0 %58 }
  0x86   :  { %v83_v41 = vmul.f32 %v1297_v36, %v1295_v35  ;;  %v81_v42 = vmul.f32 %v1297_v36, %v1304_v38  ;;  %v65_v43 = vmul.f32 %v1299_v37, %v1309_v39  ;;  %v67_v44 = vmul.f32 %v1299_v37, %v1314_v40 }
  0x88   :  { %v91_v49 = vadd.f32 %v83_v41, %v67_v44  ;;  %v89_v55 = vadd.f32 %v81_v42, %v65_v43  ;;  %v486_v41 = vadd.f32 %v478_v54, %v462_v59  ;;  %v485_v42 = vadd.f32 %v477_v58, %v461_v60  ;;  %v370_v43 = vld [vmem:[%s2407_s4 + $0x14] sm:$0xf]  ;;  %v372_v54 = vld [vmem:[%s2407_s4 + $0x1c] sm:$0xf] }
  0x89   :  { %v1403_v44 = vmul.f32 %v378_v8, %v1181_v2  ;;  %v490_v58 = vadd.f32 %v482_v10, %v462_v59  ;;  %v1445_v59 = vmul.f32 %v1258_v22, %v1199_v6  ;;  %v376_v6 = vld [vmem:[%s2407_s4 + $0x2c] sm:$0xf]  ;;  %v375_v22 = vld [vmem:[%s2407_s4 + $0x28] sm:$0xf] }
  0x8a   :  { %v1346_v52 = vpop.permute.xlu1 %98  ;;  %v1348_v53 = vpop.permute.xlu0 %94 }
  0x8b   :  { %2437 = vst [vmem:[#allocation10_spill] sm:$0xff] %v1346_v52  ;;  %2438 = vst [vmem:[#allocation11_spill] sm:$0xff] %v1348_v53  ;;  %v105_v56 = vmul.f32 %v1346_v52, %v1330_v46  ;;  %v107_v57 = vmul.f32 %v1346_v52, %v1335_v47 }
  0x8d   :  { %v1367_v4 = vadd.f32 %v105_v56, %v89_v55  ;;  %v1369_v5 = vadd.f32 %v107_v57, %v91_v49  ;;  %v487_v49 = vadd.f32 %v479_v63, %v463_v9  ;;  %v1419_v55 = vmul.f32 %v380_v14, %v1181_v2  ;;  %v371_v56 = vld [vmem:[%s2407_s4 + $0x18] sm:$0xf] }
  0x8e   :  { %v1425_v57 = vmul.f32 %v379_v16, %v1181_v2  ;;  %v489_v63 = vadd.f32 %v481_v18, %v461_v60  ;;  %v374_v60 = vld [vmem:[%s2407_s4 + $0x24] sm:$0xf] }
  0x8f   :  { %2439 = vst [vmem:[#allocation12_spill] sm:$0xff] %v1367_v4  ;;  %2440 = vst [vmem:[#allocation13_spill] sm:$0xff] %v1369_v5  ;;  %v1395_v25 = vpop.permute.xlu1 %118  ;;  %v1397_v32 = vpop.permute.xlu0 %122 }
  0x90   :  { %2441 = vst [vmem:[#allocation14_spill] sm:$0xff] %v1395_v25  ;;  %2442 = vst [vmem:[#allocation15_spill] sm:$0xff] %v1397_v32  ;;  %v1438_v32 = vmul.f32 %v380_v14, %v1188_v3 }
  0x93   :  { %v1430_v5 = vpop.permute.xlu1 %495  ;;  %v1432_v4 = vpop.permute.xlu0 %497 }
  0x94   :  { %v502_v61 = vmul.f32 %v1430_v5, %v370_v43  ;;  %v501_v8 = vmul.f32 %v1430_v5, %v369_v50  ;;  %v504_v9 = vmul.f32 %v1430_v5, %v372_v54  ;;  %v503_v10 = vmul.f32 %v1430_v5, %v371_v56 }
  0x95   :  { %v506_v14 = vmul.f32 %v1432_v4, %v370_v43  ;;  %v505_v16 = vmul.f32 %v1432_v4, %v369_v50  ;;  %v508_v18 = vmul.f32 %v1432_v4, %v372_v54  ;;  %v507_v21 = vmul.f32 %v1432_v4, %v371_v56 }
  0x96   :  { %v510_v24 = vadd.f32 %v502_v61, %v486_v41  ;;  %v509_v30 = vadd.f32 %v501_v8, %v485_v42  ;;  %v512_v25 = vadd.f32 %v504_v9, %v488_v45  ;;  %v511_v47 = vadd.f32 %v503_v10, %v487_v49  ;;  %v382_v41 = vld [vmem:[%s2407_s4 + $0x44] sm:$0xf]  ;;  %v381_v42 = vld [vmem:[%s2407_s4 + $0x40] sm:$0xf]  ;;  %v384_v61 = vld [vmem:[%s2407_s4 + $0x4c] sm:$0xf] }
  0x97   :  { %v1467_v27 = vpop.permute.xlu1 %517  ;;  %v1469_v23 = vpop.permute.xlu0 %519  ;;  %v514_v53 = vadd.f32 %v506_v14, %v490_v58  ;;  %v513_v46 = vadd.f32 %v505_v16, %v489_v63  ;;  %v516_v52 = vadd.f32 %v508_v18, %v492_v0  ;;  %v515_v15 = vadd.f32 %v507_v21, %v491_v1  ;;  %v383_v9 = vld [vmem:[%s2407_s4 + $0x48] sm:$0xf] }
  0x98   :  { %v524_v43 = vmul.f32 %v1467_v27, %v374_v60  ;;  %v523_v50 = vmul.f32 %v1467_v27, %v373_v12  ;;  %v526_v54 = vmul.f32 %v1467_v27, %v376_v6  ;;  %v525_v56 = vmul.f32 %v1467_v27, %v375_v22 }
  0x99   :  { %v528_v45 = vmul.f32 %v1469_v23, %v374_v60  ;;  %v527_v0 = vmul.f32 %v1469_v23, %v373_v12  ;;  %v530_v1 = vmul.f32 %v1469_v23, %v376_v6  ;;  %v529_v49 = vmul.f32 %v1469_v23, %v375_v22 }
  0x9a   :  { %v532_v58 = vadd.f32 %v524_v43, %v510_v24  ;;  %v531_v63 = vadd.f32 %v523_v50, %v509_v30  ;;  %v534_v8 = vadd.f32 %v526_v54, %v512_v25  ;;  %v533_v10 = vadd.f32 %v525_v56, %v511_v47  ;;  %v386_v30 = vld [vmem:[%s2407_s4 + $0x54] sm:$0xf]  ;;  %v385_v24 = vld [vmem:[%s2407_s4 + $0x50] sm:$0xf] }
  0x9b   :  { %v1491_v14 = vpop.permute.xlu1 %555  ;;  %v1493_v60 = vpop.permute.xlu0 %557  ;;  %v536_v12 = vadd.f32 %v528_v45, %v514_v53  ;;  %v535_v6 = vadd.f32 %v527_v0, %v513_v46  ;;  %v538_v16 = vadd.f32 %v530_v1, %v516_v52  ;;  %v537_v22 = vadd.f32 %v529_v49, %v515_v15  ;;  %v388_v15 = vld [vmem:[%s2407_s4 + $0x5c] sm:$0xf]  ;;  %v387_v53 = vld [vmem:[%s2407_s4 + $0x58] sm:$0xf] }
  0x9c   :  { %v548_v18 = vadd.f32 %v1403_v44, %v532_v58  ;;  %v562_v25 = vmul.f32 %v1491_v14, %v382_v41  ;;  %v547_v21 = vadd.f32 %v1413_v51, %v531_v63  ;;  %v561_v47 = vmul.f32 %v1491_v14, %v381_v42 }
  0x9d   :  { %v550_v46 = vadd.f32 %v1419_v55, %v534_v8  ;;  %v564_v52 = vmul.f32 %v1491_v14, %v384_v61  ;;  %v549_v44 = vadd.f32 %v1425_v57, %v533_v10  ;;  %v563_v51 = vmul.f32 %v1491_v14, %v383_v9 }
  0x9e   :  { %v570_v43 = vadd.f32 %v562_v25, %v548_v18  ;;  %v569_v50 = vadd.f32 %v561_v47, %v547_v21  ;;  %v552_v54 = vadd.f32 %v1428_v62, %v536_v12  ;;  %v566_v56 = vmul.f32 %v1493_v60, %v382_v41 }
  0x9f   :  { %v1517_v45 = vpop.permute.xlu1 %577  ;;  %v1519_v0 = vpop.permute.xlu0 %579  ;;  %v572_v55 = vadd.f32 %v564_v52, %v550_v46  ;;  %v571_v1 = vadd.f32 %v563_v51, %v549_v44  ;;  %v551_v49 = vadd.f32 %v1435_v31, %v535_v6  ;;  %v565_v58 = vmul.f32 %v1493_v60, %v381_v42  ;;  %v465_v31 = vld [vmem:[%s2408_s6 + $0x10] sm:$0xf] }
  0xa0   :  { %v584_v57 = vmul.f32 %v1517_v45, %v386_v30  ;;  %v583_v63 = vmul.f32 %v1517_v45, %v385_v24  ;;  %v586_v8 = vmul.f32 %v1517_v45, %v388_v15  ;;  %v585_v62 = vmul.f32 %v1517_v45, %v387_v53 }
  0xa1   :  { %v574_v10 = vadd.f32 %v566_v56, %v552_v54  ;;  %v588_v41 = vmul.f32 %v1519_v0, %v386_v30  ;;  %v573_v12 = vadd.f32 %v565_v58, %v551_v49  ;;  %v587_v18 = vmul.f32 %v1519_v0, %v385_v24  ;;  %v393_v30 = vld [vmem:[%s2407_s4 + $0x70] sm:$0xf]  ;;  %v397_v24 = vld [vmem:[%s2407_s4 + $0x80] sm:$0xf] }
  0xa2   :  { %v592_v6 = vadd.f32 %v584_v57, %v570_v43  ;;  %v591_v42 = vadd.f32 %v583_v63, %v569_v50  ;;  %v594_v25 = vadd.f32 %v586_v8, %v572_v55  ;;  %v593_v21 = vadd.f32 %v585_v62, %v571_v1  ;;  %v399_v62 = vld [vmem:[%s2407_s4 + $0x88] sm:$0xf] }
  0xa3   :  { %v554_v47 = vadd.f32 %v1438_v32, %v538_v16  ;;  %v568_v46 = vmul.f32 %v1493_v60, %v384_v61  ;;  %v615_v51 = vadd.f32 %v1407_v48, %v465_v31  ;;  %v596_v43 = vadd.f32 %v588_v41, %v574_v10  ;;  %v1548_v32 = vld [vmem:[%s2407_s4 + $0x74] sm:$0xf]  ;;  %v1553_v61 = vld [vmem:[%s2407_s4 + $0x84] sm:$0xf]  ;;  %v407_v10 = vld [vmem:[%s2407_s4 + $0xa8] sm:$0xf] }
  0xa4   :  { %v1534_v52 = vmax.f32 %v592_v6, 0.0  ;;  %v1536_v44 = vmax.f32 %v591_v42, 0.0  ;;  %v595_v50 = vadd.f32 %v587_v18, %v573_v12  ;;  %v616_v16 = vadd.f32 %v1445_v59, %v1269_v26  ;;  %v401_v26 = vld [vmem:[%s2407_s4 + $0x90] sm:$0xf]  ;;  %v40_v42 = vld [vmem:[%s2409_s2 + $0x14] sm:$0xf] }
  0xa5   :  { %v611_v54 = vmul.f32 %v1381_v11, %v1204_v7  ;;  %v1563_v48 = vmax.f32 %v594_v25, 0.0  ;;  %v1565_v56 = vmax.f32 %v593_v21, 0.0  ;;  %v553_v55 = vadd.f32 %v1441_v28, %v537_v22 }
  0xa6   :  { %737 = vrot.lane.b32.xlu0 %v1534_v52, %s1122_s16  ;;  %735 = vrot.lane.b32.xlu1 %v1536_v44, %s1122_s16  ;;  %v567_v1 = vmul.f32 %v1493_v60, %v383_v9  ;;  %v576_v59 = vadd.f32 %v568_v46, %v554_v47  ;;  %v590_v7 = vmul.f32 %v1519_v0, %v388_v15  ;;  %v395_v15 = vld [vmem:[%s2407_s4 + $0x78] sm:$0xf]  ;;  %v1596_v41 = vmax.f32 %v596_v43, 0.0 }
  0xa7   :  { %v623_v11 = vmul.f32 %v1430_v5, %v393_v30  ;;  %v639_v49 = vmul.f32 %v1467_v27, %v397_v24  ;;  %v589_v57 = vmul.f32 %v1519_v0, %v387_v53  ;;  %v624_v63 = vmul.f32 %v1430_v5, %v1548_v32 }
  0xa8   :  { %v575_v58 = vadd.f32 %v567_v1, %v553_v55  ;;  %v640_v28 = vmul.f32 %v1467_v27, %v1553_v61  ;;  %v655_v22 = vmul.f32 %v401_v26, %v1181_v2  ;;  %v656_v8 = vmul.f32 %v1279_v29, %v1181_v2 }
  0xa9   :  { %v631_v9 = vadd.f32 %v623_v11, %v615_v51  ;;  %v632_v53 = vadd.f32 %v624_v63, %v616_v16  ;;  %v619_v18 = vadd.f32 %v611_v54, %v465_v31  ;;  %v659_v6 = vmul.f32 %v401_v26, %v1188_v3 }
  0xaa   :  { %741 = vrot.lane.b32.xlu0 %v1563_v48, %s1122_s16  ;;  %739 = vrot.lane.b32.xlu1 %v1565_v56, %s1122_s16  ;;  %v1602_v25 = vmax.f32 %v595_v50, 0.0  ;;  %v598_v2 = vadd.f32 %v590_v7, %v576_v59  ;;  %v597_v29 = vadd.f32 %v589_v57, %v575_v58  ;;  %v625_v46 = vmul.f32 %v1430_v5, %v395_v15 }
  0xab   :  { %v647_v12 = vadd.f32 %v639_v49, %v631_v9  ;;  %v648_v21 = vadd.f32 %v640_v28, %v632_v53  ;;  %v641_v51 = vmul.f32 %v1467_v27, %v399_v62  ;;  %v673_v43 = vmul.f32 %v1491_v14, %v407_v10  ;;  %v405_v49 = vld [vmem:[%s2407_s4 + $0xa0] sm:$0xf] }
  0xac   :  { %v77_v3 = vmul.f32 %v1288_v33, %v1304_v38  ;;  %v627_v50 = vmul.f32 %v1432_v4, %v393_v30  ;;  %v78_v16 = vmul.f32 %v1288_v33, %v40_v42  ;;  %v79_v54 = vmul.f32 %v1288_v33, %v1295_v35  ;;  %v36_v38 = vld [vmem:[%s2409_s2 + $0x4] sm:$0xf]  ;;  %v411_v30 = vld [vmem:[%s2407_s4 + $0xb8] sm:$0xf]  ;;  %v38_v35 = vld [vmem:[%s2409_s2 + $0xc] sm:$0xf] }
  0xad   :  { %v1604_v47 = vadd.f32 %v655_v22, %v647_v12  ;;  %v1615_v31 = vadd.f32 %v656_v8, %v648_v21  ;;  %v633_v55 = vadd.f32 %v625_v46, %v1233_v13  ;;  %v643_v1 = vmul.f32 %v1469_v23, %v397_v24  ;;  %v42_v13 = vld [vmem:[%s2409_s2 + $0x1c] sm:$0xf] }
  0xae   :  { %745 = vrot.lane.b32.xlu0 %v1596_v41, %s1122_s16  ;;  %743 = vrot.lane.b32.xlu1 %v1602_v25, %s1122_s16  ;;  %v1626_v26 = vmax.f32 %v598_v2, 0.0  ;;  %v1628_v59 = vmax.f32 %v597_v29, 0.0  ;;  %v635_v7 = vadd.f32 %v627_v50, %v619_v18  ;;  %v629_v11 = vmul.f32 %v1432_v4, %v395_v15  ;;  %v396_v2 = vld [vmem:[%s2407_s4 + $0x7c] sm:$0xf] }
  0xaf   :  { %v61_v24 = vmul.f32 %v1290_v34, %v1309_v39  ;;  %v649_v58 = vadd.f32 %v641_v51, %v633_v55  ;;  %v645_v57 = vmul.f32 %v1469_v23, %v399_v62  ;;  %v677_v63 = vmul.f32 %v1493_v60, %v407_v10 }
  0xb0   :  { %v651_v28 = vadd.f32 %v643_v1, %v635_v7  ;;  %v675_v9 = vmul.f32 %v1493_v60, %v405_v49  ;;  %v637_v39 = vadd.f32 %v629_v11, %v1247_v19  ;;  %v62_v22 = vmul.f32 %v1290_v34, %v36_v38  ;;  %v44_v1 = vld [vmem:[%s2409_s2 + $0x24] sm:$0xf]  ;;  %v410_v11 = vld [vmem:[%s2407_s4 + $0xb4] sm:$0xf] }
  0xb1   :  { %v63_v15 = vmul.f32 %v1290_v34, %v1314_v40  ;;  %v665_v53 = vadd.f32 %v1244_v17, %v649_v58  ;;  %v689_v8 = vmul.f32 %v1517_v45, %v411_v30  ;;  %v80_v62 = vmul.f32 %v1288_v33, %v42_v13  ;;  %v400_v17 = vld [vmem:[%s2407_s4 + $0x8c] sm:$0xf]  ;;  %v2444_v58 = vld [vmem:[#allocation10_spill] sm:$0xff] }
  0xb2   :  { %749 = vrot.lane.b32.xlu0 %v1626_v26, %s1122_s16  ;;  %747 = vrot.lane.b32.xlu1 %v1628_v59, %s1122_s16  ;;  %v64_v10 = vmul.f32 %v1290_v34, %v38_v35  ;;  %v667_v12 = vadd.f32 %v659_v6, %v651_v28  ;;  %v653_v18 = vadd.f32 %v645_v57, %v637_v39  ;;  %v1671_v33 = vld [vmem:[%s2407_s4 + $0xac] sm:$0xf] }
  0xb3   :  { %v85_v19 = vadd.f32 %v77_v3, %v61_v24  ;;  %v82_v29 = vmul.f32 %v1297_v36, %v40_v42  ;;  %v66_v21 = vmul.f32 %v1299_v37, %v36_v38  ;;  %v681_v40 = vadd.f32 %v673_v43, %v665_v53  ;;  %v406_v43 = vld [vmem:[%s2407_s4 + $0xa4] sm:$0xf]  ;;  %v2446_v28 = vld [vmem:[#allocation11_spill] sm:$0xff] }
  0xb4   :  { %v1677_v34 = vadd.f32 %v675_v9, %v667_v12  ;;  %v669_v6 = vadd.f32 %v1250_v20, %v653_v18  ;;  %v693_v42 = vmul.f32 %v1519_v0, %v411_v30  ;;  %v1681_v46 = vadd.f32 %v78_v16, %v62_v22  ;;  %v2448_v18 = vld [vmem:[#allocation4_spill] sm:$0xff] }
  0xb5   :  { %v87_v51 = vadd.f32 %v79_v54, %v63_v15  ;;  %v1686_v3 = vadd.f32 %v689_v8, %v681_v40  ;;  %v626_v50 = vmul.f32 %v1430_v5, %v396_v2  ;;  %v1689_v55 = vadd.f32 %v80_v62, %v64_v10  ;;  %v1706_v5 = vld [vmem:[%s2407_s4 + $0xb0] sm:$0xf]  ;;  %v2447_v62 = vld [vmem:[#allocation3_spill] sm:$0xff]  ;;  %v2449_v40 = vld [vmem:[#allocation9_spill] sm:$0xff] }
  0xb6   :  { %775 = vrot.lane.b32.xlu0 %v1536_v44, %s1123_s17  ;;  %777 = vrot.lane.b32.xlu1 %v1534_v52, %s1123_s17  ;;  %v685_v20 = vadd.f32 %v677_v63, %v669_v6  ;;  %v642_v38 = vmul.f32 %v1467_v27, %v400_v17  ;;  %v674_v16 = vmul.f32 %v1491_v14, %v1671_v33  ;;  %v2443_v27 = vld [vmem:[#allocation2_spill] sm:$0xff]  ;;  %v2445_v63 = vld [vmem:[#allocation8_spill] sm:$0xff] }
  0xb7   :  { %v1698_v54 = vmul.f32 %v1297_v36, %v42_v13  ;;  %v1701_v30 = vmul.f32 %v1299_v37, %v38_v35  ;;  %v90_v7 = vadd.f32 %v82_v29, %v66_v21  ;;  %v634_v24 = vadd.f32 %v626_v50, %v2443_v27  ;;  %v412_v35 = vld [vmem:[%s2407_s4 + $0xbc] sm:$0xf]  ;;  %v2450_v50 = vld [vmem:[#allocation14_spill] sm:$0xff] }
  0xb8   :  { %v671_v36 = vmul.f32 %v1491_v14, %v405_v49  ;;  %v672_v37 = vmul.f32 %v1491_v14, %v406_v43  ;;  %v1718_v13 = vadd.f32 %v693_v42, %v685_v20  ;;  %v106_v57 = vmul.f32 %v2444_v58, %v44_v1  ;;  %v1732_v14 = vld [vmem:[%s2409_s2 + $0x30] sm:$0xf]  ;;  %v1737_v49 = vld [vmem:[%s2409_s2 + $0x38] sm:$0xf] }
  0xb9   :  { %v101_v9 = vmul.f32 %v2446_v28, %v2445_v63  ;;  %v650_v39 = vadd.f32 %v642_v38, %v634_v24  ;;  %v628_v22 = vmul.f32 %v1432_v4, %v1548_v32  ;;  %v102_v15 = vmul.f32 %v2446_v28, %v44_v1  ;;  %v48_v38 = vld [vmem:[%s2409_s2 + $0x34] sm:$0xf] }
  0xba   :  { %779 = vrot.lane.b32.xlu0 %v1565_v56, %s1123_s17  ;;  %781 = vrot.lane.b32.xlu1 %v1563_v48, %s1123_s17  ;;  %v687_v53 = vmul.f32 %v1517_v45, %v1706_v5  ;;  %v688_v8 = vmul.f32 %v1517_v45, %v410_v11  ;;  %v644_v32 = vmul.f32 %v1469_v23, %v1553_v61 }
  0xbb   :  { %v666_v10 = vadd.f32 %v2447_v62, %v650_v39  ;;  %v690_v12 = vmul.f32 %v1517_v45, %v412_v35  ;;  %v636_v29 = vadd.f32 %v628_v22, %v2448_v18  ;;  %v676_v21 = vmul.f32 %v1493_v60, %v406_v43 }
  0xbc   :  { %v103_v6 = vmul.f32 %v2446_v28, %v2449_v40  ;;  %v679_v42 = vadd.f32 %v671_v36, %v1604_v47  ;;  %v680_v61 = vadd.f32 %v672_v37, %v1615_v31  ;;  %v125_v45 = vmul.f32 %v2450_v50, %v1732_v14  ;;  %v2451_v37 = vld [vmem:[#allocation6_spill] sm:$0xff] }
  0xbd   :  { %v127_v1 = vmul.f32 %v2450_v50, %v1737_v49  ;;  %v682_v43 = vadd.f32 %v674_v16, %v666_v10  ;;  %v652_v20 = vadd.f32 %v644_v32, %v636_v29  ;;  %v630_v63 = vmul.f32 %v1432_v4, %v396_v2  ;;  %v46_v16 = vld [vmem:[%s2409_s2 + $0x2c] sm:$0xf]  ;;  %v2452_v4 = vld [vmem:[#allocation5_spill] sm:$0xff] }
  0xbe   :  { %783 = vrot.lane.b32.xlu0 %v1602_v25, %s1123_s17  ;;  %785 = vrot.lane.b32.xlu1 %v1596_v41, %s1123_s17  ;;  %v695_v27 = vadd.f32 %v687_v53, %v679_v42  ;;  %v696_v24 = vadd.f32 %v688_v8, %v680_v61  ;;  %v646_v47 = vmul.f32 %v1469_v23, %v400_v17 }
  0xbf   :  { %v109_v36 = vadd.f32 %v101_v9, %v85_v19  ;;  %v1765_v31 = vadd.f32 %v690_v12, %v682_v43  ;;  %v668_v39 = vadd.f32 %v2451_v37, %v652_v20  ;;  %v692_v22 = vmul.f32 %v1519_v0, %v410_v11  ;;  %v2453_v11 = vld [vmem:[#allocation15_spill] sm:$0xff] }
  0xc0   :  { %v111_v32 = vadd.f32 %v103_v6, %v87_v51  ;;  %v638_v23 = vadd.f32 %v630_v63, %v2452_v4  ;;  %v678_v2 = vmul.f32 %v1493_v60, %v1671_v33  ;;  %v126_v19 = vmul.f32 %v2450_v50, %v48_v38  ;;  %v50_v51 = vld [vmem:[%s2409_s2 + $0x3c] sm:$0xf] }
  0xc1   :  { %v133_v17 = vadd.f32 %v125_v45, %v109_v36  ;;  %v130_v9 = vmul.f32 %v2453_v11, %v48_v38  ;;  %v684_v53 = vadd.f32 %v676_v21, %v668_v39  ;;  %v1784_v62 = vmax.f32 %v695_v27, 0.0  ;;  %v2454_v21 = vld [vmem:[#allocation7_spill] sm:$0xff]  ;;  %v2456_v36 = vld [vmem:[#allocation13_spill] sm:$0xff] }
  0xc2   :  { %787 = vrot.lane.b32.xlu0 %v1628_v59, %s1123_s17  ;;  %789 = vrot.lane.b32.xlu1 %v1626_v26, %s1123_s17  ;;  %v135_v8 = vadd.f32 %v127_v1, %v111_v32  ;;  %v1786_v10 = vmax.f32 %v696_v24, 0.0  ;;  %v654_v12 = vadd.f32 %v646_v47, %v638_v23  ;;  %v108_v18 = vmul.f32 %v2444_v58, %v46_v16  ;;  %v2455_v24 = vld [vmem:[#allocation12_spill] sm:$0xff] }
  0xc3   :  { %v104_v60 = vmul.f32 %v2446_v28, %v46_v16  ;;  %v110_v33 = vadd.f32 %v102_v15, %v1681_v46  ;;  %v1791_v29 = vadd.f32 %v692_v22, %v684_v53  ;;  %v114_v40 = vadd.f32 %v106_v57, %v90_v7 }
  0xc4   :  { %v670_v6 = vadd.f32 %v2454_v21, %v654_v12  ;;  %v694_v42 = vmul.f32 %v1519_v0, %v412_v35  ;;  %v92_v58 = vadd.f32 %v1698_v54, %v1701_v30  ;;  %v128_v28 = vmul.f32 %v2450_v50, %v50_v51  ;;  %v1872_v12 = vld [vmem:[%s2410_s5 + $0x6c] sm:$0xf]  ;;  %v439_v21 = vld [vmem:[%s2410_s5 + $0x68] sm:$0xf] }
  0xc5   :  { %v134_v61 = vadd.f32 %v126_v19, %v110_v33  ;;  %v132_v46 = vmul.f32 %v2453_v11, %v50_v51  ;;  %v138_v15 = vadd.f32 %v130_v9, %v114_v40  ;;  %v143_v7 = vmax.f32 %v135_v8, 0.0  ;;  %v1857_v19 = vld [vmem:[%s2410_s5 + $0xc] sm:$0xf]  ;;  %v474_v9 = vld [vmem:[%s2411_s7 + $0x14] sm:$0xf] }
  0xc6   :  { %839 = vrot.lane.b32.xlu0 %v1784_v62, %s1122_s16  ;;  %841 = vrot.lane.b32.xlu1 %v1786_v10, %s1122_s16  ;;  %v141_v57 = vmax.f32 %v133_v17, 0.0  ;;  %v686_v45 = vadd.f32 %v678_v2, %v670_v6  ;;  %v116_v1 = vadd.f32 %v108_v18, %v92_v58  ;;  %v112_v43 = vadd.f32 %v104_v60, %v1689_v55  ;;  %v469_v18 = vld [vmem:[%s2411_s7] sm:$0xf]  ;;  %v473_v60 = vld [vmem:[%s2411_s7 + $0x10] sm:$0xf] }
  0xc7   :  { %v129_v35 = vmul.f32 %v2453_v11, %v1732_v14  ;;  %v146_v50 = vmax.f32 %v138_v15, 0.0  ;;  %v142_v38 = vmax.f32 %v134_v61, 0.0  ;;  %v131_v27 = vmul.f32 %v2453_v11, %v1737_v49  ;;  %v470_v11 = vld [vmem:[%s2411_s7 + $0x4] sm:$0xf]  ;;  %v1893_v33 = vld [vmem:[%s2410_s5 + $0x14] sm:$0xf] }
  0xc8   :  { %v1804_v20 = vadd.f32 %v694_v42, %v686_v45  ;;  %v136_v54 = vadd.f32 %v128_v28, %v112_v43  ;;  %v140_v30 = vadd.f32 %v132_v46, %v116_v1  ;;  %v1125_v39 = vmov 1   ;;  %v1898_v40 = vld [vmem:[%s2411_s7 + $0xc] sm:$0xf]  ;;  %v442_v6 = vld [vmem:[%s2410_s5 + $0x74] sm:$0xf] }
  0xc9   :  { %v137_v63 = vadd.f32 %v129_v35, %v2455_v24  ;;  %v139_v37 = vadd.f32 %v131_v27, %v2456_v36  ;;  %v2457_v49 = vmov 2   ;;  %v2458_v16 = vmov 3   ;;  %v417_v58 = vld [vmem:[%s2410_s5 + $0x10] sm:$0xf]  ;;  %v419_v36 = vld [vmem:[%s2410_s5 + $0x18] sm:$0xf] }
  0xca   :  { %177 = vperm.xlu0 %1111, %v143_v7   ;;  %167 = vperm.xlu1 %1110, %v141_v57   ;;  %v1811_v47 = vmax.f32 %v140_v30, 0.0  ;;  %v144_v55 = vmax.f32 %v136_v54, 0.0  ;;  %v691_v32 = vmul.f32 %v1519_v0, %v1706_v5  ;;  %v1823_v4 = vmax.f32 %v1686_v3, 0.0  ;;  %v438_v3 = vld [vmem:[%s2410_s5 + $0x64] sm:$0xf] }
  0xcb   :  { %v145_v14 = vmax.f32 %v137_v63, 0.0  ;;  %v147_v22 = vmax.f32 %v139_v37, 0.0  ;;  %v1834_v0 = vmax.f32 %v1718_v13, 0.0  ;;  %v413_v5 = vld [vmem:[%s2410_s5] sm:$0xf]  ;;  %v928_v53 = vmul.f32 %v1534_v52, %v438_v3 }
  0xcc   :  { %v699_v23 = vadd.f32 %v691_v32, %v1677_v34  ;;  %v414_v34 = vld [vmem:[%s2410_s5 + $0x4] sm:$0xf]  ;;  %v437_v13 = vld [vmem:[%s2410_s5 + $0x60] sm:$0xf]  ;;  %v711_v51 = vmul.f32 %v1536_v44, %v413_v5  ;;  %v441_v28 = vld [vmem:[%s2410_s5 + $0x70] sm:$0xf]  ;;  %v930_v61 = vmul.f32 %v1563_v48, %v1872_v12 }
  0xcd   :  { %v712_v17 = vmul.f32 %v1534_v52, %v414_v34  ;;  %v927_v8 = vmul.f32 %v1536_v44, %v437_v13  ;;  %v714_v52 = vmul.f32 %v1563_v48, %v1857_v19  ;;  %v1885_v44 = vld [vmem:[%s2410_s5 + $0x8] sm:$0xf]  ;;  %v936_v46 = vadd.f32 %v928_v53, %v474_v9  ;;  %v420_v63 = vld [vmem:[%s2410_s5 + $0x1c] sm:$0xf]  ;;  %v443_v37 = vld [vmem:[%s2410_s5 + $0x78] sm:$0xf] }
  0xce   :  { %192 = vperm.xlu0 %1111, %v146_v50   ;;  %172 = vperm.xlu1 %1110, %v142_v38   ;;  %v1828_v2 = vmax.f32 %v699_v23, 0.0  ;;  %v719_v15 = vadd.f32 %v711_v51, %v469_v18  ;;  %v713_v45 = vmul.f32 %v1565_v56, %v1885_v44  ;;  %v1922_v35 = vmax.f32 %v1765_v31, 0.0  ;;  %v471_v31 = vld [vmem:[%s2411_s7 + $0x8] sm:$0xf] }
  0xcf   :  { %v720_v42 = vadd.f32 %v712_v17, %v470_v11  ;;  %v722_v54 = vadd.f32 %v714_v52, %v1898_v40  ;;  %v929_v48 = vmul.f32 %v1565_v56, %v439_v21  ;;  %v716_v30 = vmul.f32 %v1596_v41, %v414_v34  ;;  %v475_v56 = vld [vmem:[%s2411_s7 + $0x18] sm:$0xf] }
  0xd0   :  { %v721_v17 = vadd.f32 %v713_v45, %v471_v31 }
  0xd1   :  { %v937_v53 = vadd.f32 %v929_v48, %v475_v56  ;;  %v934_v48 = vmul.f32 %v1626_v26, %v1872_v12 }
  0xd2   :  { %202 = vperm.xlu0 %1111, %v1811_v47   ;;  %182 = vperm.xlu1 %1110, %v144_v55  }
  0xd6   :  { %1113 = vset.pattern.permute.xlu0 %v1125_v39  ;;  %187 = vperm.xlu1 %1110, %v145_v14  }
  0xd7   :  { %218 = vperm.xlu0 %1113, %v142_v38  }
  0xda   :  { %197 = vperm.xlu1 %1110, %v147_v22  }
  0xdb   :  { %230 = vperm.xlu0 %1113, %v145_v14  }
  0xde   :  { %1112 = vset.pattern.permute.xlu1 %v1125_v39  ;;  %v715_v39 = vmul.f32 %v1602_v25, %v413_v5 }
  0xdf   :  { %238 = vperm.xlu0 %1113, %v147_v22   ;;  %214 = vperm.xlu1 %1112, %v141_v57  }
  0xe3   :  { %1114 = vset.pattern.permute.xlu0 %v2457_v49  ;;  %222 = vperm.xlu1 %1112, %v143_v7  }
  0xe4   :  { %262 = vperm.xlu0 %1114, %v141_v57  }
  0xe7   :  { %226 = vperm.xlu1 %1112, %v144_v55  }
  0xe8   :  { %274 = vperm.xlu0 %1114, %v144_v55  }
  0xeb   :  { %234 = vperm.xlu1 %1112, %v146_v50  }
  0xec   :  { %282 = vperm.xlu0 %1114, %v146_v50  }
  0xef   :  { %242 = vperm.xlu1 %1112, %v1811_v47  }
  0xf0   :  { %290 = vperm.xlu0 %1114, %v1811_v47  }
  0xf3   :  { %1115 = vset.pattern.permute.xlu1 %v2457_v49 }
  0xf4   :  { %1117 = vset.pattern.permute.xlu0 %v2458_v16  ;;  %266 = vperm.xlu1 %1115, %v142_v38  }
  0xf5   :  { %314 = vperm.xlu0 %1117, %v142_v38  }
  0xf8   :  { %270 = vperm.xlu1 %1115, %v143_v7  }
  0xf9   :  { %326 = vperm.xlu0 %1117, %v145_v14  }
  0xfc   :  { %278 = vperm.xlu1 %1115, %v145_v14   ;;  %v932_v14 = vmul.f32 %v1596_v41, %v438_v3  ;;  %v724_v41 = vadd.f32 %v716_v30, %v470_v11  ;;  %v1970_v11 = vmax.f32 %v1804_v20, 0.0 }
  0xfd   :  { %334 = vperm.xlu0 %1117, %v147_v22  }
 0x100   :  { %286 = vperm.xlu1 %1115, %v147_v22   ;;  %v931_v22 = vmul.f32 %v1602_v25, %v437_v13  ;;  %v940_v13 = vadd.f32 %v932_v14, %v474_v9  ;;  %v717_v9 = vmul.f32 %v1628_v59, %v1885_v44 }
 0x101   :  { %843 = vrot.lane.b32.xlu0 %v1823_v4, %s1122_s16 }
 0x102   :  { %v725_v44 = vadd.f32 %v717_v9, %v471_v31 }
 0x104   :  { %1116 = vset.pattern.permute.xlu1 %v2458_v16 }
 0x105   :  { %847 = vrot.lane.b32.xlu0 %v1828_v2, %s1122_s16  ;;  %310 = vperm.xlu1 %1116, %v141_v57   ;;  %v1917_v57 = vld [vmem:[%s2411_s7 + $0x1c] sm:$0xf] }
 0x109   :  { %851 = vrot.lane.b32.xlu0 %v1834_v0, %s1122_s16  ;;  %318 = vperm.xlu1 %1116, %v143_v7   ;;  %v935_v7 = vadd.f32 %v927_v8, %v473_v60  ;;  %v1963_v8 = vmax.f32 %v1791_v29, 0.0 }
 0x10d   :  { %879 = vrot.lane.b32.xlu0 %v1784_v62, %s1123_s17  ;;  %322 = vperm.xlu1 %1116, %v144_v55   ;;  %v938_v55 = vadd.f32 %v930_v61, %v1917_v57  ;;  %v939_v61 = vadd.f32 %v931_v22, %v473_v60 }
 0x111   :  { %883 = vrot.lane.b32.xlu0 %v1823_v4, %s1123_s17  ;;  %330 = vperm.xlu1 %1116, %v146_v50  }
 0x115   :  { %887 = vrot.lane.b32.xlu0 %v1828_v2, %s1123_s17  ;;  %338 = vperm.xlu1 %1116, %v1811_v47   ;;  %v444_v47 = vld [vmem:[%s2410_s5 + $0x7c] sm:$0xf] }
 0x118   :  { %v738_v1 = vpop.permute.xlu0 %737  ;;  %v736_v43 = vpop.permute.xlu1 %735 }
 0x119   :  { %v760_v50 = vmul.f32 %v738_v1, %v1893_v33  ;;  %v944_v38 = vmul.f32 %v738_v1, %v442_v6  ;;  %v759_v27 = vmul.f32 %v736_v43, %v417_v58  ;;  %v943_v24 = vmul.f32 %v736_v43, %v441_v28  ;;  %891 = vrot.lane.b32.xlu0 %v1834_v0, %s1123_s17 }
 0x11a   :  { %845 = vrot.lane.b32.xlu1 %v1922_v35, %s1122_s16 }
 0x11b   :  { %v1954_v49 = vadd.f32 %v760_v50, %v720_v42  ;;  %v1956_v16 = vadd.f32 %v944_v38, %v936_v46  ;;  %v1958_v32 = vadd.f32 %v759_v27, %v719_v15  ;;  %v1960_v23 = vadd.f32 %v943_v24, %v935_v7 }
 0x11c   :  { %v742_v34 = vpop.permute.xlu0 %741  ;;  %v740_v51 = vpop.permute.xlu1 %739  ;;  %v723_v42 = vadd.f32 %v715_v39, %v469_v18  ;;  %v718_v46 = vmul.f32 %v1626_v26, %v1857_v19  ;;  %v933_v18 = vmul.f32 %v1628_v59, %v439_v21  ;;  %v942_v26 = vadd.f32 %v934_v48, %v1917_v57  ;;  %v422_v57 = vld [vmem:[%s2410_s5 + $0x24] sm:$0xf] }
 0x11d   :  { %v762_v3 = vmul.f32 %v742_v34, %v420_v63  ;;  %v946_v5 = vmul.f32 %v742_v34, %v444_v47  ;;  %v761_v52 = vmul.f32 %v740_v51, %v419_v36  ;;  %v945_v25 = vmul.f32 %v740_v51, %v443_v37  ;;  %v447_v51 = vld [vmem:[%s2410_s5 + $0x88] sm:$0xf] }
 0x11e   :  { %849 = vrot.lane.b32.xlu1 %v1963_v8, %s1122_s16  ;;  %v726_v24 = vadd.f32 %v718_v46, %v1898_v40  ;;  %v445_v40 = vld [vmem:[%s2410_s5 + $0x80] sm:$0xf] }
 0x11f   :  { %v770_v15 = vadd.f32 %v762_v3, %v722_v54  ;;  %v954_v7 = vadd.f32 %v946_v5, %v938_v55  ;;  %v769_v45 = vadd.f32 %v761_v52, %v721_v17  ;;  %v953_v1 = vadd.f32 %v945_v25, %v937_v53  ;;  %v423_v53 = vld [vmem:[%s2410_s5 + $0x28] sm:$0xf]  ;;  %v448_v3 = vld [vmem:[%s2410_s5 + $0x8c] sm:$0xf] }
 0x120   :  { %v746_v29 = vpop.permute.xlu0 %745  ;;  %v744_v43 = vpop.permute.xlu1 %743  ;;  %v941_v55 = vadd.f32 %v933_v18, %v475_v56 }
 0x121   :  { %v764_v60 = vmul.f32 %v746_v29, %v1893_v33  ;;  %v948_v19 = vmul.f32 %v746_v29, %v442_v6  ;;  %v763_v54 = vmul.f32 %v744_v43, %v417_v58  ;;  %v947_v30 = vmul.f32 %v744_v43, %v441_v28  ;;  %v421_v28 = vld [vmem:[%s2410_s5 + $0x20] sm:$0xf] }
 0x122   :  { %853 = vrot.lane.b32.xlu1 %v1970_v11, %s1122_s16 }
 0x123   :  { %v772_v50 = vadd.f32 %v764_v60, %v724_v41  ;;  %v956_v38 = vadd.f32 %v948_v19, %v940_v13  ;;  %v771_v20 = vadd.f32 %v763_v54, %v723_v42  ;;  %v955_v27 = vadd.f32 %v947_v30, %v939_v61  ;;  %v424_v41 = vld [vmem:[%s2410_s5 + $0x2c] sm:$0xf] }
 0x124   :  { %v750_v12 = vpop.permute.xlu0 %749  ;;  %v748_v59 = vpop.permute.xlu1 %747 }
 0x125   :  { %v766_v21 = vmul.f32 %v750_v12, %v420_v63  ;;  %v950_v33 = vmul.f32 %v750_v12, %v444_v47  ;;  %v765_v6 = vmul.f32 %v748_v59, %v419_v36  ;;  %v949_v58 = vmul.f32 %v748_v59, %v443_v37  ;;  %v446_v63 = vld [vmem:[%s2410_s5 + $0x84] sm:$0xf]  ;;  %v2047_v12 = vld [vmem:[%s2410_s5 + $0x34] sm:$0xf] }
 0x126   :  { %881 = vrot.lane.b32.xlu1 %v1786_v10, %s1123_s17 }
 0x127   :  { %v774_v31 = vadd.f32 %v766_v21, %v726_v24  ;;  %v958_v56 = vadd.f32 %v950_v33, %v942_v26  ;;  %v773_v47 = vadd.f32 %v765_v6, %v725_v44  ;;  %v957_v36 = vadd.f32 %v949_v58, %v941_v55  ;;  %v2042_v26 = vld [vmem:[%s2410_s5 + $0x90] sm:$0xf]  ;;  %v2057_v21 = vld [vmem:[%s2410_s5 + $0x40] sm:$0xf] }
 0x128   :  { %v776_v37 = vpop.permute.xlu0 %775  ;;  %v778_v14 = vpop.permute.xlu1 %777  ;;  %v2062_v33 = vld [vmem:[%s2410_s5 + $0xa0] sm:$0xf]  ;;  %v975_v58 = vmul.f32 %v1784_v62, %v2042_v26 }
 0x129   :  { %v799_v39 = vmul.f32 %v776_v37, %v421_v28  ;;  %v959_v22 = vmul.f32 %v776_v37, %v445_v40  ;;  %v800_v34 = vmul.f32 %v778_v14, %v422_v57  ;;  %v960_v17 = vmul.f32 %v778_v14, %v446_v63 }
 0x12a   :  { %885 = vrot.lane.b32.xlu1 %v1922_v35, %s1123_s17 }
 0x12b   :  { %v807_v5 = vadd.f32 %v799_v39, %v1958_v32  ;;  %v967_v52 = vadd.f32 %v959_v22, %v1960_v23  ;;  %v808_v25 = vadd.f32 %v800_v34, %v1954_v49  ;;  %v968_v13 = vadd.f32 %v960_v17, %v1956_v16 }
 0x12c   :  { %v780_v42 = vpop.permute.xlu0 %779  ;;  %v782_v61 = vpop.permute.xlu1 %781 }
 0x12d   :  { %v801_v46 = vmul.f32 %v780_v42, %v423_v53  ;;  %v961_v29 = vmul.f32 %v780_v42, %v447_v51  ;;  %v802_v43 = vmul.f32 %v782_v61, %v424_v41  ;;  %v962_v48 = vmul.f32 %v782_v61, %v448_v3 }
 0x12e   :  { %889 = vrot.lane.b32.xlu1 %v1963_v8, %s1123_s17  ;;  %v983_v17 = vadd.f32 %v975_v58, %v967_v52 }
 0x12f   :  { %v2016_v9 = vadd.f32 %v801_v46, %v769_v45  ;;  %v2018_v18 = vadd.f32 %v961_v29, %v953_v1  ;;  %v2020_v32 = vadd.f32 %v802_v43, %v770_v15  ;;  %v2022_v23 = vadd.f32 %v962_v48, %v954_v7  ;;  %v2029_v45 = vld [vmem:[%s2410_s5 + $0x30] sm:$0xf]  ;;  %v2113_v43 = vld [vmem:[%s2412_s3 + $0x4] sm:$0xf]  ;;  %v2118_v48 = vld [vmem:[%s2412_s3 + $0x14] sm:$0xf] }
 0x130   :  { %v784_v49 = vpop.permute.xlu0 %783  ;;  %v786_v60 = vpop.permute.xlu1 %785  ;;  %v815_v6 = vmul.f32 %v1784_v62, %v2029_v45  ;;  %2470 = vst [vmem:[#allocation7_spill] sm:$0xff] %v2113_v43 }
 0x131   :  { %2459 = vst [vmem:[#allocation2_spill] sm:$0xff] %v2022_v23  ;;  %v803_v16 = vmul.f32 %v784_v49, %v421_v28  ;;  %v963_v19 = vmul.f32 %v784_v49, %v445_v40  ;;  %v804_v54 = vmul.f32 %v786_v60, %v422_v57  ;;  %v964_v30 = vmul.f32 %v786_v60, %v446_v63  ;;  %v2071_v28 = vld [vmem:[%s2410_s5 + $0x44] sm:$0xf] }
 0x132   :  { %893 = vrot.lane.b32.xlu1 %v1970_v11, %s1123_s17  ;;  %2462 = vst [vmem:[#allocation11_spill] sm:$0xff] %v2071_v28  ;;  %v2076_v40 = vld [vmem:[%s2410_s5 + $0xa4] sm:$0xf]  ;;  %v816_v57 = vmul.f32 %v1786_v10, %v2047_v12  ;;  %v823_v34 = vadd.f32 %v815_v6, %v807_v5 }
 0x133   :  { %v2031_v1 = vadd.f32 %v803_v16, %v771_v20  ;;  %v2033_v15 = vadd.f32 %v963_v19, %v955_v27  ;;  %v2035_v7 = vadd.f32 %v804_v54, %v772_v50  ;;  %v2037_v24 = vadd.f32 %v964_v30, %v956_v38  ;;  %v2052_v20 = vld [vmem:[%s2410_s5 + $0x94] sm:$0xf]  ;;  %2463 = vst [vmem:[#allocation3_spill] sm:$0xff] %v2076_v40 }
 0x134   :  { %v788_v27 = vpop.permute.xlu0 %787  ;;  %v790_v50 = vpop.permute.xlu1 %789  ;;  %v976_v63 = vmul.f32 %v1786_v10, %v2052_v20 }
 0x135   :  { %2460 = vst [vmem:[#allocation10_spill] sm:$0xff] %v2035_v7  ;;  %2461 = vst [vmem:[#allocation8_spill] sm:$0xff] %v2037_v24  ;;  %v805_v44 = vmul.f32 %v788_v27, %v423_v53  ;;  %v965_v38 = vmul.f32 %v788_v27, %v447_v51  ;;  %v806_v55 = vmul.f32 %v790_v50, %v424_v41 }
 0x136   :  { %v966_v59 = vmul.f32 %v790_v50, %v448_v3  ;;  %v824_v53 = vadd.f32 %v816_v57, %v808_v25  ;;  %v984_v51 = vadd.f32 %v976_v63, %v968_v13 }
 0x137   :  { %v2082_v37 = vadd.f32 %v805_v44, %v773_v47  ;;  %v2084_v14 = vadd.f32 %v965_v38, %v957_v36  ;;  %v2086_v62 = vadd.f32 %v806_v55, %v774_v31 }
 0x138   :  { %v2088_v39 = vadd.f32 %v966_v59, %v958_v56  ;;  %v840_v22 = vpop.permute.xlu0 %839  ;;  %v842_v41 = vpop.permute.xlu1 %841 }
 0x139   :  { %2464 = vst [vmem:[#allocation4_spill] sm:$0xff] %v2086_v62  ;;  %v863_v3 = vmul.f32 %v840_v22, %v2057_v21  ;;  %v991_v42 = vmul.f32 %v840_v22, %v2062_v33  ;;  %v864_v10 = vmul.f32 %v842_v41, %v2071_v28  ;;  %v992_v47 = vmul.f32 %v842_v41, %v2076_v40  ;;  %v2173_v28 = vld [vmem:[%s2410_s5 + $0x9c] sm:$0xf] }
 0x13a   :  { %2465 = vst [vmem:[#allocation9_spill] sm:$0xff] %v2088_v39  ;;  %v819_v62 = vmul.f32 %v1828_v2, %v2029_v45 }
 0x13b   :  { %v2094_v36 = vadd.f32 %v863_v3, %v823_v34  ;;  %v2096_v31 = vadd.f32 %v991_v42, %v983_v17  ;;  %v2098_v56 = vadd.f32 %v864_v10, %v824_v53  ;;  %v2100_v61 = vadd.f32 %v992_v47, %v984_v51  ;;  %v427_v47 = vld [vmem:[%s2410_s5 + $0x38] sm:$0xf] }
 0x13c   :  { %v821_v7 = vmul.f32 %v1834_v0, %v427_v47 }
 0x13d   :  { %2466 = vst [vmem:[#allocation14_spill] sm:$0xff] %v2098_v56  ;;  %2467 = vst [vmem:[#allocation6_spill] sm:$0xff] %v2100_v61  ;;  %v2168_v56 = vld [vmem:[%s2410_s5 + $0x3c] sm:$0xf] }
 0x149   :  { %v2102_v5 = vpop.permute.xlu0 %177  ;;  %v168_v52 = vpop.permute.xlu1 %167 }
 0x14d   :  { %v2104_v25 = vpop.permute.xlu0 %192  ;;  %v173_v13 = vpop.permute.xlu1 %172 }
 0x14e   :  { %2468 = vst [vmem:[#allocation5_spill] sm:$0xff] %v2104_v25  ;;  %v206_v16 = vmul.f32 %v173_v13, %v2113_v43  ;;  %v451_v13 = vld [vmem:[%s2410_s5 + $0x98] sm:$0xf] }
 0x14f   :  { %v977_v39 = vmul.f32 %v1823_v4, %v451_v13 }
 0x151   :  { %v2106_v46 = vpop.permute.xlu0 %202  ;;  %v2108_v29 = vpop.permute.xlu1 %182  ;;  %v985_v25 = vadd.f32 %v977_v39, %v2018_v18 }
 0x152   :  { %2469 = vst [vmem:[#allocation15_spill] sm:$0xff] %v2106_v46  ;;  %v817_v46 = vmul.f32 %v1823_v4, %v427_v47  ;;  %v151_v4 = vld [vmem:[%s2412_s3 + $0x8] sm:$0xf] }
 0x153   :  { %v159_v47 = vld [vmem:[%s2412_s3 + $0x28] sm:$0xf]  ;;  %v207_v18 = vmul.f32 %v2102_v5, %v151_v4 }
 0x155   :  { %v188_v49 = vpop.permute.xlu1 %187 }
 0x156   :  { %v219_v60 = vpop.permute.xlu0 %218 }
 0x157   :  { %v246_v19 = vmul.f32 %v219_v60, %v2118_v48  ;;  %v149_v60 = vld [vmem:[%s2412_s3] sm:$0xf] }
 0x159   :  { %v2122_v54 = vadd.f32 %v246_v19, %v206_v16  ;;  %v2124_v30 = vpop.permute.xlu1 %197  ;;  %v153_v16 = vld [vmem:[%s2412_s3 + $0x10] sm:$0xf]  ;;  %v157_v19 = vld [vmem:[%s2412_s3 + $0x20] sm:$0xf] }
 0x15a   :  { %v231_v27 = vpop.permute.xlu0 %230 }
 0x15b   :  { %2471 = vst [vmem:[#allocation12_spill] sm:$0xff] %v2122_v54  ;;  %v249_v23 = vmul.f32 %v231_v27, %v153_v16 }
 0x15e   :  { %v239_v50 = vpop.permute.xlu0 %238  ;;  %v215_v44 = vpop.permute.xlu1 %214 }
 0x15f   :  { %v245_v61 = vmul.f32 %v215_v44, %v153_v16  ;;  %v979_v44 = vmul.f32 %v1828_v2, %v2042_v26  ;;  %v161_v2 = vld [vmem:[%s2412_s3 + $0x30] sm:$0xf]  ;;  %v825_v16 = vadd.f32 %v817_v46, %v2016_v9 }
 0x160   :  { %v457_v9 = vld [vmem:[%s2410_s5 + $0xb0] sm:$0xf] }
 0x162   :  { %v223_v38 = vpop.permute.xlu1 %222 }
 0x163   :  { %v263_v55 = vpop.permute.xlu0 %262 }
 0x164   :  { %v293_v24 = vmul.f32 %v263_v55, %v157_v19  ;;  %v2206_v55 = vmul.f32 %v1963_v8, %v2047_v12  ;;  %v455_v12 = vld [vmem:[%s2410_s5 + $0xa8] sm:$0xf] }
 0x166   :  { %v2126_v59 = vpop.permute.xlu1 %226  ;;  %2479 = vst [vmem:[#allocation22_spill] sm:$0xff] %v2206_v55 }
 0x167   :  { %v2128_v6 = vpop.permute.xlu0 %274 }
 0x168   :  { %2472 = vst [vmem:[#allocation13_spill] sm:$0xff] %v2128_v6  ;;  %v2186_v6 = vmul.f32 %v1834_v0, %v451_v13  ;;  %v2202_v0 = vmul.f32 %v1922_v35, %v2173_v28  ;;  %v431_v13 = vld [vmem:[%s2410_s5 + $0x48] sm:$0xf] }
 0x16a   :  { %v2130_v58 = vpop.permute.xlu1 %234  ;;  %2478 = vst [vmem:[#allocation21_spill] sm:$0xff] %v2202_v0 }
 0x16b   :  { %2473 = vst [vmem:[#allocation16_spill] sm:$0xff] %v2130_v58  ;;  %v2132_v57 = vpop.permute.xlu0 %282 }
 0x16c   :  { %2474 = vst [vmem:[#allocation17_spill] sm:$0xff] %v2132_v57  ;;  %v155_v57 = vld [vmem:[%s2412_s3 + $0x18] sm:$0xf] }
 0x16d   :  { %v251_v0 = vmul.f32 %v239_v50, %v155_v57  ;;  %v211_v50 = vmul.f32 %v2124_v30, %v151_v4 }
 0x16e   :  { %v2134_v63 = vpop.permute.xlu1 %242 }
 0x16f   :  { %2475 = vst [vmem:[#allocation18_spill] sm:$0xff] %v2134_v63  ;;  %v2136_v22 = vpop.permute.xlu0 %290  ;;  %v205_v63 = vmul.f32 %v168_v52, %v149_v60  ;;  %v2198_v52 = vmul.f32 %v1922_v35, %v2168_v56  ;;  %v209_v35 = vmul.f32 %v188_v49, %v149_v60  ;;  %v987_v49 = vadd.f32 %v979_v44, %v2033_v15  ;;  %v163_v60 = vld [vmem:[%s2412_s3 + $0x38] sm:$0xf] }
 0x170   :  { %2476 = vst [vmem:[#allocation19_spill] sm:$0xff] %v2136_v22  ;;  %v829_v15 = vadd.f32 %v821_v7, %v2082_v37 }
 0x171   :  { %v253_v27 = vadd.f32 %v245_v61, %v205_v63  ;;  %v827_v61 = vadd.f32 %v819_v62, %v2031_v1  ;;  %v433_v63 = vld [vmem:[%s2410_s5 + $0x50] sm:$0xf] }
 0x173   :  { %v2138_v34 = vpop.permute.xlu1 %266  ;;  %v301_v39 = vadd.f32 %v293_v24, %v253_v27  ;;  %v259_v24 = vadd.f32 %v251_v0, %v211_v50 }
 0x174   :  { %v2140_v17 = vpop.permute.xlu0 %314 }
 0x175   :  { %2477 = vst [vmem:[#allocation20_spill] sm:$0xff] %v2140_v17  ;;  %v247_v17 = vmul.f32 %v223_v38, %v155_v57  ;;  %v257_v38 = vadd.f32 %v249_v23, %v209_v35 }
 0x177   :  { %v271_v53 = vpop.permute.xlu1 %270 }
 0x178   :  { %v2142_v51 = vpop.permute.xlu0 %326  ;;  %v295_v57 = vmul.f32 %v271_v53, %v159_v47 }
 0x179   :  { %v345_v7 = vmul.f32 %v2142_v51, %v161_v2 }
 0x17b   :  { %v279_v41 = vpop.permute.xlu1 %278 }
 0x17c   :  { %v2144_v3 = vpop.permute.xlu0 %334  ;;  %v297_v46 = vmul.f32 %v279_v41, %v157_v19  ;;  %v255_v41 = vadd.f32 %v247_v17, %v207_v18 }
 0x17d   :  { %v347_v37 = vmul.f32 %v2144_v3, %v163_v60 }
 0x17e   :  { %v305_v23 = vadd.f32 %v297_v46, %v257_v38  ;;  %v303_v17 = vadd.f32 %v295_v57, %v255_v41 }
 0x17f   :  { %v2146_v42 = vpop.permute.xlu1 %286 }
 0x180   :  { %v844_v10 = vpop.permute.xlu0 %843  ;;  %v299_v30 = vmul.f32 %v2146_v42, %v159_v47 }
 0x181   :  { %v993_v55 = vmul.f32 %v844_v10, %v455_v12 }
 0x182   :  { %v307_v51 = vadd.f32 %v299_v30, %v259_v24 }
 0x184   :  { %v2163_v40 = vpop.permute.xlu0 %847  ;;  %v311_v22 = vpop.permute.xlu1 %310 }
 0x185   :  { %v341_v43 = vmul.f32 %v311_v22, %v161_v2  ;;  %v865_v22 = vmul.f32 %v844_v10, %v431_v13  ;;  %v435_v10 = vld [vmem:[%s2410_s5 + $0x58] sm:$0xf]  ;;  %v867_v42 = vmul.f32 %v2163_v40, %v2057_v21  ;;  %v995_v27 = vmul.f32 %v2163_v40, %v2062_v33 }
 0x187   :  { %v349_v54 = vadd.f32 %v341_v43, %v301_v39  ;;  %v459_v43 = vld [vmem:[%s2410_s5 + $0xb8] sm:$0xf]  ;;  %v353_v39 = vadd.f32 %v345_v7, %v305_v23  ;;  %v875_v46 = vadd.f32 %v867_v42, %v827_v61  ;;  %v1003_v40 = vadd.f32 %v995_v27, %v987_v49  ;;  %v152_v7 = vld [vmem:[%s2412_s3 + $0xc] sm:$0xf] }
 0x188   :  { %v2194_v45 = vpop.permute.xlu0 %851  ;;  %v319_v26 = vpop.permute.xlu1 %318  ;;  %v989_v61 = vadd.f32 %v2186_v6, %v2084_v14 }
 0x189   :  { %v343_v19 = vmul.f32 %v319_v26, %v163_v60  ;;  %v357_v26 = vmax.f32 %v349_v54, 0.0  ;;  %v869_v21 = vmul.f32 %v2194_v45, %v431_v13  ;;  %v997_v54 = vmul.f32 %v2194_v45, %v455_v12 }
 0x18b   :  { %v351_v47 = vadd.f32 %v343_v19, %v303_v17  ;;  %v877_v45 = vadd.f32 %v869_v21, %v829_v15  ;;  %v1005_v12 = vadd.f32 %v997_v54, %v989_v61  ;;  %v2481_v21 = vld [vmem:[#allocation12_spill] sm:$0xff]  ;;  %v2487_v61 = vld [vmem:[#allocation13_spill] sm:$0xff] }
 0x18c   :  { %v880_v1 = vpop.permute.xlu0 %879  ;;  %v2229_v62 = vpop.permute.xlu1 %322 }
 0x18d   :  { %v903_v58 = vmul.f32 %v880_v1, %v433_v63  ;;  %v1007_v5 = vmul.f32 %v880_v1, %v457_v9 }
 0x18f   :  { %v911_v53 = vadd.f32 %v903_v58, %v2094_v36  ;;  %v1015_v44 = vadd.f32 %v1007_v5, %v2096_v31  ;;  %v873_v31 = vadd.f32 %v865_v22, %v825_v16  ;;  %v1001_v58 = vadd.f32 %v993_v55, %v985_v25 }
 0x190   :  { %v884_v4 = vpop.permute.xlu0 %883  ;;  %v2248_v36 = vpop.permute.xlu1 %330  ;;  %v359_v22 = vmax.f32 %v351_v47, 0.0  ;;  %v355_v5 = vadd.f32 %v347_v37, %v307_v51  ;;  %v156_v37 = vld [vmem:[%s2412_s3 + $0x1c] sm:$0xf]  ;;  %v162_v47 = vld [vmem:[%s2412_s3 + $0x34] sm:$0xf] }
 0x191   :  { %v1023_v0 = vmax.f32 %v1015_v44, 0.0  ;;  %v905_v35 = vmul.f32 %v884_v4, %v435_v10  ;;  %v1009_v18 = vmul.f32 %v884_v4, %v459_v43  ;;  %v919_v2 = vmax.f32 %v911_v53, 0.0 }
 0x192   :  { %v980_v4 = vmul.f32 %v1963_v8, %v2052_v20  ;;  %v248_v8 = vmul.f32 %v2126_v59, %v156_v37  ;;  %v2480_v59 = vld [vmem:[#allocation16_spill] sm:$0xff] }
 0x193   :  { %v1031_v3 = vadd.f32 %v1023_v0, %v357_v26  ;;  %v913_v16 = vadd.f32 %v905_v35, %v873_v31  ;;  %v1017_v25 = vadd.f32 %v1009_v18, %v1001_v58  ;;  %v363_v35 = vmax.f32 %v355_v5, 0.0 }
 0x194   :  { %v888_v50 = vpop.permute.xlu0 %887  ;;  %v2253_v38 = vpop.permute.xlu1 %338 }
 0x195   :  { %v1039_v55 = vadd.f32 %v1031_v3, %v919_v2  ;;  %v1055_v57 = vsub.f32 %v1031_v3, %v919_v2  ;;  %v907_v33 = vmul.f32 %v888_v50, %v433_v63  ;;  %v1011_v1 = vmul.f32 %v888_v50, %v457_v9  ;;  %v158_v63 = vld [vmem:[%s2412_s3 + $0x24] sm:$0xf] }
 0x196   :  { %v1025_v60 = vmax.f32 %v1017_v25, 0.0  ;;  %v921_v30 = vmax.f32 %v913_v16, 0.0  ;;  %v361_v9 = vmax.f32 %v353_v39, 0.0  ;;  %v294_v42 = vmul.f32 %v2138_v34, %v158_v63  ;;  %v2482_v16 = vld [vmem:[#allocation20_spill] sm:$0xff] }
 0x197   :  { %v1047_v24 = vmul.f32 0.70710677, %v1039_v55  ;;  %v1063_v13 = vmul.f32 0.70710677, %v1055_v57  ;;  %v915_v41 = vadd.f32 %v907_v33, %v875_v46  ;;  %v1019_v19 = vadd.f32 %v1011_v1, %v1003_v40  ;;  %v2485_v1 = vld [vmem:[#allocation2_spill] sm:$0xff] }
 0x198   :  { %v892_v23 = vpop.permute.xlu0 %891  ;;  %v1033_v53 = vadd.f32 %v1025_v60, %v359_v22  ;;  %v2258_v44 = vpop.permute.xlu1 %845  ;;  %v822_v34 = vmul.f32 %v1970_v11, %v2168_v56  ;;  %v982_v39 = vmul.f32 %v1970_v11, %v2173_v28  ;;  %v2300_v56 = vadd.f32 %v2198_v52, %v2020_v32  ;;  %v160_v28 = vld [vmem:[%s2412_s3 + $0x2c] sm:$0xf]  ;;  %v2484_v52 = vld [vmem:[#allocation5_spill] sm:$0xff] }
 0x199   :  { %1072 = vst.msk [vmem:[%s2413_s8] sm:$0xf] %vm1071_vm0, %v1047_v24  ;;  %1080 = vst.msk [vmem:[%s2414_s9] sm:$0xf] %vm1071_vm0, %v1063_v13  ;;  %v909_v14 = vmul.f32 %v892_v23, %v435_v10  ;;  %v1013_v6 = vmul.f32 %v892_v23, %v459_v43  ;;  %v1027_v49 = vmax.f32 %v1019_v19, 0.0  ;;  %v923_v31 = vmax.f32 %v915_v41, 0.0 }
 0x19a   :  { %v1041_v15 = vadd.f32 %v1033_v53, %v921_v30  ;;  %v1057_v17 = vsub.f32 %v1033_v53, %v921_v30  ;;  %v208_v11 = vmul.f32 %v2108_v29, %v152_v7  ;;  %v250_v2 = vmul.f32 %v2480_v59, %v2118_v48  ;;  %v2483_v32 = vld [vmem:[#allocation7_spill] sm:$0xff]  ;;  %v164_v29 = vld [vmem:[%s2412_s3 + $0x3c] sm:$0xf]  ;;  %v2488_v41 = vld [vmem:[#allocation10_spill] sm:$0xff] }
 0x19b   :  { %v917_v10 = vadd.f32 %v909_v14, %v877_v45  ;;  %v1021_v43 = vadd.f32 %v1013_v6, %v1005_v12  ;;  %v1035_v58 = vadd.f32 %v1027_v49, %v361_v9  ;;  %v302_v50 = vadd.f32 %v294_v42, %v2481_v21  ;;  %v2486_v48 = vld [vmem:[#allocation21_spill] sm:$0xff]  ;;  %v456_v13 = vld [vmem:[%s2410_s5 + $0xac] sm:$0xf]  ;;  %v2489_v19 = vld [vmem:[#allocation22_spill] sm:$0xff] }
 0x19c   :  { %v1049_v26 = vmul.f32 0.70710677, %v1041_v15  ;;  %v1065_v0 = vmul.f32 0.70710677, %v1057_v17  ;;  %v2280_v27 = vpop.permute.xlu1 %849  ;;  %v342_v25 = vmul.f32 %v2482_v16, %v162_v47  ;;  %v210_v33 = vmul.f32 %v2484_v52, %v2483_v32  ;;  %v2490_v30 = vld [vmem:[#allocation8_spill] sm:$0xff]  ;;  %v2491_v6 = vld [vmem:[#allocation17_spill] sm:$0xff] }
 0x19d   :  { %v1029_v18 = vmax.f32 %v1021_v43, 0.0  ;;  %v1043_v20 = vadd.f32 %v1035_v58, %v923_v31  ;;  %v1059_v51 = vsub.f32 %v1035_v58, %v923_v31  ;;  %v925_v3 = vmax.f32 %v917_v10, 0.0  ;;  %v434_v45 = vld [vmem:[%s2410_s5 + $0x54] sm:$0xf]  ;;  %v432_v17 = vld [vmem:[%s2410_s5 + $0x4c] sm:$0xf] }
 0x19e   :  { %1074 = vst.msk [vmem:[%s2413_s8 + $0x8] sm:$0xf] %vm1071_vm0, %v1049_v26  ;;  %1082 = vst.msk [vmem:[%s2414_s9 + $0x8] sm:$0xf] %vm1071_vm0, %v1065_v0  ;;  %v986_v60 = vadd.f32 %v2486_v48, %v2485_v1  ;;  %v256_v5 = vadd.f32 %v248_v8, %v208_v11  ;;  %v296_v24 = vmul.f32 %v2487_v61, %v160_v28  ;;  %v458_v12 = vld [vmem:[%s2410_s5 + $0xb4] sm:$0xf] }
 0x19f   :  { %v1037_v46 = vadd.f32 %v1029_v18, %v363_v35  ;;  %v1051_v54 = vmul.f32 0.70710677, %v1043_v20  ;;  %v1067_v55 = vmul.f32 0.70710677, %v1059_v51  ;;  %v828_v23 = vadd.f32 %v2489_v19, %v2488_v41  ;;  %v2492_v42 = vld [vmem:[#allocation18_spill] sm:$0xff]  ;;  %v2494_v58 = vld [vmem:[#allocation9_spill] sm:$0xff] }
 0x1a0   :  { %v854_v57 = vpop.permute.xlu1 %853  ;;  %v988_v53 = vadd.f32 %v980_v4, %v2490_v30  ;;  %v258_v14 = vadd.f32 %v250_v2, %v210_v33  ;;  %v298_v9 = vmul.f32 %v2491_v6, %v158_v63  ;;  %v252_v10 = vmul.f32 %v2492_v42, %v156_v37  ;;  %v2493_v4 = vld [vmem:[#allocation4_spill] sm:$0xff]  ;;  %v2495_v35 = vld [vmem:[#allocation15_spill] sm:$0xff]  ;;  %v436_v51 = vld [vmem:[%s2410_s5 + $0x5c] sm:$0xf] }
 0x1a1   :  { %v1045_v40 = vadd.f32 %v1037_v46, %v925_v3  ;;  %v1061_v22 = vsub.f32 %v1037_v46, %v925_v3  ;;  %1076 = vst.msk [vmem:[%s2413_s8 + $0x10] sm:$0xf] %vm1071_vm0, %v1051_v54  ;;  %1084 = vst.msk [vmem:[%s2414_s9 + $0x10] sm:$0xf] %vm1071_vm0, %v1067_v55  ;;  %v350_v43 = vadd.f32 %v342_v25, %v302_v50  ;;  %v460_v11 = vld [vmem:[%s2410_s5 + $0xbc] sm:$0xf] }
 0x1a2   :  { %v830_v31 = vadd.f32 %v822_v34, %v2493_v4  ;;  %v990_v26 = vadd.f32 %v982_v39, %v2494_v58  ;;  %v212_v18 = vmul.f32 %v2495_v35, %v152_v7  ;;  %v994_v63 = vmul.f32 %v2258_v44, %v456_v13  ;;  %v2496_v2 = vld [vmem:[#allocation11_spill] sm:$0xff]  ;;  %v2497_v46 = vld [vmem:[#allocation14_spill] sm:$0xff] }
 0x1a3   :  { %v1053_v49 = vmul.f32 0.70710677, %v1045_v40  ;;  %v1069_v15 = vmul.f32 0.70710677, %v1061_v22  ;;  %v304_v34 = vadd.f32 %v296_v24, %v256_v5  ;;  %v344_v39 = vmul.f32 %v2229_v62, %v164_v29  ;;  %v2498_v50 = vld [vmem:[#allocation6_spill] sm:$0xff]  ;;  %v2500_v25 = vld [vmem:[#allocation3_spill] sm:$0xff] }
 0x1a4   :  { %v882_v0 = vpop.permute.xlu1 %881  ;;  %v346_v20 = vmul.f32 %v2248_v36, %v162_v47  ;;  %v866_v7 = vmul.f32 %v2258_v44, %v432_v17  ;;  %v306_v59 = vadd.f32 %v298_v9, %v258_v14  ;;  %v868_v3 = vmul.f32 %v2280_v27, %v2496_v2  ;;  %v2499_v36 = vld [vmem:[#allocation19_spill] sm:$0xff] }
 0x1a5   :  { %1078 = vst.msk [vmem:[%s2413_s8 + $0x18] sm:$0xf] %vm1071_vm0, %v1053_v49  ;;  %1086 = vst.msk [vmem:[%s2414_s9 + $0x18] sm:$0xf] %vm1071_vm0, %v1069_v15  ;;  %v904_v37 = vmul.f32 %v882_v0, %v434_v45  ;;  %v1008_v8 = vmul.f32 %v882_v0, %v458_v12  ;;  %v260_v16 = vadd.f32 %v252_v10, %v212_v18  ;;  %v358_v44 = vmax.f32 %v350_v43, 0.0 }
 0x1a6   :  { %v300_v47 = vmul.f32 %v2499_v36, %v160_v28  ;;  %v996_v54 = vmul.f32 %v2280_v27, %v2500_v25  ;;  %v1002_v32 = vadd.f32 %v994_v63, %v986_v60  ;;  %v352_v22 = vadd.f32 %v344_v39, %v304_v34 }
 0x1a7   :  { %v912_v21 = vadd.f32 %v904_v37, %v2497_v46  ;;  %v1016_v62 = vadd.f32 %v1008_v8, %v2498_v50  ;;  %v354_v1 = vadd.f32 %v346_v20, %v306_v59  ;;  %v348_v48 = vmul.f32 %v2253_v38, %v164_v29 }
 0x1a8   :  { %v886_v55 = vpop.permute.xlu1 %885  ;;  %v874_v5 = vadd.f32 %v866_v7, %v2300_v56  ;;  %v876_v61 = vadd.f32 %v868_v3, %v828_v23  ;;  %v1004_v28 = vadd.f32 %v996_v54, %v988_v53  ;;  %v870_v30 = vmul.f32 %v854_v57, %v432_v17 }
 0x1a9   :  { %v1024_v52 = vmax.f32 %v1016_v62, 0.0  ;;  %v906_v33 = vmul.f32 %v886_v55, %v436_v51  ;;  %v1010_v40 = vmul.f32 %v886_v55, %v460_v11  ;;  %v920_v24 = vmax.f32 %v912_v21, 0.0 }
 0x1aa   :  { %v998_v14 = vmul.f32 %v854_v57, %v456_v13  ;;  %v308_v42 = vadd.f32 %v300_v47, %v260_v16  ;;  %v360_v10 = vmax.f32 %v352_v22, 0.0  ;;  %v362_v43 = vmax.f32 %v354_v1, 0.0 }
 0x1ab   :  { %v1032_v41 = vadd.f32 %v1024_v52, %v358_v44  ;;  %v1018_v19 = vadd.f32 %v1010_v40, %v1002_v32  ;;  %v914_v27 = vadd.f32 %v906_v33, %v874_v5  ;;  %v878_v0 = vadd.f32 %v870_v30, %v830_v31 }
 0x1ac   :  { %v890_v6 = vpop.permute.xlu1 %889  ;;  %v356_v58 = vadd.f32 %v348_v48, %v308_v42  ;;  %v1006_v57 = vadd.f32 %v998_v14, %v990_v26 }
 0x1ad   :  { %v1040_v9 = vadd.f32 %v1032_v41, %v920_v24  ;;  %v1056_v60 = vsub.f32 %v1032_v41, %v920_v24  ;;  %v908_v49 = vmul.f32 %v890_v6, %v434_v45  ;;  %v1012_v15 = vmul.f32 %v890_v6, %v458_v12 }
 0x1ae   :  { %v1026_v4 = vmax.f32 %v1018_v19, 0.0  ;;  %v922_v35 = vmax.f32 %v914_v27, 0.0  ;;  %v364_v20 = vmax.f32 %v356_v58, 0.0 }
 0x1af   :  { %v1048_v38 = vmul.f32 0.70710677, %v1040_v9  ;;  %v1064_v29 = vmul.f32 0.70710677, %v1056_v60  ;;  %v916_v56 = vadd.f32 %v908_v49, %v876_v61  ;;  %v1020_v23 = vadd.f32 %v1012_v15, %v1004_v28 }
 0x1b0   :  { %v1034_v53 = vadd.f32 %v1026_v4, %v360_v10  ;;  %v894_v17 = vpop.permute.xlu1 %893 }
 0x1b1   :  { %1073 = vst.msk [vmem:[%s2413_s8 + $0x4] sm:$0xf] %vm1071_vm0, %v1048_v38  ;;  %1081 = vst.msk [vmem:[%s2414_s9 + $0x4] sm:$0xf] %vm1071_vm0, %v1064_v29  ;;  %v1028_v13 = vmax.f32 %v1020_v23, 0.0  ;;  %v910_v45 = vmul.f32 %v894_v17, %v436_v51  ;;  %v1014_v12 = vmul.f32 %v894_v17, %v460_v11  ;;  %v924_v31 = vmax.f32 %v916_v56, 0.0 }
 0x1b2   :  { %v1042_v18 = vadd.f32 %v1034_v53, %v922_v35  ;;  %v1058_v63 = vsub.f32 %v1034_v53, %v922_v35 }
 0x1b3   :  { %v1036_v37 = vadd.f32 %v1028_v13, %v362_v43  ;;  %v918_v8 = vadd.f32 %v910_v45, %v878_v0  ;;  %v1022_v34 = vadd.f32 %v1014_v12, %v1006_v57 }
 0x1b4   :  { %v1050_v26 = vmul.f32 0.70710677, %v1042_v18  ;;  %v1066_v39 = vmul.f32 0.70710677, %v1058_v63 }
 0x1b5   :  { %v1044_v7 = vadd.f32 %v1036_v37, %v924_v31  ;;  %v1060_v59 = vsub.f32 %v1036_v37, %v924_v31  ;;  %v1030_v2 = vmax.f32 %v1022_v34, 0.0  ;;  %v926_v3 = vmax.f32 %v918_v8, 0.0 }
 0x1b6   :  { %1075 = vst.msk [vmem:[%s2413_s8 + $0xc] sm:$0xf] %vm1071_vm0, %v1050_v26  ;;  %1083 = vst.msk [vmem:[%s2414_s9 + $0xc] sm:$0xf] %vm1071_vm0, %v1066_v39 }
 0x1b7   :  { %v1052_v51 = vmul.f32 0.70710677, %v1044_v7  ;;  %v1068_v11 = vmul.f32 0.70710677, %v1060_v59  ;;  %v1038_v46 = vadd.f32 %v1030_v2, %v364_v20 }
 0x1b9   :  { %1077 = vst.msk [vmem:[%s2413_s8 + $0x14] sm:$0xf] %vm1071_vm0, %v1052_v51  ;;  %1085 = vst.msk [vmem:[%s2414_s9 + $0x14] sm:$0xf] %vm1071_vm0, %v1068_v11  ;;  %v1046_v21 = vadd.f32 %v1038_v46, %v926_v3  ;;  %v1062_v50 = vsub.f32 %v1038_v46, %v926_v3 }
 0x1bb   :  { %v1054_v62 = vmul.f32 0.70710677, %v1046_v21  ;;  %v1070_v16 = vmul.f32 0.70710677, %v1062_v50 }
 0x1bd   :  { %1079 = vst.msk [vmem:[%s2413_s8 + $0x1c] sm:$0xf] %vm1071_vm0, %v1054_v62  ;;  %1087 = vst.msk [vmem:[%s2414_s9 + $0x1c] sm:$0xf] %vm1071_vm0, %v1070_v16 }

// kernel: _lambda_.7
= control target key start
LH: loop header
LB: loop body
LE: loop exit
PB: predicated region body
PF: predicated region fallthrough
CT: control target
= control target key end

     0   :  { %vm29_vm0 = vcmask 1043456   ;;  %vm16_vm1 = vcmask 31744   ;;  %s196_s1 = inlined_call_operand.vmem [shape: f32[4,4], index: 1, kind: input, shape index: {}]   ;;  %s197_s0 = inlined_call_operand.vmem [shape: f32[32,4], index: 0, kind: input, shape index: {}]   ;;  %s198_s2 = inlined_call_operand.vmem [shape: f32[32,4], index: 2, kind: output, shape index: {}]  }
   0x1   :  { %v15_v0 = vld [vmem:[%s196_s1] sm:$0xf]  ;;  %v13_v2 = vld [vmem:[%s197_s0 + $0x10] sm:$0xff]  ;;  %v12_v3 = vld [vmem:[%s197_s0 + $0x8] sm:$0xff] }
   0x2   :  { %v11_v1 = vld [vmem:[%s197_s0] sm:$0xff]  ;;  %136 = vmatprep.subr.msk.mxu0 %vm29_vm0, %v15_v0  ;;  %144 = vmatprep.subr.msk.mxu1 %vm29_vm0, %v15_v0  ;;  %v14_v4 = vld [vmem:[%s197_s0 + $0x18] sm:$0xff] }
   0x3   :  { %137 = vmatpush3.msk.msra.mxu0 %vm29_vm0, %v15_v0  ;;  %145 = vmatpush3.msk.msra.mxu1 %vm29_vm0, %v15_v0 }
   0x4   :  { %138 = vmatprep.mubr.msk.f32.mxu0 %vm16_vm1, %v11_v1  ;;  %141 = vmatprep.mubr.msk.f32.mxu1 %vm16_vm1, %v13_v2 }
   0x5   :  { %139 = vmatmul.mubr.msk.f32.vlgmr.msra.gmra.mrb[0].mxu0 %vm16_vm1, %v12_v3  ;;  %142 = vmatmul.mubr.msk.f32.vlgmr.msra.gmra.mrb[0].mxu1 %vm16_vm1, %v14_v4 }
  0xd8   :  { %v140_v5 = vpop.f32.mrb[0].mxu0  ;;  %v143_v6 = vpop.f32.mrb[0].mxu1 }
  0xd9   :  { %119 = vst.msk [vmem:[%s198_s2 + $0x8] sm:$0xff] %vm16_vm1, %v140_v5  ;;  %121 = vst.msk [vmem:[%s198_s2 + $0x18] sm:$0xff] %vm16_vm1, %v143_v6  ;;  %v99_v7 = vpop.f32.mrb[1].mxu0  ;;  %v109_v8 = vpop.f32.mrb[1].mxu1 }
  0xda   :  { %118 = vst.msk [vmem:[%s198_s2] sm:$0xff] %vm16_vm1, %v99_v7  ;;  %120 = vst.msk [vmem:[%s198_s2 + $0x10] sm:$0xff] %vm16_vm1, %v109_v8 }

// kernel: _lambda_.6
= control target key start
LH: loop header
LB: loop body
LE: loop exit
PB: predicated region body
PF: predicated region fallthrough
CT: control target
= control target key end

     0   :  { %s775_s29 = smov 126   ;;  %s776_s30 = smov 127   ;;  %vm748_vm0 = vcmask 60416   ;;  %s1824_s0 = inlined_call_operand.vmem [shape: f32[2,4,12], index: 0, kind: input, shape index: {}]   ;;  %s1825_s1 = inlined_call_operand.vmem [shape: f32[2,4,12], index: 1, kind: input, shape index: {}]   ;;  %s1826_s3 = inlined_call_operand.vmem [shape: f32[12,4,4,10], index: 3, kind: input, shape index: {}]   ;;  %s1827_s5 = inlined_call_operand.vmem [shape: f32[2,4,4,10], index: 5, kind: input, shape index: {}]   ;;  %s1828_s4 = inlined_call_operand.vmem [shape: f32[12,4,4,8], index: 4, kind: input, shape index: {}]   ;;  %s1829_s6 = inlined_call_operand.vmem [shape: f32[2,4,4,8], index: 6, kind: input, shape index: {}]   ;;  %s1830_s2 = inlined_call_operand.vmem [shape: f32[2,4,4,8], index: 2, kind: input, shape index: {}]   ;;  %s1831_s7 = inlined_call_operand.vmem [shape: f32[2,4,4,8], index: 7, kind: output, shape index: {0}]   ;;  %s1832_s8 = inlined_call_operand.vmem [shape: f32[2,4,4,8], index: 8, kind: output, shape index: {1}]  }
   0x1   :  { %v825_v0 = vld [vmem:[%s1824_s0] sm:$0xf]  ;;  %v834_v1 = vld [vmem:[%s1824_s0 + $0x4] sm:$0xf]  ;;  %v43_v6 = vld [vmem:[%s1826_s3 + $0xc] sm:$0xf] }
   0x2   :  { %192 = vrot.lane.b32.xlu1 %v825_v0, %s775_s29  ;;  %170 = vrot.lane.b32.xlu0 %v825_v0, %s776_s30  ;;  %v843_v2 = vld [vmem:[%s1825_s1 + $0x4] sm:$0xf]  ;;  %v848_v3 = vld [vmem:[%s1825_s1] sm:$0xf]  ;;  %v155_v17 = vmul.f32 %v43_v6, %v825_v0  ;;  %v159_v18 = vmul.f32 %v43_v6, %v834_v1 }
   0x3   :  { %v41_v4 = vld [vmem:[%s1826_s3 + $0x4] sm:$0xf]  ;;  %v40_v5 = vld [vmem:[%s1826_s3] sm:$0xf]  ;;  %v53_v7 = vld [vmem:[%s1826_s3 + $0x34] sm:$0xf] }
   0x4   :  { %v153_v8 = vmul.f32 %v41_v4, %v825_v0  ;;  %v42_v9 = vld [vmem:[%s1826_s3 + $0x8] sm:$0xf]  ;;  %v157_v10 = vmul.f32 %v41_v4, %v834_v1  ;;  %v137_v11 = vld [vmem:[%s1827_s5 + $0x4] sm:$0xf]  ;;  %v152_v12 = vmul.f32 %v40_v5, %v825_v0  ;;  %v156_v13 = vmul.f32 %v40_v5, %v834_v1  ;;  %v52_v15 = vld [vmem:[%s1826_s3 + $0x30] sm:$0xf] }
   0x5   :  { %v65_v14 = vld [vmem:[%s1826_s3 + $0x64] sm:$0xf]  ;;  %v136_v16 = vld [vmem:[%s1827_s5] sm:$0xf]  ;;  %v892_v19 = vmul.f32 %v53_v7, %v848_v3  ;;  %v55_v20 = vld [vmem:[%s1826_s3 + $0x3c] sm:$0xf]  ;;  %v154_v22 = vmul.f32 %v42_v9, %v825_v0  ;;  %v158_v23 = vmul.f32 %v42_v9, %v834_v1  ;;  %v917_v30 = vmul.f32 %v53_v7, %v843_v2 }
   0x6   :  { %194 = vrot.lane.b32.xlu1 %v834_v1, %s775_s29  ;;  %172 = vrot.lane.b32.xlu0 %v834_v1, %s776_s30  ;;  %v139_v21 = vld [vmem:[%s1827_s5 + $0xc] sm:$0xf]  ;;  %v45_v24 = vld [vmem:[%s1826_s3 + $0x14] sm:$0xf]  ;;  %v161_v26 = vadd.f32 %v153_v8, %v137_v11  ;;  %v914_v29 = vadd.f32 %v157_v10, %v137_v11  ;;  %v285_v31 = vmul.f32 %v65_v14, %v825_v0 }
   0x7   :  { %v49_v25 = vld [vmem:[%s1826_s3 + $0x24] sm:$0xf]  ;;  %v54_v27 = vld [vmem:[%s1826_s3 + $0x38] sm:$0xf]  ;;  %v138_v28 = vld [vmem:[%s1827_s5 + $0x8] sm:$0xf]  ;;  %v160_v32 = vadd.f32 %v152_v12, %v136_v16  ;;  %v214_v33 = vmul.f32 %v52_v15, %v848_v3  ;;  %v921_v34 = vadd.f32 %v156_v13, %v136_v16  ;;  %v924_v35 = vmul.f32 %v52_v15, %v843_v2 }
   0x8   :  { %v929_v36 = vld [vmem:[%s1826_s3 + $0x94] sm:$0xf]  ;;  %v64_v38 = vld [vmem:[%s1826_s3 + $0x60] sm:$0xf]  ;;  %v44_v39 = vld [vmem:[%s1826_s3 + $0x10] sm:$0xf]  ;;  %v163_v42 = vadd.f32 %v155_v17, %v139_v21  ;;  %v217_v43 = vmul.f32 %v55_v20, %v848_v3  ;;  %v949_v44 = vadd.f32 %v159_v18, %v139_v21  ;;  %v952_v45 = vmul.f32 %v55_v20, %v843_v2 }
   0x9   :  { %v934_v37 = vld [vmem:[%s1827_s5 + $0x14] sm:$0xf]  ;;  %v48_v40 = vld [vmem:[%s1826_s3 + $0x20] sm:$0xf]  ;;  %v47_v41 = vld [vmem:[%s1826_s3 + $0x1c] sm:$0xf]  ;;  %v162_v49 = vadd.f32 %v154_v22, %v138_v28  ;;  %v216_v50 = vmul.f32 %v54_v27, %v848_v3  ;;  %v970_v51 = vadd.f32 %v158_v23, %v138_v28  ;;  %v973_v52 = vmul.f32 %v54_v27, %v843_v2 }
   0xa   :  { %234 = vrot.lane.b32.xlu1 %v843_v2, %s776_s30  ;;  %232 = vrot.lane.b32.xlu0 %v848_v3, %s776_s30  ;;  %v957_v46 = vld [vmem:[%s1826_s3 + $0x2c] sm:$0xf]  ;;  %v962_v47 = vld [vmem:[%s1826_s3 + $0x18] sm:$0xf]  ;;  %v980_v55 = vadd.f32 %v285_v31, %v934_v37  ;;  %v984_v56 = vmul.f32 %v929_v36, %v848_v3  ;;  %v284_v58 = vmul.f32 %v64_v38, %v825_v0 }
   0xb   :  { %v967_v48 = vld [vmem:[%s1826_s3 + $0x28] sm:$0xf]  ;;  %v989_v57 = vld [vmem:[%s1826_s3 + $0x90] sm:$0xf]  ;;  %v993_v59 = vmul.f32 %v65_v14, %v834_v1  ;;  %v1007_v5 = vld [vmem:[%s1826_s3 + $0x6c] sm:$0xf]  ;;  %v1021_v13 = vmul.f32 %v64_v38, %v834_v1 }
   0xc   :  { %1845 = vst [vmem:[#allocation2_spill] sm:$0xff] %v989_v57  ;;  %v1002_v4 = vld [vmem:[%s1827_s5 + $0x10] sm:$0xf]  ;;  %v1018_v12 = vmul.f32 %v989_v57, %v848_v3  ;;  %v1033_v20 = vld [vmem:[%s1826_s3 + $0x9c] sm:$0xf]  ;;  %v287_v21 = vmul.f32 %v1007_v5, %v825_v0 }
   0xd   :  { %v1028_v18 = vadd.f32 %v284_v58, %v1002_v4  ;;  %1846 = vst [vmem:[#allocation3_spill] sm:$0xff] %v1033_v20  ;;  %v57_v22 = vld [vmem:[%s1826_s3 + $0x44] sm:$0xf]  ;;  %v56_v31 = vld [vmem:[%s1826_s3 + $0x40] sm:$0xf] }
   0xe   :  { %256 = vrot.lane.b32.xlu1 %v843_v2, %s775_s29  ;;  %254 = vrot.lane.b32.xlu0 %v848_v3, %s775_s29 }
  0x74   :  { %v975_v53 = vpop.permute.xlu1 %192  ;;  %v977_v54 = vpop.permute.xlu0 %170 }
  0x75   :  { %v177_v60 = vmul.f32 %v977_v54, %v45_v24  ;;  %v199_v61 = vmul.f32 %v975_v53, %v49_v25  ;;  %v176_v62 = vmul.f32 %v977_v54, %v44_v39  ;;  %v198_v63 = vmul.f32 %v975_v53, %v48_v40 }
  0x76   :  { %v179_v6 = vmul.f32 %v977_v54, %v47_v41  ;;  %v201_v7 = vmul.f32 %v975_v53, %v957_v46  ;;  %v178_v8 = vmul.f32 %v977_v54, %v962_v47  ;;  %v200_v9 = vmul.f32 %v975_v53, %v967_v48 }
  0x77   :  { %v185_v10 = vadd.f32 %v177_v60, %v161_v26  ;;  %v184_v11 = vadd.f32 %v176_v62, %v160_v32  ;;  %v59_v32 = vld [vmem:[%s1826_s3 + $0x4c] sm:$0xf] }
  0x78   :  { %v1023_v14 = vpop.permute.xlu1 %194  ;;  %v1025_v15 = vpop.permute.xlu0 %172  ;;  %v187_v16 = vadd.f32 %v179_v6, %v163_v42  ;;  %v186_v17 = vadd.f32 %v178_v8, %v162_v49  ;;  %v1075_v8 = vld [vmem:[%s1826_s3 + $0x68] sm:$0xf] }
  0x79   :  { %v207_v23 = vadd.f32 %v199_v61, %v185_v10  ;;  %v206_v26 = vadd.f32 %v198_v63, %v184_v11  ;;  %v181_v27 = vmul.f32 %v1025_v15, %v45_v24  ;;  %v203_v28 = vmul.f32 %v1023_v14, %v49_v25  ;;  %v1053_v24 = vld [vmem:[%s1827_s5 + $0x1c] sm:$0xf]  ;;  %v1059_v61 = vld [vmem:[%s1826_s3 + $0x48] sm:$0xf]  ;;  %v1095_v11 = vld [vmem:[%s1826_s3 + $0x58] sm:$0xf] }
  0x7a   :  { %v209_v38 = vadd.f32 %v201_v7, %v187_v16  ;;  %v208_v42 = vadd.f32 %v200_v9, %v186_v17  ;;  %v180_v49 = vmul.f32 %v1025_v15, %v44_v39  ;;  %v202_v58 = vmul.f32 %v1023_v14, %v48_v40 }
  0x7b   :  { %v223_v25 = vadd.f32 %v892_v19, %v207_v23  ;;  %v222_v60 = vadd.f32 %v214_v33, %v206_v26  ;;  %v189_v62 = vadd.f32 %v181_v27, %v914_v29  ;;  %v1064_v39 = vmul.f32 %v1033_v20, %v848_v3  ;;  %v61_v29 = vld [vmem:[%s1826_s3 + $0x54] sm:$0xf] }
  0x7c   :  { %v1066_v40 = vpop.permute.xlu1 %234  ;;  %v1068_v63 = vpop.permute.xlu0 %232  ;;  %v225_v6 = vadd.f32 %v217_v43, %v209_v38  ;;  %v224_v7 = vadd.f32 %v216_v50, %v208_v42  ;;  %v188_v19 = vadd.f32 %v180_v49, %v921_v34  ;;  %v183_v33 = vmul.f32 %v1025_v15, %v47_v41  ;;  %v60_v34 = vld [vmem:[%s1826_s3 + $0x50] sm:$0xf]  ;;  %v63_v41 = vld [vmem:[%s1826_s3 + $0x5c] sm:$0xf] }
  0x7d   :  { %1847 = vst [vmem:[#allocation4_spill] sm:$0xff] %v1068_v63  ;;  %v239_v9 = vmul.f32 %v1068_v63, %v57_v22  ;;  %v238_v10 = vmul.f32 %v1068_v63, %v56_v31  ;;  %v241_v43 = vmul.f32 %v1068_v63, %v59_v32  ;;  %v1084_v50 = vadd.f32 %v287_v21, %v1053_v24 }
  0x7e   :  { %v240_v16 = vmul.f32 %v1068_v63, %v1059_v61  ;;  %v211_v17 = vadd.f32 %v203_v28, %v189_v62  ;;  %v243_v21 = vmul.f32 %v1066_v40, %v57_v22  ;;  %v210_v23 = vadd.f32 %v202_v58, %v188_v19 }
  0x7f   :  { %v247_v26 = vadd.f32 %v239_v9, %v223_v25  ;;  %v242_v27 = vmul.f32 %v1066_v40, %v56_v31  ;;  %v205_v38 = vmul.f32 %v1023_v14, %v957_v46  ;;  %v286_v42 = vmul.f32 %v1075_v8, %v825_v0  ;;  %v1120_v25 = vld [vmem:[%s1826_s3 + $0x74] sm:$0xf] }
  0x80   :  { %v1105_v49 = vpop.permute.xlu1 %256  ;;  %v1107_v20 = vpop.permute.xlu0 %254  ;;  %v246_v57 = vadd.f32 %v238_v10, %v222_v60  ;;  %v227_v63 = vadd.f32 %v917_v30, %v211_v17  ;;  %v226_v28 = vadd.f32 %v924_v35, %v210_v23  ;;  %v191_v22 = vadd.f32 %v183_v33, %v949_v44  ;;  %v1125_v30 = vld [vmem:[%s1826_s3 + $0x70] sm:$0xf]  ;;  %v1132_v17 = vld [vmem:[%s1826_s3 + $0x84] sm:$0xf]  ;;  %v1137_v23 = vld [vmem:[%s1826_s3 + $0x80] sm:$0xf] }
  0x81   :  { %v261_v58 = vmul.f32 %v1107_v20, %v61_v29  ;;  %v260_v31 = vmul.f32 %v1107_v20, %v60_v34  ;;  %v263_v46 = vmul.f32 %v1107_v20, %v63_v41  ;;  %v262_v0 = vmul.f32 %v1107_v20, %v1095_v11 }
  0x82   :  { %v249_v35 = vadd.f32 %v241_v43, %v225_v6  ;;  %v248_v44 = vadd.f32 %v240_v16, %v224_v7  ;;  %v251_v60 = vadd.f32 %v243_v21, %v227_v63  ;;  %v265_v62 = vmul.f32 %v1105_v49, %v61_v29  ;;  %v1151_v21 = vld [vmem:[%s1827_s5 + $0x18] sm:$0xf] }
  0x83   :  { %v269_v19 = vadd.f32 %v261_v58, %v247_v26  ;;  %v268_v33 = vadd.f32 %v260_v31, %v246_v57  ;;  %v250_v9 = vadd.f32 %v242_v27, %v226_v28  ;;  %v264_v10 = vmul.f32 %v1105_v49, %v60_v34 }
  0x84   :  { %v213_v6 = vadd.f32 %v205_v38, %v191_v22  ;;  %v245_v63 = vmul.f32 %v1066_v40, %v59_v32  ;;  %v301_v7 = vmul.f32 %v977_v54, %v1120_v25  ;;  %v300_v57 = vmul.f32 %v977_v54, %v1125_v30 }
  0x85   :  { %v1144_v29 = vmax.f32 %v269_v19, 0.0  ;;  %v1146_v43 = vmax.f32 %v268_v33, 0.0  ;;  %v271_v34 = vadd.f32 %v263_v46, %v249_v35  ;;  %v270_v16 = vadd.f32 %v262_v0, %v248_v44  ;;  %v75_v0 = vld [vmem:[%s1826_s3 + $0x8c] sm:$0xf]  ;;  %v70_v33 = vld [vmem:[%s1826_s3 + $0x78] sm:$0xf] }
  0x86   :  { %v229_v26 = vadd.f32 %v952_v45, %v213_v6  ;;  %v182_v32 = vmul.f32 %v1025_v15, %v962_v47  ;;  %v317_v27 = vmul.f32 %v975_v53, %v1132_v17  ;;  %v316_v38 = vmul.f32 %v975_v53, %v1137_v23  ;;  %v71_v47 = vld [vmem:[%s1826_s3 + $0x7c] sm:$0xf] }
  0x87   :  { %414 = vrot.lane.b32.xlu1 %v1144_v29, %s776_s30  ;;  %412 = vrot.lane.b32.xlu0 %v1146_v43, %s776_s30  ;;  %v273_v28 = vadd.f32 %v265_v62, %v251_v60  ;;  %v272_v22 = vadd.f32 %v264_v10, %v250_v9  ;;  %v204_v45 = vmul.f32 %v1023_v14, %v967_v48  ;;  %v1176_v44 = vmax.f32 %v271_v34, 0.0  ;;  %v78_v34 = vld [vmem:[%s1826_s3 + $0x98] sm:$0xf] }
  0x88   :  { %v267_v58 = vmul.f32 %v1105_v49, %v63_v41  ;;  %v190_v31 = vadd.f32 %v182_v32, %v970_v51  ;;  %v309_v46 = vadd.f32 %v301_v7, %v980_v55  ;;  %v294_v35 = vadd.f32 %v286_v42, %v1151_v21  ;;  %v74_v42 = vld [vmem:[%s1826_s3 + $0x88] sm:$0xf] }
  0x89   :  { %v1178_v60 = vmax.f32 %v270_v16, 0.0  ;;  %v253_v48 = vadd.f32 %v245_v63, %v229_v26  ;;  %v308_v62 = vadd.f32 %v300_v57, %v1028_v18  ;;  %v244_v41 = vmul.f32 %v1066_v40, %v1059_v61 }
  0x8a   :  { %v212_v19 = vadd.f32 %v204_v45, %v190_v31  ;;  %v325_v51 = vadd.f32 %v317_v27, %v309_v46  ;;  %v303_v55 = vmul.f32 %v977_v54, %v71_v47  ;;  %v1194_v18 = vmax.f32 %v273_v28, 0.0  ;;  %v1848_v46 = vld [vmem:[#allocation2_spill] sm:$0xff] }
  0x8b   :  { %418 = vrot.lane.b32.xlu1 %v1176_v44, %s776_s30  ;;  %416 = vrot.lane.b32.xlu0 %v1178_v60, %s776_s30  ;;  %v1196_v61 = vmax.f32 %v272_v22, 0.0  ;;  %v324_v9 = vadd.f32 %v316_v38, %v308_v62  ;;  %v319_v10 = vmul.f32 %v975_v53, %v75_v0  ;;  %v266_v63 = vmul.f32 %v1105_v49, %v1095_v11 }
  0x8c   :  { %v228_v6 = vadd.f32 %v973_v52, %v212_v19  ;;  %v1203_v7 = vadd.f32 %v984_v56, %v325_v51  ;;  %v311_v57 = vadd.f32 %v303_v55, %v1084_v50  ;;  %v275_v16 = vadd.f32 %v267_v58, %v253_v48  ;;  %v85_v51 = vld [vmem:[%s1826_s3 + $0xb4] sm:$0xf]  ;;  %v84_v55 = vld [vmem:[%s1826_s3 + $0xb0] sm:$0xf] }
  0x8d   :  { %v340_v26 = vadd.f32 %v1018_v12, %v324_v9  ;;  %v302_v32 = vmul.f32 %v977_v54, %v70_v33  ;;  %v318_v27 = vmul.f32 %v975_v53, %v74_v42  ;;  %v297_v11 = vadd.f32 %v993_v59, %v934_v37 }
  0x8e   :  { %v252_v52 = vadd.f32 %v244_v41, %v228_v6  ;;  %v327_v38 = vadd.f32 %v319_v10, %v311_v57  ;;  %v334_v50 = vmul.f32 %v78_v34, %v848_v3  ;;  %v291_v12 = vmul.f32 %v1007_v5, %v834_v1  ;;  %v1850_v6 = vld [vmem:[#allocation4_spill] sm:$0xff] }
  0x8f   :  { %422 = vrot.lane.b32.xlu1 %v1194_v18, %s776_s30  ;;  %420 = vrot.lane.b32.xlu0 %v1196_v61, %s776_s30  ;;  %v310_v56 = vadd.f32 %v302_v32, %v294_v35  ;;  %v305_v28 = vmul.f32 %v1025_v15, %v1120_v25  ;;  %v1226_v37 = vmax.f32 %v275_v16, 0.0  ;;  %v321_v22 = vmul.f32 %v1023_v14, %v1132_v17 }
  0x90   :  { %v274_v54 = vadd.f32 %v266_v63, %v252_v52  ;;  %v1222_v53 = vadd.f32 %v1064_v39, %v327_v38  ;;  %v296_v45 = vadd.f32 %v1021_v13, %v1002_v4  ;;  %v337_v5 = vmul.f32 %v929_v36, %v843_v2  ;;  %v87_v38 = vld [vmem:[%s1826_s3 + $0xbc] sm:$0xf] }
  0x91   :  { %v326_v59 = vadd.f32 %v318_v27, %v310_v56  ;;  %v313_v58 = vadd.f32 %v305_v28, %v297_v11  ;;  %v290_v39 = vmul.f32 %v1075_v8, %v834_v1  ;;  %v304_v31 = vmul.f32 %v1025_v15, %v1125_v30 }
  0x92   :  { %v1232_v3 = vmax.f32 %v274_v54, 0.0  ;;  %v299_v17 = vadd.f32 %v291_v12, %v1053_v24  ;;  %v320_v13 = vmul.f32 %v1023_v14, %v1137_v23  ;;  %v336_v1 = vmul.f32 %v1848_v46, %v843_v2  ;;  %v81_v24 = vld [vmem:[%s1826_s3 + $0xa4] sm:$0xf]  ;;  %v80_v23 = vld [vmem:[%s1826_s3 + $0xa0] sm:$0xf] }
  0x93   :  { %426 = vrot.lane.b32.xlu1 %v1226_v37, %s776_s30  ;;  %v342_v25 = vadd.f32 %v334_v50, %v326_v59  ;;  %v329_v4 = vadd.f32 %v321_v22, %v313_v58  ;;  %v312_v36 = vadd.f32 %v304_v31, %v296_v45  ;;  %v307_v8 = vmul.f32 %v1025_v15, %v71_v47  ;;  %v1849_v47 = vld [vmem:[#allocation3_spill] sm:$0xff]  ;;  %v86_v50 = vld [vmem:[%s1826_s3 + $0xb8] sm:$0xf] }
  0x94   :  { %424 = vrot.lane.b32.xlu0 %v1232_v3, %s776_s30  ;;  %v323_v48 = vmul.f32 %v1023_v14, %v75_v0  ;;  %v298_v30 = vadd.f32 %v290_v39, %v1151_v21  ;;  %v339_v41 = vmul.f32 %v1849_v47, %v843_v2  ;;  %v306_v21 = vmul.f32 %v1025_v15, %v70_v33 }
  0x95   :  { %v345_v35 = vadd.f32 %v337_v5, %v329_v4  ;;  %v328_v62 = vadd.f32 %v320_v13, %v312_v36  ;;  %v315_v19 = vadd.f32 %v307_v8, %v299_v17  ;;  %v322_v0 = vmul.f32 %v1023_v14, %v74_v42  ;;  %v83_v42 = vld [vmem:[%s1826_s3 + $0xac] sm:$0xf] }
  0x96   :  { %v349_v63 = vmul.f32 %v1850_v6, %v81_v24  ;;  %v348_v57 = vmul.f32 %v1850_v6, %v80_v23  ;;  %v314_v16 = vadd.f32 %v306_v21, %v298_v30  ;;  %v338_v32 = vmul.f32 %v78_v34, %v843_v2  ;;  %v82_v2 = vld [vmem:[%s1826_s3 + $0xa8] sm:$0xf]  ;;  %v89_v21 = vld [vmem:[%s1828_s4 + $0x4] sm:$0xf] }
  0x97   :  { %454 = vrot.lane.b32.xlu1 %v1144_v29, %s775_s29  ;;  %v344_v9 = vadd.f32 %v336_v1, %v328_v62  ;;  %v331_v10 = vadd.f32 %v323_v48, %v315_v19  ;;  %v365_v15 = vmul.f32 %v1107_v20, %v85_v51  ;;  %v364_v33 = vmul.f32 %v1107_v20, %v84_v55 }
  0x98   :  { %452 = vrot.lane.b32.xlu0 %v1146_v43, %s775_s29  ;;  %v330_v27 = vadd.f32 %v322_v0, %v314_v16  ;;  %v357_v34 = vadd.f32 %v349_v63, %v1203_v7  ;;  %v356_v52 = vadd.f32 %v348_v57, %v340_v26  ;;  %v351_v56 = vmul.f32 %v1850_v6, %v83_v42  ;;  %v113_v0 = vld [vmem:[%s1828_s4 + $0x64] sm:$0xf]  ;;  %v115_v63 = vld [vmem:[%s1828_s4 + $0x6c] sm:$0xf]  ;;  %v90_v57 = vld [vmem:[%s1828_s4 + $0x8] sm:$0xf] }
  0x99   :  { %v347_v14 = vadd.f32 %v339_v41, %v331_v10  ;;  %v350_v26 = vmul.f32 %v1850_v6, %v82_v2  ;;  %v367_v54 = vmul.f32 %v1107_v20, %v87_v38  ;;  %v353_v28 = vmul.f32 %v1066_v40, %v81_v24  ;;  %v114_v16 = vld [vmem:[%s1828_s4 + $0x68] sm:$0xf] }
  0x9a   :  { %v346_v11 = vadd.f32 %v338_v32, %v330_v27  ;;  %v373_v12 = vadd.f32 %v365_v15, %v357_v34  ;;  %v372_v7 = vadd.f32 %v364_v33, %v356_v52  ;;  %v366_v59 = vmul.f32 %v1107_v20, %v86_v50  ;;  %v145_v32 = vld [vmem:[%s1829_s6 + $0x4] sm:$0xf]  ;;  %v148_v34 = vld [vmem:[%s1829_s6 + $0x10] sm:$0xf]  ;;  %v147_v52 = vld [vmem:[%s1829_s6 + $0xc] sm:$0xf] }
  0x9b   :  { %458 = vrot.lane.b32.xlu1 %v1176_v44, %s775_s29  ;;  %v352_v22 = vmul.f32 %v1066_v40, %v80_v23  ;;  %v359_v45 = vadd.f32 %v351_v56, %v1222_v53  ;;  %v358_v39 = vadd.f32 %v350_v26, %v342_v25  ;;  %v361_v17 = vadd.f32 %v353_v28, %v345_v35  ;;  %v151_v56 = vld [vmem:[%s1829_s6 + $0x1c] sm:$0xf] }
  0x9c   :  { %456 = vrot.lane.b32.xlu0 %v1178_v60, %s775_s29  ;;  %v1309_v58 = vmax.f32 %v373_v12, 0.0  ;;  %v1311_v5 = vmax.f32 %v372_v7, 0.0  ;;  %v369_v4 = vmul.f32 %v1105_v49, %v85_v51  ;;  %v355_v20 = vmul.f32 %v1066_v40, %v83_v42  ;;  %v88_v51 = vld [vmem:[%s1828_s4] sm:$0xf]  ;;  %v146_v12 = vld [vmem:[%s1829_s6 + $0x8] sm:$0xf] }
  0x9d   :  { %v375_v31 = vadd.f32 %v367_v54, %v359_v45  ;;  %v374_v13 = vadd.f32 %v366_v59, %v358_v39  ;;  %v360_v36 = vadd.f32 %v352_v22, %v344_v9  ;;  %v368_v46 = vmul.f32 %v1105_v49, %v84_v55  ;;  %v112_v55 = vld [vmem:[%s1828_s4 + $0x60] sm:$0xf]  ;;  %v91_v9 = vld [vmem:[%s1828_s4 + $0xc] sm:$0xf]  ;;  %v150_v7 = vld [vmem:[%s1829_s6 + $0x18] sm:$0xf] }
  0x9e   :  { %v354_v53 = vmul.f32 %v1066_v40, %v82_v2  ;;  %v377_v25 = vadd.f32 %v369_v4, %v361_v17  ;;  %v363_v8 = vadd.f32 %v355_v20, %v347_v14  ;;  %v371_v35 = vmul.f32 %v1105_v49, %v87_v38  ;;  %v149_v14 = vld [vmem:[%s1829_s6 + $0x14] sm:$0xf]  ;;  %v144_v2 = vld [vmem:[%s1829_s6] sm:$0xf] }
  0x9f   :  { %462 = vrot.lane.b32.xlu1 %v1194_v18, %s775_s29  ;;  %v1321_v1 = vmax.f32 %v375_v31, 0.0  ;;  %v1324_v48 = vmax.f32 %v374_v13, 0.0  ;;  %v376_v30 = vadd.f32 %v368_v46, %v360_v36  ;;  %v370_v23 = vmul.f32 %v1105_v49, %v86_v50 }
  0xa0   :  { %460 = vrot.lane.b32.xlu0 %v1196_v61, %s775_s29  ;;  %v362_v24 = vadd.f32 %v354_v53, %v346_v11  ;;  %v1331_v40 = vmax.f32 %v377_v25, 0.0  ;;  %v379_v62 = vadd.f32 %v371_v35, %v363_v8  ;;  %v389_v15 = vmul.f32 %v1144_v29, %v89_v21  ;;  %v124_v53 = vld [vmem:[%s1828_s4 + $0x90] sm:$0xf]  ;;  %v1450_v25 = vld [vmem:[%s1828_s4 + $0x3c] sm:$0xf] }
  0xa1   :  { %v1333_v19 = vmax.f32 %v376_v30, 0.0  ;;  %v605_v33 = vmul.f32 %v1144_v29, %v113_v0  ;;  %v388_v42 = vmul.f32 %v1146_v43, %v88_v51  ;;  %v604_v27 = vmul.f32 %v1146_v43, %v112_v55  ;;  %1853 = vst [vmem:[#allocation4_spill] sm:$0xff] %v1450_v25  ;;  %v1455_v8 = vld [vmem:[%s1828_s4 + $0x9c] sm:$0xf]  ;;  %v93_v35 = vld [vmem:[%s1828_s4 + $0x14] sm:$0xf] }
  0xa2   :  { %v378_v47 = vadd.f32 %v370_v23, %v362_v24  ;;  %v1339_v41 = vmax.f32 %v379_v62, 0.0  ;;  %v391_v38 = vmul.f32 %v1176_v44, %v91_v9  ;;  %v607_v29 = vmul.f32 %v1176_v44, %v115_v63  ;;  %1854 = vst [vmem:[#allocation5_spill] sm:$0xff] %v1455_v8  ;;  %v117_v30 = vld [vmem:[%s1828_s4 + $0x74] sm:$0xf] }
  0xa3   :  { %466 = vrot.lane.b32.xlu1 %v1226_v37, %s775_s29  ;;  %v390_v11 = vmul.f32 %v1178_v60, %v90_v57  ;;  %v606_v43 = vmul.f32 %v1178_v60, %v114_v16  ;;  %v393_v44 = vmul.f32 %v1194_v18, %v89_v21  ;;  %v609_v54 = vmul.f32 %v1194_v18, %v113_v0  ;;  %v101_v18 = vld [vmem:[%s1828_s4 + $0x34] sm:$0xf] }
  0xa4   :  { %464 = vrot.lane.b32.xlu0 %v1232_v3, %s775_s29  ;;  %1851 = vst [vmem:[#allocation2_spill] sm:$0xff] %v1339_v41  ;;  %v1341_v49 = vmax.f32 %v378_v47, 0.0  ;;  %v392_v60 = vmul.f32 %v1196_v61, %v88_v51  ;;  %v608_v28 = vmul.f32 %v1196_v61, %v112_v55  ;;  %v395_v59 = vmul.f32 %v1226_v37, %v91_v9  ;;  %v125_v61 = vld [vmem:[%s1828_s4 + $0x94] sm:$0xf]  ;;  %v1474_v51 = vld [vmem:[%s1828_s4 + $0x38] sm:$0xf] }
  0xa5   :  { %v611_v22 = vmul.f32 %v1226_v37, %v115_v63  ;;  %v394_v45 = vmul.f32 %v1232_v3, %v90_v57  ;;  %v610_v39 = vmul.f32 %v1232_v3, %v114_v16  ;;  %v397_v31 = vadd.f32 %v389_v15, %v145_v32  ;;  %v100_v37 = vld [vmem:[%s1828_s4 + $0x30] sm:$0xf]  ;;  %1855 = vst [vmem:[#allocation6_spill] sm:$0xff] %v1474_v51  ;;  %v1498_v15 = vld [vmem:[%s1828_s4 + $0x1c] sm:$0xf] }
  0xa6   :  { %1852 = vst [vmem:[#allocation3_spill] sm:$0xff] %v1341_v49  ;;  %v613_v17 = vadd.f32 %v605_v33, %v149_v14  ;;  %v396_v4 = vadd.f32 %v388_v42, %v144_v2  ;;  %v612_v20 = vadd.f32 %v604_v27, %v148_v34  ;;  %v399_v13 = vadd.f32 %v391_v38, %v147_v52  ;;  %v92_v55 = vld [vmem:[%s1828_s4 + $0x10] sm:$0xf]  ;;  %v1503_v33 = vld [vmem:[%s1828_s4 + $0x7c] sm:$0xf] }
  0xa7   :  { %518 = vrot.lane.b32.xlu1 %v1309_v58, %s776_s30  ;;  %v615_v36 = vadd.f32 %v607_v29, %v151_v56  ;;  %v1440_v46 = vadd.f32 %v390_v11, %v146_v12  ;;  %v1442_v3 = vadd.f32 %v606_v43, %v150_v7  ;;  %v1463_v24 = vadd.f32 %v393_v44, %v145_v32  ;;  %v116_v9 = vld [vmem:[%s1828_s4 + $0x70] sm:$0xf]  ;;  %v1518_v29 = vld [vmem:[%s1828_s4 + $0x18] sm:$0xf] }
  0xa8   :  { %516 = vrot.lane.b32.xlu0 %v1311_v5, %s776_s30  ;;  %v1465_v23 = vadd.f32 %v609_v54, %v149_v14  ;;  %v1467_v47 = vadd.f32 %v392_v60, %v144_v2  ;;  %v1469_v21 = vadd.f32 %v608_v28, %v148_v34  ;;  %v1482_v63 = vadd.f32 %v395_v59, %v147_v52  ;;  %v1493_v14 = vld [vmem:[%s1828_s4 + $0x98] sm:$0xf] }
  0xa9   :  { %v1484_v57 = vadd.f32 %v611_v22, %v151_v56  ;;  %v1486_v16 = vadd.f32 %v394_v45, %v146_v12  ;;  %v1488_v32 = vadd.f32 %v610_v39, %v150_v7  ;;  %1856 = vst [vmem:[#allocation7_spill] sm:$0xff] %v1493_v14  ;;  %v493_v42 = vmul.f32 %v1309_v58, %v101_v18  ;;  %v1523_v11 = vld [vmem:[%s1828_s4 + $0x78] sm:$0xf]  ;;  %v121_v22 = vld [vmem:[%s1828_s4 + $0x84] sm:$0xf] }
  0xaa   :  { %v653_v27 = vmul.f32 %v1309_v58, %v125_v61  ;;  %v1508_v2 = vmul.f32 %v1311_v5, %v100_v37  ;;  %v1511_v34 = vmul.f32 %v1311_v5, %v124_v53  ;;  %v1537_v12 = vmul.f32 %v1324_v48, %v1474_v51 }
  0xab   :  { %522 = vrot.lane.b32.xlu1 %v1321_v1, %s776_s30  ;;  %v1541_v7 = vmul.f32 %v1324_v48, %v1493_v14  ;;  %v1549_v28 = vmul.f32 %v1331_v40, %v125_v61  ;;  %v1563_v45 = vmul.f32 %v1333_v19, %v124_v53  ;;  %v120_v14 = vld [vmem:[%s1828_s4 + $0x80] sm:$0xf] }
  0xac   :  { %520 = vrot.lane.b32.xlu0 %v1324_v48, %s776_s30 }
  0xaf   :  { %526 = vrot.lane.b32.xlu1 %v1331_v40, %s776_s30 }
  0xb0   :  { %524 = vrot.lane.b32.xlu0 %v1333_v19, %s776_s30 }
  0xb3   :  { %530 = vrot.lane.b32.xlu1 %v1339_v41, %s776_s30 }
  0xb4   :  { %528 = vrot.lane.b32.xlu0 %v1341_v49, %s776_s30 }
  0xb7   :  { %558 = vrot.lane.b32.xlu1 %v1309_v58, %s775_s29  ;;  %v1527_v58 = vmul.f32 %v1321_v1, %v1450_v25 }
  0xb8   :  { %556 = vrot.lane.b32.xlu0 %v1311_v5, %s775_s29  ;;  %v1531_v5 = vmul.f32 %v1321_v1, %v1455_v8 }
  0xbb   :  { %562 = vrot.lane.b32.xlu1 %v1321_v1, %s775_s29  ;;  %v1546_v1 = vmul.f32 %v1331_v40, %v101_v18 }
  0xbc   :  { %560 = vrot.lane.b32.xlu0 %v1324_v48, %s775_s29  ;;  %v97_v48 = vld [vmem:[%s1828_s4 + $0x24] sm:$0xf] }
  0xbf   :  { %566 = vrot.lane.b32.xlu1 %v1331_v40, %s775_s29 }
  0xc0   :  { %564 = vrot.lane.b32.xlu0 %v1333_v19, %s775_s29 }
  0xc3   :  { %570 = vrot.lane.b32.xlu1 %v1339_v41, %s775_s29 }
  0xc4   :  { %568 = vrot.lane.b32.xlu0 %v1341_v49, %s775_s29 }
  0xf9   :  { %v1378_v10 = vpop.permute.xlu1 %414  ;;  %v1380_v6 = vpop.permute.xlu0 %412 }
  0xfa   :  { %v437_v52 = vmul.f32 %v1378_v10, %v93_v35  ;;  %v621_v38 = vmul.f32 %v1378_v10, %v117_v30  ;;  %v436_v10 = vmul.f32 %v1380_v6, %v92_v55  ;;  %v620_v43 = vmul.f32 %v1380_v6, %v116_v9 }
  0xfc   :  { %v445_v40 = vadd.f32 %v437_v52, %v397_v31  ;;  %v629_v39 = vadd.f32 %v621_v38, %v613_v17  ;;  %v444_v49 = vadd.f32 %v436_v10, %v396_v4  ;;  %v628_v51 = vadd.f32 %v620_v43, %v612_v20  ;;  %v99_v38 = vld [vmem:[%s1828_s4 + $0x2c] sm:$0xf] }
  0xfd   :  { %v419_v50 = vpop.permute.xlu1 %418  ;;  %v417_v26 = vpop.permute.xlu0 %416  ;;  %v123_v4 = vld [vmem:[%s1828_s4 + $0x8c] sm:$0xf] }
  0xfe   :  { %v439_v44 = vmul.f32 %v419_v50, %v1498_v15  ;;  %v623_v54 = vmul.f32 %v419_v50, %v1503_v33  ;;  %v438_v6 = vmul.f32 %v417_v26, %v1518_v29  ;;  %v622_v59 = vmul.f32 %v417_v26, %v1523_v11  ;;  %v96_v26 = vld [vmem:[%s1828_s4 + $0x20] sm:$0xf] }
  0xff   :  { %v1560_v50 = vmul.f32 %v1333_v19, %v100_v37 }
 0x100   :  { %v447_v25 = vadd.f32 %v439_v44, %v399_v13  ;;  %v631_v19 = vadd.f32 %v623_v54, %v615_v36 }
 0x101   :  { %v423_v62 = vpop.permute.xlu1 %422  ;;  %v421_v0 = vpop.permute.xlu0 %420 }
 0x102   :  { %v441_v18 = vmul.f32 %v423_v62, %v93_v35  ;;  %v625_v61 = vmul.f32 %v423_v62, %v117_v30  ;;  %v440_v8 = vmul.f32 %v421_v0, %v92_v55  ;;  %v624_v37 = vmul.f32 %v421_v0, %v116_v9 }
 0x103   :  { %v446_v35 = vadd.f32 %v438_v6, %v1440_v46  ;;  %v630_v30 = vadd.f32 %v622_v59, %v1442_v3  ;;  %v98_v46 = vld [vmem:[%s1828_s4 + $0x28] sm:$0xf] }
 0x104   :  { %v449_v20 = vadd.f32 %v441_v18, %v1463_v24  ;;  %v633_v13 = vadd.f32 %v625_v61, %v1465_v23  ;;  %v122_v3 = vld [vmem:[%s1828_s4 + $0x88] sm:$0xf]  ;;  %v448_v0 = vadd.f32 %v440_v8, %v1467_v47  ;;  %v632_v55 = vadd.f32 %v624_v37, %v1469_v21 }
 0x105   :  { %v427_v56 = vpop.permute.xlu1 %426 }
 0x106   :  { %v425_v60 = vpop.permute.xlu0 %424  ;;  %v443_v8 = vmul.f32 %v427_v56, %v1498_v15 }
 0x109   :  { %v455_v41 = vpop.permute.xlu1 %454 }
 0x10a   :  { %v477_v53 = vmul.f32 %v455_v41, %v97_v48  ;;  %v637_v31 = vmul.f32 %v455_v41, %v121_v22  ;;  %v453_v17 = vpop.permute.xlu0 %452 }
 0x10b   :  { %v476_v62 = vmul.f32 %v453_v17, %v96_v26  ;;  %v636_v52 = vmul.f32 %v453_v17, %v120_v14 }
 0x10c   :  { %v485_v41 = vadd.f32 %v477_v53, %v445_v40  ;;  %v645_v36 = vadd.f32 %v637_v31, %v629_v39 }
 0x10d   :  { %v484_v9 = vadd.f32 %v476_v62, %v444_v49  ;;  %v644_v10 = vadd.f32 %v636_v52, %v628_v51  ;;  %v459_v43 = vpop.permute.xlu1 %458  ;;  %v627_v49 = vmul.f32 %v427_v56, %v1503_v33  ;;  %v442_v51 = vmul.f32 %v425_v60, %v1518_v29 }
 0x10e   :  { %v479_v24 = vmul.f32 %v459_v43, %v99_v38  ;;  %v639_v44 = vmul.f32 %v459_v43, %v123_v4  ;;  %v457_v23 = vpop.permute.xlu0 %456  ;;  %v1589_v54 = vadd.f32 %v493_v42, %v485_v41  ;;  %v1591_v6 = vadd.f32 %v653_v27, %v645_v36 }
 0x10f   :  { %v478_v59 = vmul.f32 %v457_v23, %v98_v46  ;;  %v638_v40 = vmul.f32 %v457_v23, %v122_v3  ;;  %v1594_v39 = vadd.f32 %v1508_v2, %v484_v9  ;;  %v1597_v18 = vadd.f32 %v1511_v34, %v644_v10 }
 0x110   :  { %v487_v47 = vadd.f32 %v479_v24, %v447_v25  ;;  %v647_v21 = vadd.f32 %v639_v44, %v631_v19  ;;  %v626_v42 = vmul.f32 %v425_v60, %v1523_v11  ;;  %v451_v11 = vadd.f32 %v443_v8, %v1482_v63  ;;  %v104_v8 = vld [vmem:[%s1828_s4 + $0x40] sm:$0xf] }
 0x111   :  { %v486_v27 = vadd.f32 %v478_v59, %v446_v35  ;;  %v646_v61 = vadd.f32 %v638_v40, %v630_v30  ;;  %v463_v37 = vpop.permute.xlu1 %462  ;;  %v635_v56 = vadd.f32 %v627_v49, %v1484_v57  ;;  %v105_v59 = vld [vmem:[%s1828_s4 + $0x44] sm:$0xf]  ;;  %v128_v49 = vld [vmem:[%s1828_s4 + $0xa0] sm:$0xf] }
 0x112   :  { %v481_v53 = vmul.f32 %v463_v37, %v97_v48  ;;  %v641_v31 = vmul.f32 %v463_v37, %v121_v22  ;;  %v461_v2 = vpop.permute.xlu0 %460  ;;  %v1604_v17 = vadd.f32 %v1527_v58, %v487_v47  ;;  %v1607_v34 = vadd.f32 %v1531_v5, %v647_v21  ;;  %v129_v40 = vld [vmem:[%s1828_s4 + $0xa4] sm:$0xf]  ;;  %v107_v47 = vld [vmem:[%s1828_s4 + $0x4c] sm:$0xf] }
 0x113   :  { %v480_v15 = vmul.f32 %v461_v2, %v96_v26  ;;  %v640_v33 = vmul.f32 %v461_v2, %v120_v14  ;;  %v1610_v25 = vadd.f32 %v1537_v12, %v486_v27  ;;  %v1613_v29 = vadd.f32 %v1541_v7, %v646_v61  ;;  %v130_v27 = vld [vmem:[%s1828_s4 + $0xa8] sm:$0xf] }
 0x114   :  { %v489_v60 = vadd.f32 %v481_v53, %v449_v20  ;;  %v649_v48 = vadd.f32 %v641_v31, %v633_v13  ;;  %v450_v58 = vadd.f32 %v442_v51, %v1486_v16  ;;  %v634_v22 = vadd.f32 %v626_v42, %v1488_v32  ;;  %v1857_v20 = vld [vmem:[#allocation4_spill] sm:$0xff]  ;;  %v1858_v13 = vld [vmem:[#allocation2_spill] sm:$0xff]  ;;  %v131_v51 = vld [vmem:[%s1828_s4 + $0xac] sm:$0xf] }
 0x115   :  { %v488_v5 = vadd.f32 %v480_v15, %v448_v0  ;;  %v648_v19 = vadd.f32 %v640_v33, %v632_v55  ;;  %v467_v26 = vpop.permute.xlu1 %466  ;;  %v1860_v0 = vld [vmem:[#allocation6_spill] sm:$0xff]  ;;  %v1862_v55 = vld [vmem:[#allocation7_spill] sm:$0xff] }
 0x116   :  { %v483_v14 = vmul.f32 %v467_v26, %v99_v38  ;;  %v643_v35 = vmul.f32 %v467_v26, %v123_v4  ;;  %v465_v12 = vpop.permute.xlu0 %464  ;;  %v505_v30 = vadd.f32 %v1546_v1, %v489_v60  ;;  %v1621_v7 = vadd.f32 %v1549_v28, %v649_v48  ;;  %v1859_v4 = vld [vmem:[#allocation5_spill] sm:$0xff]  ;;  %v106_v42 = vld [vmem:[%s1828_s4 + $0x48] sm:$0xf] }
 0x117   :  { %v482_v63 = vmul.f32 %v465_v12, %v98_v46  ;;  %v642_v62 = vmul.f32 %v465_v12, %v122_v3  ;;  %v1624_v57 = vadd.f32 %v1560_v50, %v488_v5  ;;  %v1627_v16 = vadd.f32 %v1563_v45, %v648_v19  ;;  %v1861_v46 = vld [vmem:[#allocation3_spill] sm:$0xff] }
 0x118   :  { %v491_v32 = vadd.f32 %v483_v14, %v451_v11  ;;  %v651_v52 = vadd.f32 %v643_v35, %v635_v56  ;;  %v499_v38 = vmul.f32 %v1858_v13, %v1857_v20  ;;  %v659_v41 = vmul.f32 %v1858_v13, %v1859_v4  ;;  %v109_v14 = vld [vmem:[%s1828_s4 + $0x54] sm:$0xf] }
 0x119   :  { %v490_v1 = vadd.f32 %v482_v63, %v450_v58  ;;  %v650_v36 = vadd.f32 %v642_v62, %v634_v22  ;;  %v519_v28 = vpop.permute.xlu1 %518  ;;  %v498_v3 = vmul.f32 %v1861_v46, %v1860_v0  ;;  %v658_v50 = vmul.f32 %v1861_v46, %v1862_v55  ;;  %v133_v35 = vld [vmem:[%s1828_s4 + $0xb4] sm:$0xf]  ;;  %v1705_v55 = vld [vmem:[%s1828_s4 + $0x58] sm:$0xf] }
 0x11a   :  { %v517_v9 = vpop.permute.xlu0 %516  ;;  %v1637_v45 = vadd.f32 %v499_v38, %v491_v32  ;;  %v1639_v10 = vadd.f32 %v659_v41, %v651_v52  ;;  %v541_v37 = vmul.f32 %v519_v28, %v105_v59  ;;  %v669_v53 = vmul.f32 %v519_v28, %v129_v40 }
 0x11b   :  { %v1641_v43 = vadd.f32 %v498_v3, %v490_v1  ;;  %v1643_v24 = vadd.f32 %v658_v50, %v650_v36  ;;  %v540_v31 = vmul.f32 %v517_v9, %v104_v8  ;;  %v668_v2 = vmul.f32 %v517_v9, %v128_v49  ;;  %v1710_v50 = vld [vmem:[%s1828_s4 + $0xb8] sm:$0xf] }
 0x11c   :  { %v549_v22 = vadd.f32 %v541_v37, %v1589_v54  ;;  %v677_v5 = vadd.f32 %v669_v53, %v1591_v6  ;;  %v108_v54 = vld [vmem:[%s1828_s4 + $0x50] sm:$0xf] }
 0x11d   :  { %v523_v44 = vpop.permute.xlu1 %522  ;;  %v548_v19 = vadd.f32 %v540_v31, %v1594_v39  ;;  %v676_v12 = vadd.f32 %v668_v2, %v1597_v18  ;;  %v132_v6 = vld [vmem:[%s1828_s4 + $0xb0] sm:$0xf] }
 0x11e   :  { %v521_v23 = vpop.permute.xlu0 %520  ;;  %v543_v15 = vmul.f32 %v523_v44, %v107_v47  ;;  %v671_v33 = vmul.f32 %v523_v44, %v131_v51 }
 0x11f   :  { %v542_v11 = vmul.f32 %v521_v23, %v106_v42  ;;  %v670_v56 = vmul.f32 %v521_v23, %v130_v27 }
 0x120   :  { %v551_v63 = vadd.f32 %v543_v15, %v1604_v17  ;;  %v679_v39 = vadd.f32 %v671_v33, %v1607_v34  ;;  %v1693_v34 = vld [vmem:[%s1828_s4 + $0x5c] sm:$0xf] }
 0x121   :  { %v527_v21 = vpop.permute.xlu1 %526  ;;  %v550_v52 = vadd.f32 %v542_v11, %v1610_v25  ;;  %v678_v20 = vadd.f32 %v670_v56, %v1613_v29  ;;  %v1698_v25 = vld [vmem:[%s1828_s4 + $0xbc] sm:$0xf] }
 0x122   :  { %v525_v61 = vpop.permute.xlu0 %524  ;;  %v545_v48 = vmul.f32 %v527_v21, %v105_v59  ;;  %v673_v26 = vmul.f32 %v527_v21, %v129_v40 }
 0x123   :  { %v544_v62 = vmul.f32 %v525_v61, %v104_v8  ;;  %v672_v32 = vmul.f32 %v525_v61, %v128_v49  ;;  %v32_v49 = vld [vmem:[%s1830_s2] sm:$0xf] }
 0x124   :  { %v553_v38 = vadd.f32 %v545_v48, %v505_v30  ;;  %v681_v36 = vadd.f32 %v673_v26, %v1621_v7 }
 0x125   :  { %v531_v60 = vpop.permute.xlu1 %530  ;;  %v552_v29 = vadd.f32 %v544_v62, %v1624_v57  ;;  %v680_v30 = vadd.f32 %v672_v32, %v1627_v16  ;;  %v33_v57 = vld [vmem:[%s1830_s2 + $0x4] sm:$0xf] }
 0x126   :  { %v529_v58 = vpop.permute.xlu0 %528  ;;  %v547_v13 = vmul.f32 %v531_v60, %v107_v47  ;;  %v675_v17 = vmul.f32 %v531_v60, %v131_v51 }
 0x127   :  { %v546_v28 = vmul.f32 %v529_v58, %v106_v42  ;;  %v1715_v44 = vmul.f32 %v529_v58, %v130_v27 }
 0x128   :  { %v1713_v9 = vadd.f32 %v547_v13, %v1637_v45  ;;  %v683_v40 = vadd.f32 %v675_v17, %v1639_v10 }
 0x129   :  { %v559_v18 = vpop.permute.xlu1 %558  ;;  %v1727_v51 = vadd.f32 %v546_v28, %v1641_v43 }
 0x12a   :  { %v581_v4 = vmul.f32 %v559_v18, %v109_v14  ;;  %v685_v41 = vmul.f32 %v559_v18, %v133_v35  ;;  %v557_v1 = vpop.permute.xlu0 %556 }
 0x12b   :  { %v580_v0 = vmul.f32 %v557_v1, %v108_v54  ;;  %v684_v46 = vmul.f32 %v557_v1, %v132_v6 }
 0x12c   :  { %v589_v3 = vadd.f32 %v581_v4, %v549_v22  ;;  %v693_v7 = vadd.f32 %v685_v41, %v677_v5 }
 0x12d   :  { %v588_v16 = vadd.f32 %v580_v0, %v548_v19  ;;  %v692_v23 = vadd.f32 %v684_v46, %v676_v12  ;;  %v563_v59 = vpop.permute.xlu1 %562 }
 0x12e   :  { %v701_v8 = vmax.f32 %v693_v7, 0.0  ;;  %v561_v47 = vpop.permute.xlu0 %560  ;;  %v583_v45 = vmul.f32 %v563_v59, %v1693_v34  ;;  %v687_v21 = vmul.f32 %v563_v59, %v1698_v25  ;;  %v597_v37 = vmax.f32 %v589_v3, 0.0  ;;  %v34_v59 = vld [vmem:[%s1830_s2 + $0x8] sm:$0xf] }
 0x12f   :  { %v700_v42 = vmax.f32 %v692_v23, 0.0  ;;  %v582_v27 = vmul.f32 %v561_v47, %v1705_v55  ;;  %v686_v61 = vmul.f32 %v561_v47, %v1710_v50  ;;  %v596_v53 = vmax.f32 %v588_v16, 0.0 }
 0x130   :  { %v709_v10 = vadd.f32 %v701_v8, %v33_v57  ;;  %v591_v31 = vadd.f32 %v583_v45, %v551_v63  ;;  %v695_v33 = vadd.f32 %v687_v21, %v679_v39  ;;  %v37_v63 = vld [vmem:[%s1830_s2 + $0x14] sm:$0xf] }
 0x131   :  { %v708_v2 = vadd.f32 %v700_v42, %v32_v49  ;;  %v567_v15 = vpop.permute.xlu1 %566  ;;  %v1731_v11 = vadd.f32 %v582_v27, %v550_v52  ;;  %v694_v56 = vadd.f32 %v686_v61, %v678_v20 }
 0x132   :  { %v717_v60 = vadd.f32 %v709_v10, %v597_v37  ;;  %v733_v48 = vsub.f32 %v709_v10, %v597_v37  ;;  %v585_v58 = vmul.f32 %v567_v15, %v109_v14  ;;  %v689_v43 = vmul.f32 %v567_v15, %v133_v35  ;;  %v565_v22 = vpop.permute.xlu0 %564  ;;  %v35_v14 = vld [vmem:[%s1830_s2 + $0xc] sm:$0xf] }
 0x133   :  { %v716_v5 = vadd.f32 %v708_v2, %v596_v53  ;;  %v732_v19 = vsub.f32 %v708_v2, %v596_v53  ;;  %v584_v26 = vmul.f32 %v565_v22, %v108_v54  ;;  %v688_v12 = vmul.f32 %v565_v22, %v132_v6 }
 0x134   :  { %v725_v62 = vmul.f32 0.70710677, %v717_v60  ;;  %v741_v32 = vmul.f32 0.70710677, %v733_v48  ;;  %v593_v13 = vadd.f32 %v585_v58, %v553_v38  ;;  %v697_v39 = vadd.f32 %v689_v43, %v681_v36  ;;  %v36_v38 = vld [vmem:[%s1830_s2 + $0x10] sm:$0xf] }
 0x135   :  { %v724_v52 = vmul.f32 0.70710677, %v716_v5  ;;  %v740_v18 = vmul.f32 0.70710677, %v732_v19  ;;  %v592_v20 = vadd.f32 %v584_v26, %v552_v29  ;;  %v696_v17 = vadd.f32 %v688_v12, %v680_v30  ;;  %v571_v35 = vpop.permute.xlu1 %570  ;;  %v38_v5 = vld [vmem:[%s1830_s2 + $0x18] sm:$0xf] }
 0x136   :  { %750 = vst.msk [vmem:[%s1831_s7 + $0x4] sm:$0xf] %vm748_vm0, %v725_v62  ;;  %758 = vst.msk [vmem:[%s1832_s8 + $0x4] sm:$0xf] %vm748_vm0, %v741_v32  ;;  %v601_v54 = vmax.f32 %v593_v13, 0.0  ;;  %v705_v6 = vmax.f32 %v697_v39, 0.0  ;;  %v569_v1 = vpop.permute.xlu0 %568  ;;  %v587_v0 = vmul.f32 %v571_v35, %v1693_v34  ;;  %v691_v46 = vmul.f32 %v571_v35, %v1698_v25 }
 0x137   :  { %v599_v4 = vmax.f32 %v591_v31, 0.0  ;;  %v703_v41 = vmax.f32 %v695_v33, 0.0  ;;  %749 = vst.msk [vmem:[%s1831_s7] sm:$0xf] %vm748_vm0, %v724_v52  ;;  %757 = vst.msk [vmem:[%s1832_s8] sm:$0xf] %vm748_vm0, %v740_v18  ;;  %v586_v8 = vmul.f32 %v569_v1, %v1705_v55  ;;  %v682_v15 = vadd.f32 %v1715_v44, %v1643_v24 }
 0x138   :  { %v600_v36 = vmax.f32 %v592_v20, 0.0  ;;  %v704_v28 = vmax.f32 %v696_v17, 0.0  ;;  %v713_v29 = vadd.f32 %v705_v6, %v37_v63  ;;  %v598_v3 = vmax.f32 %v1731_v11, 0.0  ;;  %v39_v34 = vld [vmem:[%s1830_s2 + $0x1c] sm:$0xf] }
 0x139   :  { %v711_v30 = vadd.f32 %v703_v41, %v35_v14  ;;  %v702_v7 = vmax.f32 %v694_v56, 0.0  ;;  %v595_v16 = vadd.f32 %v587_v0, %v1713_v9  ;;  %v699_v23 = vadd.f32 %v691_v46, %v683_v40 }
 0x13a   :  { %v712_v57 = vadd.f32 %v704_v28, %v36_v38  ;;  %v721_v49 = vadd.f32 %v713_v29, %v601_v54  ;;  %v737_v47 = vsub.f32 %v713_v29, %v601_v54  ;;  %v690_v56 = vmul.f32 %v569_v1, %v1710_v50 }
 0x13b   :  { %v719_v25 = vadd.f32 %v711_v30, %v599_v4  ;;  %v735_v45 = vsub.f32 %v711_v30, %v599_v4  ;;  %v603_v27 = vmax.f32 %v595_v16, 0.0  ;;  %v707_v61 = vmax.f32 %v699_v23, 0.0 }
 0x13c   :  { %v720_v21 = vadd.f32 %v712_v57, %v600_v36  ;;  %v736_v42 = vsub.f32 %v712_v57, %v600_v36  ;;  %v729_v9 = vmul.f32 0.70710677, %v721_v49  ;;  %v745_v40 = vmul.f32 0.70710677, %v737_v47 }
 0x13d   :  { %v727_v37 = vmul.f32 0.70710677, %v719_v25  ;;  %v710_v10 = vadd.f32 %v702_v7, %v34_v59  ;;  %v743_v2 = vmul.f32 0.70710677, %v735_v45  ;;  %v715_v55 = vadd.f32 %v707_v61, %v39_v34 }
 0x13e   :  { %v728_v53 = vmul.f32 0.70710677, %v720_v21  ;;  %v744_v31 = vmul.f32 0.70710677, %v736_v42  ;;  %754 = vst.msk [vmem:[%s1831_s7 + $0x14] sm:$0xf] %vm748_vm0, %v729_v9  ;;  %v594_v50 = vadd.f32 %v586_v8, %v1727_v51  ;;  %v698_v58 = vadd.f32 %v690_v56, %v682_v15 }
 0x13f   :  { %762 = vst.msk [vmem:[%s1832_s8 + $0x14] sm:$0xf] %vm748_vm0, %v745_v40  ;;  %752 = vst.msk [vmem:[%s1831_s7 + $0xc] sm:$0xf] %vm748_vm0, %v727_v37  ;;  %v718_v33 = vadd.f32 %v710_v10, %v598_v3  ;;  %v734_v11 = vsub.f32 %v710_v10, %v598_v3  ;;  %v723_v24 = vadd.f32 %v715_v55, %v603_v27 }
 0x140   :  { %753 = vst.msk [vmem:[%s1831_s7 + $0x10] sm:$0xf] %vm748_vm0, %v728_v53  ;;  %761 = vst.msk [vmem:[%s1832_s8 + $0x10] sm:$0xf] %vm748_vm0, %v744_v31  ;;  %v739_v44 = vsub.f32 %v715_v55, %v603_v27  ;;  %v706_v19 = vmax.f32 %v698_v58, 0.0  ;;  %v602_v51 = vmax.f32 %v594_v50, 0.0 }
 0x141   :  { %760 = vst.msk [vmem:[%s1832_s8 + $0xc] sm:$0xf] %vm748_vm0, %v743_v2  ;;  %v726_v60 = vmul.f32 0.70710677, %v718_v33  ;;  %v742_v48 = vmul.f32 0.70710677, %v734_v11 }
 0x142   :  { %v731_v43 = vmul.f32 0.70710677, %v723_v24  ;;  %v747_v22 = vmul.f32 0.70710677, %v739_v44  ;;  %v714_v26 = vadd.f32 %v706_v19, %v38_v5 }
 0x143   :  { %751 = vst.msk [vmem:[%s1831_s7 + $0x8] sm:$0xf] %vm748_vm0, %v726_v60  ;;  %759 = vst.msk [vmem:[%s1832_s8 + $0x8] sm:$0xf] %vm748_vm0, %v742_v48 }
 0x144   :  { %756 = vst.msk [vmem:[%s1831_s7 + $0x1c] sm:$0xf] %vm748_vm0, %v731_v43  ;;  %764 = vst.msk [vmem:[%s1832_s8 + $0x1c] sm:$0xf] %vm748_vm0, %v747_v22  ;;  %v722_v12 = vadd.f32 %v714_v26, %v602_v51  ;;  %v738_v62 = vsub.f32 %v714_v26, %v602_v51 }
 0x146   :  { %v730_v32 = vmul.f32 0.70710677, %v722_v12  ;;  %v746_v63 = vmul.f32 0.70710677, %v738_v62 }
 0x148   :  { %755 = vst.msk [vmem:[%s1831_s7 + $0x18] sm:$0xf] %vm748_vm0, %v730_v32  ;;  %763 = vst.msk [vmem:[%s1832_s8 + $0x18] sm:$0xf] %vm748_vm0, %v746_v63 }

</bundles_post_ra>
